<compile_context>
chip_gen: v6e
topology: v6e:2x2x1
jax: 0.10.0
libtpu: 0.0.40
codegen_flags: <defaults>
</compile_context>

<pallas_src>
import functools
import math

import jax
import jax.numpy as jnp
from jax import lax
from jax.experimental import pallas as pl
from jax.experimental.pallas import tpu as pltpu


# ----------------------------------------------------------------------------
# In-kernel helpers
# ----------------------------------------------------------------------------
def _layer_norm(x, g, b, eps=1e-5):
    mu = jnp.mean(x, axis=-1, keepdims=True)
    xc = x - mu
    var = jnp.mean(xc * xc, axis=-1, keepdims=True)
    return xc * lax.rsqrt(var + eps) * g + b


def _gelu_exact(x):
    # PyTorch F.gelu default (erf form)
    return 0.5 * x * (1.0 + lax.erf(x * 0.7071067811865476))


# ----------------------------------------------------------------------------
# Fused branch kernel:
#   tokens -> linear_in -> pre-LN TransformerEncoderLayer -> linear_out
# One grid step processes G whole sequences flattened to R = G*seq_len rows.
# ----------------------------------------------------------------------------
def _fused_branch_kernel(
    tok_ref,
    win_ref, bin_ref,
    ln1g_ref, ln1b_ref,
    wq_ref, bq_ref, wk_ref, bk_ref, wv_ref, bv_ref,
    wo_ref, bo_ref,
    ln2g_ref, ln2b_ref,
    w1_ref, b1_ref, w2_ref, b2_ref,
    wout_ref, bout_ref,
    o_ref,
    *, nheads, head_dim, seq_len,
):
    f32 = jnp.float32
    tok = tok_ref[...]                                       # [R, Fin]
    rows = tok.shape[0]

    # ---- input projection (fused; result stays in VMEM) ----
    x = jnp.dot(tok, win_ref[...], preferred_element_type=f32) + bin_ref[...]

    # ---- block-diagonal attention bias over the G sequences in this block ----
    # sequence id = floor(row / seq_len), computed with a float floor (no int div).
    ri = lax.broadcasted_iota(jnp.int32, (rows, rows), 0).astype(f32)
    ci = lax.broadcasted_iota(jnp.int32, (rows, rows), 1).astype(f32)
    inv_s = 1.0 / float(seq_len)
    same_seq = jnp.floor((ri + 0.5) * inv_s) == jnp.floor((ci + 0.5) * inv_s)
    attn_bias = jnp.where(same_seq, 0.0, -1e30)

    # ---- multi-head self-attention (pre-LN) ----
    h = _layer_norm(x, ln1g_ref[...], ln1b_ref[...])
    scale = 1.0 / math.sqrt(head_dim)                        # folded into Q once
    q = (jnp.dot(h, wq_ref[...], preferred_element_type=f32) + bq_ref[...]) * scale
    k = jnp.dot(h, wk_ref[...], preferred_element_type=f32) + bk_ref[...]
    v = jnp.dot(h, wv_ref[...], preferred_element_type=f32) + bv_ref[...]

    attn_proj = jnp.zeros_like(x)
    for hh in range(nheads):                                 # static unroll
        lo = hh * head_dim
        qh = q[:, lo:lo + head_dim]
        kh = k[:, lo:lo + head_dim]
        vh = v[:, lo:lo + head_dim]
        s = lax.dot_general(qh, kh, (((1,), (1,)), ((), ())),
                            preferred_element_type=f32) + attn_bias
        s = s - jnp.max(s, axis=-1, keepdims=True)
        p = jnp.exp(s)
        p = p * pl.reciprocal(jnp.sum(p, axis=-1, keepdims=True), approx=True)
        oh = jnp.dot(p, vh, preferred_element_type=f32)      # [R, head_dim]
        # accumulate through this head's rows of W_o (no concat / lane repack)
        attn_proj = attn_proj + jnp.dot(oh, wo_ref[lo:lo + head_dim, :],
                                        preferred_element_type=f32)
    x = x + attn_proj + bo_ref[...]

    # ---- feed-forward (pre-LN, exact GELU) ----
    h2 = _layer_norm(x, ln2g_ref[...], ln2b_ref[...])
    f = jnp.dot(h2, w1_ref[...], preferred_element_type=f32) + b1_ref[...]
    f = _gelu_exact(f)
    f = jnp.dot(f, w2_ref[...], preferred_element_type=f32) + b2_ref[...]
    x = x + f

    # ---- output projection (fused) ----
    o_ref[...] = jnp.dot(x, wout_ref[...], preferred_element_type=f32) + bout_ref[...]


def _pick_group(n_seq, seq_len, target_rows=256):
    """#sequences per grid step: aim for ~target_rows matmul rows while keeping the
    block's sublane dim a multiple of 8 (or the full array) and dividing n_seq."""
    g = max(1, min(n_seq, target_rows // max(seq_len, 1)))
    while g > 1 and (n_seq % g != 0 or (g * seq_len) % 8 != 0):
        g -= 1
    if (g * seq_len) % 8 != 0 and g != n_seq:
        g = n_seq                                            # single full block
    return g


def fused_branch_pallas(tokens, w_in, b_in, enc, w_out, b_out, *,
                        seq_len, nheads, target_rows=256):
    """tokens: [n_seq*seq_len, Fin] f32 (features on the lane axis).
    Returns linear_out(encoder(linear_in(tokens))) with shape [n_seq*seq_len, Fout]."""
    n, fin = tokens.shape
    n_seq = n // seq_len
    d = w_in.shape[1]
    fout = w_out.shape[1]
    head_dim = d // nheads

    g = _pick_group(n_seq, seq_len, target_rows)
    r = g * seq_len

    weights = [
        w_in, b_in,
        enc["ln1_g"], enc["ln1_b"],
        enc["wq"], enc["bq"], enc["wk"], enc["bk"], enc["wv"], enc["bv"],
        enc["wo"], enc["bo"],
        enc["ln2_g"], enc["ln2_b"],
        enc["w1"], enc["b1"], enc["w2"], enc["b2"],
        w_out, b_out,
    ]

    kern = functools.partial(_fused_branch_kernel, nheads=nheads,
                             head_dim=head_dim, seq_len=seq_len)

    def _resident(a):      # small weight: whole array resident every grid step
        return pl.BlockSpec(a.shape, lambda i: (0, 0))

    in_specs = [pl.BlockSpec((r, fin), lambda i: (i, 0))] + [_resident(a) for a in weights]

    return pl.pallas_call(
        kern,
        out_shape=jax.ShapeDtypeStruct((n, fout), jnp.float32),
        grid=(n // r,),
        in_specs=in_specs,
        out_specs=pl.BlockSpec((r, fout), lambda i: (i, 0)),
        compiler_params=pltpu.CompilerParams(
            dimension_semantics=("parallel",)),   # shards row-tile groups across TCs (v7x)
    )(tokens, *weights)


# ----------------------------------------------------------------------------
# Parameter initialization (PyTorch layout) + one-time kernel-layout preparation
# ----------------------------------------------------------------------------
def _init_linear(key, dout, din):
    bound = 1.0 / math.sqrt(din)
    kw, kb = jax.random.split(key)
    w = jax.random.uniform(kw, (dout, din), jnp.float32, -bound, bound)
    b = jax.random.uniform(kb, (dout,), jnp.float32, -bound, bound)
    return w, b


def _init_encoder_layer(key, d, dff):
    ks = jax.random.split(key, 6)
    wq, bq = _init_linear(ks[0], d, d)
    wk, bk = _init_linear(ks[1], d, d)
    wv, bv = _init_linear(ks[2], d, d)
    wo, bo = _init_linear(ks[3], d, d)
    w1, b1 = _init_linear(ks[4], dff, d)
    w2, b2 = _init_linear(ks[5], d, dff)
    return dict(
        ln1_g=jnp.ones((d,), jnp.float32), ln1_b=jnp.zeros((d,), jnp.float32),
        ln2_g=jnp.ones((d,), jnp.float32), ln2_b=jnp.zeros((d,), jnp.float32),
        wq=wq, bq=bq, wk=wk, bk=bk, wv=wv, bv=bv, wo=wo, bo=bo,
        w1=w1, b1=b1, w2=w2, b2=b2,
    )


def init_spec_tnt_params(key, *, K, F, T, D, ds, sff, dt, tff):
    ks = jax.random.split(key, 8)
    d_to_k_w, d_to_k_b = _init_linear(ks[0], K, D)
    k_to_d_w, k_to_d_b = _init_linear(ks[1], D, K)
    spec_in_w, spec_in_b = _init_linear(ks[2], ds, F + 1)
    spec_out_w, spec_out_b = _init_linear(ks[3], F + 1, ds)
    temp_in_w, temp_in_b = _init_linear(ks[4], dt, T)
    temp_out_w, temp_out_b = _init_linear(ks[5], T, dt)
    return dict(
        d_to_k_w=d_to_k_w, d_to_k_b=d_to_k_b,
        k_to_d_w=k_to_d_w, k_to_d_b=k_to_d_b,
        spec_lin_in_w=spec_in_w, spec_lin_in_b=spec_in_b,
        spec_lin_out_w=spec_out_w, spec_lin_out_b=spec_out_b,
        temp_lin_in_w=temp_in_w, temp_lin_in_b=temp_in_b,
        temp_lin_out_w=temp_out_w, temp_lin_out_b=temp_out_b,
        spec_enc=_init_encoder_layer(ks[6], ds, sff),
        temp_enc=_init_encoder_layer(ks[7], dt, tff),
    )


def prepare_params(params):
    """One-time conversion from PyTorch layout ([Dout,Din] weights, [Dout] biases)
    to kernel layout ([Din,Dout] weights, [1,Dout] biases). Done once, not per fwd."""
    def enc(e):
        out = {}
        for k in ("ln1_g", "ln1_b", "ln2_g", "ln2_b"):
            out[k] = e[k].reshape(1, -1)
        for wk, bk in (("wq", "bq"), ("wk", "bk"), ("wv", "bv"),
                       ("wo", "bo"), ("w1", "b1"), ("w2", "b2")):
            out[wk] = e[wk].T
            out[bk] = e[bk].reshape(1, -1)
        return out

    pp = {}
    for name in ("d_to_k", "k_to_d", "spec_lin_in", "spec_lin_out",
                 "temp_lin_in", "temp_lin_out"):
        pp[name + "_w"] = params[name + "_w"].T
        pp[name + "_b"] = params[name + "_b"].reshape(1, -1)
    pp["spec_enc"] = enc(params["spec_enc"])
    pp["temp_enc"] = enc(params["temp_enc"])
    return jax.tree_util.tree_map(jnp.asarray, pp)


# ----------------------------------------------------------------------------
# SpecTNTBlock forward (two fused Pallas kernels + thin jitted XLA glue)
# ----------------------------------------------------------------------------
def spec_tnt_forward(pp, spec_in, temp_in, *, spectral_nheads, temporal_nheads):
    B, T, Fp1, K = spec_in.shape
    D = temp_in.shape[-1]

    # ---- spectral branch -----------------------------------------------------
    # D_to_K + scatter-add into frequency row 0 (no padded-zeros tensor), then the
    # module's flatten/transpose to lane-dense tokens [B*T*K, F+1].
    dk = jnp.dot(temp_in.reshape(B * T, D), pp["d_to_k_w"]) + pp["d_to_k_b"]     # [B*T, K]
    spec_aug = spec_in.at[:, :, 0, :].add(dk.reshape(B, T, K))
    spec_tok = spec_aug.transpose(0, 1, 3, 2).reshape(B * T * K, Fp1)

    spec_tok_out = fused_branch_pallas(
        spec_tok, pp["spec_lin_in_w"], pp["spec_lin_in_b"],
        pp["spec_enc"], pp["spec_lin_out_w"], pp["spec_lin_out_b"],
        seq_len=K, nheads=spectral_nheads)

    spec_out = spec_tok_out.reshape(B, T, K, Fp1).transpose(0, 1, 3, 2)          # [B,T,F+1,K]

    # ---- temporal branch -----------------------------------------------------
    # K_to_D on the f=0 slice of spec_out, residual add, then permute to tokens
    # [B*D, T] (sequence length D per batch element, feature axis T).
    kd = jnp.dot(spec_out[:, :, 0, :].reshape(B * T, K), pp["k_to_d_w"]) + pp["k_to_d_b"]
    temp = temp_in.reshape(B * T, D) + kd
    temp_tok = temp.reshape(B, T, D).transpose(0, 2, 1).reshape(B * D, T)

    temp_tok_out = fused_branch_pallas(
        temp_tok, pp["temp_lin_in_w"], pp["temp_lin_in_b"],
        pp["temp_enc"], pp["temp_lin_out_w"], pp["temp_lin_out_b"],
        seq_len=D, nheads=temporal_nheads)

    temp_out = temp_tok_out.reshape(B, D, T).transpose(0, 2, 1)[:, :, None, :]   # [B,T,1,D]
    return spec_out, temp_out


# ----------------------------------------------------------------------------
# Pure-JAX reference (same math, no Pallas) for a sanity check
# ----------------------------------------------------------------------------
def _ref_linear(x, w, b):
    return x @ w.T + b


def _ref_ln(x, g, b, eps=1e-5):
    mu = jnp.mean(x, axis=-1, keepdims=True)
    var = jnp.mean((x - mu) ** 2, axis=-1, keepdims=True)
    return (x - mu) / jnp.sqrt(var + eps) * g + b


def _ref_encoder(x, p, nheads):
    n, s, d = x.shape
    hd = d // nheads
    h = _ref_ln(x, p["ln1_g"], p["ln1_b"])
    q = (_ref_linear(h, p["wq"], p["bq"])).reshape(n, s, nheads, hd)
    k = (_ref_linear(h, p["wk"], p["bk"])).reshape(n, s, nheads, hd)
    v = (_ref_linear(h, p["wv"], p["bv"])).reshape(n, s, nheads, hd)
    sc = jnp.einsum("nqhd,nkhd->nhqk", q, k) / math.sqrt(hd)
    attn = jax.nn.softmax(sc, axis=-1)
    o = jnp.einsum("nhqk,nkhd->nqhd", attn, v).reshape(n, s, d)
    x = x + _ref_linear(o, p["wo"], p["bo"])
    h2 = _ref_ln(x, p["ln2_g"], p["ln2_b"])
    f = jax.nn.gelu(_ref_linear(h2, p["w1"], p["b1"]), approximate=False)
    return x + _ref_linear(f, p["w2"], p["b2"])


def ref_forward(params, spec_in, temp_in, *, spectral_nheads, temporal_nheads):
    B, T, Fp1, K = spec_in.shape
    D = temp_in.shape[-1]
    dk = _ref_linear(temp_in, params["d_to_k_w"], params["d_to_k_b"])
    spec = spec_in + jnp.pad(dk, ((0, 0), (0, 0), (0, Fp1 - 1), (0, 0)))
    spec = spec.reshape(B * T, Fp1, K).transpose(0, 2, 1)
    emb = _ref_linear(spec, params["spec_lin_in_w"], params["spec_lin_in_b"])
    enc = _ref_encoder(emb, params["spec_enc"], spectral_nheads)
    spec_out = _ref_linear(enc, params["spec_lin_out_w"], params["spec_lin_out_b"])
    spec_out = spec_out.reshape(B, T, K, Fp1).transpose(0, 1, 3, 2)
    kd = _ref_linear(spec_out[:, :, :1, :], params["k_to_d_w"], params["k_to_d_b"])
    temp = temp_in + kd
    temp = jnp.transpose(temp, (0, 2, 3, 1)).reshape(B, D, T)
    emb_t = _ref_linear(temp, params["temp_lin_in_w"], params["temp_lin_in_b"])
    enc_t = _ref_encoder(emb_t, params["temp_enc"], temporal_nheads)
    temp_out = _ref_linear(enc_t, params["temp_lin_out_w"], params["temp_lin_out_b"])
    temp_out = jnp.transpose(temp_out[:, None, :, :], (0, 3, 1, 2))
    return spec_out, temp_out


# ----------------------------------------------------------------------------
if __name__ == "__main__":
    # small config (use_tct=False so T stays 4)
    B, K, F, T, D = 2, 4, 8, 4, 32
    ds, s_heads, s_ff = 32, 4, 64
    dt, t_heads, t_ff = 32, 4, 64

    key = jax.random.PRNGKey(0)
    k_par, k_spec, k_temp = jax.random.split(key, 3)

    params = init_spec_tnt_params(k_par, K=K, F=F, T=T, D=D,
                                  ds=ds, sff=s_ff, dt=dt, tff=t_ff)
    prepped = prepare_params(params)          # one-time weight transposes

    spec_in = jax.random.normal(k_spec, (B, T, F + 1, K), jnp.float32)
    temp_in = jax.random.normal(k_temp, (B, T, 1, D), jnp.float32)

    fwd = jax.jit(functools.partial(spec_tnt_forward,
                                    spectral_nheads=s_heads,
                                    temporal_nheads=t_heads))
    spec_out, temp_out = fwd(prepped, spec_in, temp_in)
    spec_out = jax.block_until_ready(spec_out)
    temp_out = jax.block_until_ready(temp_out)

    assert spec_out.shape == (B, T, F + 1, K)
    assert temp_out.shape == (B, T, 1, D)

    # sanity check against the pure-JAX reference
    ref_spec, ref_temp = ref_forward(
        params, spec_in, temp_in,
        spectral_nheads=s_heads, temporal_nheads=t_heads)
    assert jnp.allclose(spec_out, ref_spec, atol=2e-2, rtol=2e-2), \
        float(jnp.max(jnp.abs(spec_out - ref_spec)))
    assert jnp.allclose(temp_out, ref_temp, atol=2e-2, rtol=2e-2), \
        float(jnp.max(jnp.abs(temp_out - ref_temp)))

    print("KERNEL_OK")
</pallas_src>

<mosaic_0001>
module attributes {stable_mosaic.version = 11 : i64} {
  func.func @_fused_branch_kernel(%arg0: i32, %arg1: memref<32x9xf32, #tpu.memory_space<vmem>>, %arg2: memref<9x32xf32, #tpu.memory_space<vmem>>, %arg3: memref<1x32xf32, #tpu.memory_space<vmem>>, %arg4: memref<1x32xf32, #tpu.memory_space<vmem>>, %arg5: memref<1x32xf32, #tpu.memory_space<vmem>>, %arg6: memref<32x32xf32, #tpu.memory_space<vmem>>, %arg7: memref<1x32xf32, #tpu.memory_space<vmem>>, %arg8: memref<32x32xf32, #tpu.memory_space<vmem>>, %arg9: memref<1x32xf32, #tpu.memory_space<vmem>>, %arg10: memref<32x32xf32, #tpu.memory_space<vmem>>, %arg11: memref<1x32xf32, #tpu.memory_space<vmem>>, %arg12: memref<32x32xf32, #tpu.memory_space<vmem>>, %arg13: memref<1x32xf32, #tpu.memory_space<vmem>>, %arg14: memref<1x32xf32, #tpu.memory_space<vmem>>, %arg15: memref<1x32xf32, #tpu.memory_space<vmem>>, %arg16: memref<32x64xf32, #tpu.memory_space<vmem>>, %arg17: memref<1x64xf32, #tpu.memory_space<vmem>>, %arg18: memref<64x32xf32, #tpu.memory_space<vmem>>, %arg19: memref<1x32xf32, #tpu.memory_space<vmem>>, %arg20: memref<32x9xf32, #tpu.memory_space<vmem>>, %arg21: memref<1x9xf32, #tpu.memory_space<vmem>>, %arg22: memref<32x9xf32, #tpu.memory_space<vmem>>) attributes {dimension_semantics = [#tpu.dimension_semantics<parallel>], iteration_bounds = array<i64: 1>, scalar_prefetch = 0 : i64, scratch_operands = 0 : i64, tpu.core_type = #tpu.core_type<tc>, window_params = [{transform_indices = @transform_0, window_bounds = array<i64: 32, 9>}, {pipeline_mode = #tpu.pipeline_mode<synchronous>, transform_indices = @transform_1, window_bounds = array<i64: 9, 32>}, {pipeline_mode = #tpu.pipeline_mode<synchronous>, transform_indices = @transform_2, window_bounds = array<i64: 1, 32>}, {pipeline_mode = #tpu.pipeline_mode<synchronous>, transform_indices = @transform_3, window_bounds = array<i64: 1, 32>}, {pipeline_mode = #tpu.pipeline_mode<synchronous>, transform_indices = @transform_4, window_bounds = array<i64: 1, 32>}, {pipeline_mode = #tpu.pipeline_mode<synchronous>, transform_indices = @transform_5, window_bounds = array<i64: 32, 32>}, {pipeline_mode = #tpu.pipeline_mode<synchronous>, transform_indices = @transform_6, window_bounds = array<i64: 1, 32>}, {pipeline_mode = #tpu.pipeline_mode<synchronous>, transform_indices = @transform_7, window_bounds = array<i64: 32, 32>}, {pipeline_mode = #tpu.pipeline_mode<synchronous>, transform_indices = @transform_8, window_bounds = array<i64: 1, 32>}, {pipeline_mode = #tpu.pipeline_mode<synchronous>, transform_indices = @transform_9, window_bounds = array<i64: 32, 32>}, {pipeline_mode = #tpu.pipeline_mode<synchronous>, transform_indices = @transform_10, window_bounds = array<i64: 1, 32>}, {pipeline_mode = #tpu.pipeline_mode<synchronous>, transform_indices = @transform_11, window_bounds = array<i64: 32, 32>}, {pipeline_mode = #tpu.pipeline_mode<synchronous>, transform_indices = @transform_12, window_bounds = array<i64: 1, 32>}, {pipeline_mode = #tpu.pipeline_mode<synchronous>, transform_indices = @transform_13, window_bounds = array<i64: 1, 32>}, {pipeline_mode = #tpu.pipeline_mode<synchronous>, transform_indices = @transform_14, window_bounds = array<i64: 1, 32>}, {pipeline_mode = #tpu.pipeline_mode<synchronous>, transform_indices = @transform_15, window_bounds = array<i64: 32, 64>}, {pipeline_mode = #tpu.pipeline_mode<synchronous>, transform_indices = @transform_16, window_bounds = array<i64: 1, 64>}, {pipeline_mode = #tpu.pipeline_mode<synchronous>, transform_indices = @transform_17, window_bounds = array<i64: 64, 32>}, {pipeline_mode = #tpu.pipeline_mode<synchronous>, transform_indices = @transform_18, window_bounds = array<i64: 1, 32>}, {pipeline_mode = #tpu.pipeline_mode<synchronous>, transform_indices = @transform_19, window_bounds = array<i64: 32, 9>}, {pipeline_mode = #tpu.pipeline_mode<synchronous>, transform_indices = @transform_20, window_bounds = array<i64: 1, 9>}, {transform_indices = @transform_21, window_bounds = array<i64: 32, 9>}]} {
    %c0 = arith.constant 0 : index
    %c0_0 = arith.constant 0 : index
    %0 = vector.load %arg1[%c0, %c0_0] : memref<32x9xf32, #tpu.memory_space<vmem>>, vector<32x9xf32>
    %c0_1 = arith.constant 0 : index
    %c0_2 = arith.constant 0 : index
    %1 = vector.load %arg2[%c0_1, %c0_2] : memref<9x32xf32, #tpu.memory_space<vmem>>, vector<9x32xf32>
    %cst = arith.constant dense<0.000000e+00> : vector<32x32xf32>
    %2 = tpu.matmul %0, %1, %cst {dimension_numbers = #tpu.dot_dimension_numbers<[1], [0], [0], [1], [0, 0, 1, 1], [], []>} : vector<32x9xf32>, vector<9x32xf32>, vector<32x32xf32> -> vector<32x32xf32>
    %c0_3 = arith.constant 0 : index
    %c0_4 = arith.constant 0 : index
    %3 = vector.load %arg3[%c0_3, %c0_4] : memref<1x32xf32, #tpu.memory_space<vmem>>, vector<1x32xf32>
    %4 = vector.broadcast %3 : vector<1x32xf32> to vector<32x32xf32>
    %5 = arith.addf %2, %4 : vector<32x32xf32>
    %6 = tpu.iota {dimensions = array<i32: 0>} : vector<32x32xi32>
    %7 = arith.sitofp %6 : vector<32x32xi32> to vector<32x32xf32>
    %8 = tpu.iota {dimensions = array<i32: 1>} : vector<32x32xi32>
    %9 = arith.sitofp %8 : vector<32x32xi32> to vector<32x32xf32>
    %cst_5 = arith.constant 5.000000e-01 : f32
    %10 = vector.broadcast %cst_5 : f32 to vector<32x32xf32>
    %11 = arith.addf %7, %10 : vector<32x32xf32>
    %cst_6 = arith.constant 2.500000e-01 : f32
    %12 = vector.broadcast %cst_6 : f32 to vector<32x32xf32>
    %13 = arith.mulf %11, %12 : vector<32x32xf32>
    %14 = math.floor %13 : vector<32x32xf32>
    %cst_7 = arith.constant 5.000000e-01 : f32
    %15 = vector.broadcast %cst_7 : f32 to vector<32x32xf32>
    %16 = arith.addf %9, %15 : vector<32x32xf32>
    %cst_8 = arith.constant 2.500000e-01 : f32
    %17 = vector.broadcast %cst_8 : f32 to vector<32x32xf32>
    %18 = arith.mulf %16, %17 : vector<32x32xf32>
    %19 = math.floor %18 : vector<32x32xf32>
    %20 = arith.cmpf oeq, %14, %19 : vector<32x32xf32>
    %cst_9 = arith.constant 0.000000e+00 : f32
    %cst_10 = arith.constant -1.000000e+30 : f32
    %21 = vector.broadcast %cst_9 : f32 to vector<32x32xf32>
    %22 = vector.broadcast %cst_10 : f32 to vector<32x32xf32>
    %23 = arith.select %20, %21, %22 : vector<32x32xi1>, vector<32x32xf32>
    %c0_11 = arith.constant 0 : index
    %c0_12 = arith.constant 0 : index
    %24 = vector.load %arg4[%c0_11, %c0_12] : memref<1x32xf32, #tpu.memory_space<vmem>>, vector<1x32xf32>
    %c0_13 = arith.constant 0 : index
    %c0_14 = arith.constant 0 : index
    %25 = vector.load %arg5[%c0_13, %c0_14] : memref<1x32xf32, #tpu.memory_space<vmem>>, vector<1x32xf32>
    %cst_15 = arith.constant dense<0.000000e+00> : vector<32xf32>
    %26 = vector.multi_reduction <add>, %5, %cst_15 [1] : vector<32x32xf32> to vector<32xf32>
    %27 = vector.shape_cast %26 : vector<32xf32> to vector<32x1xf32>
    %cst_16 = arith.constant 3.200000e+01 : f32
    %28 = vector.broadcast %cst_16 : f32 to vector<32x1xf32>
    %29 = arith.divf %27, %28 : vector<32x1xf32>
    %30 = vector.broadcast %29 : vector<32x1xf32> to vector<32x32xf32>
    %31 = arith.subf %5, %30 : vector<32x32xf32>
    %32 = arith.mulf %31, %31 : vector<32x32xf32>
    %cst_17 = arith.constant dense<0.000000e+00> : vector<32xf32>
    %33 = vector.multi_reduction <add>, %32, %cst_17 [1] : vector<32x32xf32> to vector<32xf32>
    %34 = vector.shape_cast %33 : vector<32xf32> to vector<32x1xf32>
    %cst_18 = arith.constant 3.200000e+01 : f32
    %35 = vector.broadcast %cst_18 : f32 to vector<32x1xf32>
    %36 = arith.divf %34, %35 : vector<32x1xf32>
    %cst_19 = arith.constant 9.99999974E-6 : f32
    %37 = vector.broadcast %cst_19 : f32 to vector<32x1xf32>
    %38 = arith.addf %36, %37 : vector<32x1xf32>
    %39 = math.rsqrt %38 : vector<32x1xf32>
    %40 = vector.broadcast %39 : vector<32x1xf32> to vector<32x32xf32>
    %41 = arith.mulf %31, %40 : vector<32x32xf32>
    %42 = vector.broadcast %24 : vector<1x32xf32> to vector<32x32xf32>
    %43 = arith.mulf %41, %42 : vector<32x32xf32>
    %44 = vector.broadcast %25 : vector<1x32xf32> to vector<32x32xf32>
    %45 = arith.addf %43, %44 : vector<32x32xf32>
    %c0_20 = arith.constant 0 : index
    %c0_21 = arith.constant 0 : index
    %46 = vector.load %arg6[%c0_20, %c0_21] : memref<32x32xf32, #tpu.memory_space<vmem>>, vector<32x32xf32>
    %cst_22 = arith.constant dense<0.000000e+00> : vector<32x32xf32>
    %47 = tpu.matmul %45, %46, %cst_22 {dimension_numbers = #tpu.dot_dimension_numbers<[1], [0], [0], [1], [0, 0, 1, 1], [], []>} : vector<32x32xf32>, vector<32x32xf32>, vector<32x32xf32> -> vector<32x32xf32>
    %c0_23 = arith.constant 0 : index
    %c0_24 = arith.constant 0 : index
    %48 = vector.load %arg7[%c0_23, %c0_24] : memref<1x32xf32, #tpu.memory_space<vmem>>, vector<1x32xf32>
    %49 = vector.broadcast %48 : vector<1x32xf32> to vector<32x32xf32>
    %50 = arith.addf %47, %49 : vector<32x32xf32>
    %cst_25 = arith.constant 0.353553385 : f32
    %51 = vector.broadcast %cst_25 : f32 to vector<32x32xf32>
    %52 = arith.mulf %50, %51 : vector<32x32xf32>
    %c0_26 = arith.constant 0 : index
    %c0_27 = arith.constant 0 : index
    %53 = vector.load %arg8[%c0_26, %c0_27] : memref<32x32xf32, #tpu.memory_space<vmem>>, vector<32x32xf32>
    %cst_28 = arith.constant dense<0.000000e+00> : vector<32x32xf32>
    %54 = tpu.matmul %45, %53, %cst_28 {dimension_numbers = #tpu.dot_dimension_numbers<[1], [0], [0], [1], [0, 0, 1, 1], [], []>} : vector<32x32xf32>, vector<32x32xf32>, vector<32x32xf32> -> vector<32x32xf32>
    %c0_29 = arith.constant 0 : index
    %c0_30 = arith.constant 0 : index
    %55 = vector.load %arg9[%c0_29, %c0_30] : memref<1x32xf32, #tpu.memory_space<vmem>>, vector<1x32xf32>
    %56 = vector.broadcast %55 : vector<1x32xf32> to vector<32x32xf32>
    %57 = arith.addf %54, %56 : vector<32x32xf32>
    %c0_31 = arith.constant 0 : index
    %c0_32 = arith.constant 0 : index
    %58 = vector.load %arg10[%c0_31, %c0_32] : memref<32x32xf32, #tpu.memory_space<vmem>>, vector<32x32xf32>
    %cst_33 = arith.constant dense<0.000000e+00> : vector<32x32xf32>
    %59 = tpu.matmul %45, %58, %cst_33 {dimension_numbers = #tpu.dot_dimension_numbers<[1], [0], [0], [1], [0, 0, 1, 1], [], []>} : vector<32x32xf32>, vector<32x32xf32>, vector<32x32xf32> -> vector<32x32xf32>
    %c0_34 = arith.constant 0 : index
    %c0_35 = arith.constant 0 : index
    %60 = vector.load %arg11[%c0_34, %c0_35] : memref<1x32xf32, #tpu.memory_space<vmem>>, vector<1x32xf32>
    %61 = vector.broadcast %60 : vector<1x32xf32> to vector<32x32xf32>
    %62 = arith.addf %59, %61 : vector<32x32xf32>
    %cst_36 = arith.constant 0.000000e+00 : f32
    %63 = vector.broadcast %cst_36 : f32 to vector<32x32xf32>
    %64 = vector.extract_strided_slice %52 {offsets = [0, 0], sizes = [32, 8], strides = [1, 1]} : vector<32x32xf32> to vector<32x8xf32>
    %65 = vector.extract_strided_slice %57 {offsets = [0, 0], sizes = [32, 8], strides = [1, 1]} : vector<32x32xf32> to vector<32x8xf32>
    %66 = vector.extract_strided_slice %62 {offsets = [0, 0], sizes = [32, 8], strides = [1, 1]} : vector<32x32xf32> to vector<32x8xf32>
    %cst_37 = arith.constant dense<0.000000e+00> : vector<32x32xf32>
    %67 = tpu.matmul %64, %65, %cst_37 {dimension_numbers = #tpu.dot_dimension_numbers<[1], [1], [0], [0], [0, 0, 1, 0], [], []>} : vector<32x8xf32>, vector<32x8xf32>, vector<32x32xf32> -> vector<32x32xf32>
    %68 = arith.addf %67, %23 : vector<32x32xf32>
    %cst_38 = arith.constant dense<0xFF800000> : vector<32xf32>
    %69 = vector.multi_reduction <maximumf>, %68, %cst_38 [1] : vector<32x32xf32> to vector<32xf32>
    %70 = vector.shape_cast %69 : vector<32xf32> to vector<32x1xf32>
    %71 = vector.broadcast %70 : vector<32x1xf32> to vector<32x32xf32>
    %72 = arith.subf %68, %71 : vector<32x32xf32>
    %73 = math.exp %72 : vector<32x32xf32>
    %cst_39 = arith.constant dense<0.000000e+00> : vector<32xf32>
    %74 = vector.multi_reduction <add>, %73, %cst_39 [1] : vector<32x32xf32> to vector<32xf32>
    %75 = vector.shape_cast %74 : vector<32xf32> to vector<32x1xf32>
    %76 = tpu.reciprocal %75 {approx = true} : vector<32x1xf32> -> vector<32x1xf32>
    %77 = vector.broadcast %76 : vector<32x1xf32> to vector<32x32xf32>
    %78 = arith.mulf %73, %77 : vector<32x32xf32>
    %cst_40 = arith.constant dense<0.000000e+00> : vector<32x8xf32>
    %79 = tpu.matmul %78, %66, %cst_40 {dimension_numbers = #tpu.dot_dimension_numbers<[1], [0], [0], [1], [0, 0, 1, 1], [], []>} : vector<32x32xf32>, vector<32x8xf32>, vector<32x8xf32> -> vector<32x8xf32>
    %c0_41 = arith.constant 0 : index
    %c0_42 = arith.constant 0 : index
    %80 = vector.load %arg12[%c0_41, %c0_42] : memref<32x32xf32, #tpu.memory_space<vmem>>, vector<8x32xf32>
    %cst_43 = arith.constant dense<0.000000e+00> : vector<32x32xf32>
    %81 = tpu.matmul %79, %80, %cst_43 {dimension_numbers = #tpu.dot_dimension_numbers<[1], [0], [0], [1], [0, 0, 1, 1], [], []>} : vector<32x8xf32>, vector<8x32xf32>, vector<32x32xf32> -> vector<32x32xf32>
    %82 = arith.addf %63, %81 : vector<32x32xf32>
    %83 = vector.extract_strided_slice %52 {offsets = [0, 8], sizes = [32, 8], strides = [1, 1]} : vector<32x32xf32> to vector<32x8xf32>
    %84 = vector.extract_strided_slice %57 {offsets = [0, 8], sizes = [32, 8], strides = [1, 1]} : vector<32x32xf32> to vector<32x8xf32>
    %85 = vector.extract_strided_slice %62 {offsets = [0, 8], sizes = [32, 8], strides = [1, 1]} : vector<32x32xf32> to vector<32x8xf32>
    %cst_44 = arith.constant dense<0.000000e+00> : vector<32x32xf32>
    %86 = tpu.matmul %83, %84, %cst_44 {dimension_numbers = #tpu.dot_dimension_numbers<[1], [1], [0], [0], [0, 0, 1, 0], [], []>} : vector<32x8xf32>, vector<32x8xf32>, vector<32x32xf32> -> vector<32x32xf32>
    %87 = arith.addf %86, %23 : vector<32x32xf32>
    %cst_45 = arith.constant dense<0xFF800000> : vector<32xf32>
    %88 = vector.multi_reduction <maximumf>, %87, %cst_45 [1] : vector<32x32xf32> to vector<32xf32>
    %89 = vector.shape_cast %88 : vector<32xf32> to vector<32x1xf32>
    %90 = vector.broadcast %89 : vector<32x1xf32> to vector<32x32xf32>
    %91 = arith.subf %87, %90 : vector<32x32xf32>
    %92 = math.exp %91 : vector<32x32xf32>
    %cst_46 = arith.constant dense<0.000000e+00> : vector<32xf32>
    %93 = vector.multi_reduction <add>, %92, %cst_46 [1] : vector<32x32xf32> to vector<32xf32>
    %94 = vector.shape_cast %93 : vector<32xf32> to vector<32x1xf32>
    %95 = tpu.reciprocal %94 {approx = true} : vector<32x1xf32> -> vector<32x1xf32>
    %96 = vector.broadcast %95 : vector<32x1xf32> to vector<32x32xf32>
    %97 = arith.mulf %92, %96 : vector<32x32xf32>
    %cst_47 = arith.constant dense<0.000000e+00> : vector<32x8xf32>
    %98 = tpu.matmul %97, %85, %cst_47 {dimension_numbers = #tpu.dot_dimension_numbers<[1], [0], [0], [1], [0, 0, 1, 1], [], []>} : vector<32x32xf32>, vector<32x8xf32>, vector<32x8xf32> -> vector<32x8xf32>
    %c8 = arith.constant 8 : index
    %c0_48 = arith.constant 0 : index
    %99 = vector.load %arg12[%c8, %c0_48] : memref<32x32xf32, #tpu.memory_space<vmem>>, vector<8x32xf32>
    %cst_49 = arith.constant dense<0.000000e+00> : vector<32x32xf32>
    %100 = tpu.matmul %98, %99, %cst_49 {dimension_numbers = #tpu.dot_dimension_numbers<[1], [0], [0], [1], [0, 0, 1, 1], [], []>} : vector<32x8xf32>, vector<8x32xf32>, vector<32x32xf32> -> vector<32x32xf32>
    %101 = arith.addf %82, %100 : vector<32x32xf32>
    %102 = vector.extract_strided_slice %52 {offsets = [0, 16], sizes = [32, 8], strides = [1, 1]} : vector<32x32xf32> to vector<32x8xf32>
    %103 = vector.extract_strided_slice %57 {offsets = [0, 16], sizes = [32, 8], strides = [1, 1]} : vector<32x32xf32> to vector<32x8xf32>
    %104 = vector.extract_strided_slice %62 {offsets = [0, 16], sizes = [32, 8], strides = [1, 1]} : vector<32x32xf32> to vector<32x8xf32>
    %cst_50 = arith.constant dense<0.000000e+00> : vector<32x32xf32>
    %105 = tpu.matmul %102, %103, %cst_50 {dimension_numbers = #tpu.dot_dimension_numbers<[1], [1], [0], [0], [0, 0, 1, 0], [], []>} : vector<32x8xf32>, vector<32x8xf32>, vector<32x32xf32> -> vector<32x32xf32>
    %106 = arith.addf %105, %23 : vector<32x32xf32>
    %cst_51 = arith.constant dense<0xFF800000> : vector<32xf32>
    %107 = vector.multi_reduction <maximumf>, %106, %cst_51 [1] : vector<32x32xf32> to vector<32xf32>
    %108 = vector.shape_cast %107 : vector<32xf32> to vector<32x1xf32>
    %109 = vector.broadcast %108 : vector<32x1xf32> to vector<32x32xf32>
    %110 = arith.subf %106, %109 : vector<32x32xf32>
    %111 = math.exp %110 : vector<32x32xf32>
    %cst_52 = arith.constant dense<0.000000e+00> : vector<32xf32>
    %112 = vector.multi_reduction <add>, %111, %cst_52 [1] : vector<32x32xf32> to vector<32xf32>
    %113 = vector.shape_cast %112 : vector<32xf32> to vector<32x1xf32>
    %114 = tpu.reciprocal %113 {approx = true} : vector<32x1xf32> -> vector<32x1xf32>
    %115 = vector.broadcast %114 : vector<32x1xf32> to vector<32x32xf32>
    %116 = arith.mulf %111, %115 : vector<32x32xf32>
    %cst_53 = arith.constant dense<0.000000e+00> : vector<32x8xf32>
    %117 = tpu.matmul %116, %104, %cst_53 {dimension_numbers = #tpu.dot_dimension_numbers<[1], [0], [0], [1], [0, 0, 1, 1], [], []>} : vector<32x32xf32>, vector<32x8xf32>, vector<32x8xf32> -> vector<32x8xf32>
    %c16 = arith.constant 16 : index
    %c0_54 = arith.constant 0 : index
    %118 = vector.load %arg12[%c16, %c0_54] : memref<32x32xf32, #tpu.memory_space<vmem>>, vector<8x32xf32>
    %cst_55 = arith.constant dense<0.000000e+00> : vector<32x32xf32>
    %119 = tpu.matmul %117, %118, %cst_55 {dimension_numbers = #tpu.dot_dimension_numbers<[1], [0], [0], [1], [0, 0, 1, 1], [], []>} : vector<32x8xf32>, vector<8x32xf32>, vector<32x32xf32> -> vector<32x32xf32>
    %120 = arith.addf %101, %119 : vector<32x32xf32>
    %121 = vector.extract_strided_slice %52 {offsets = [0, 24], sizes = [32, 8], strides = [1, 1]} : vector<32x32xf32> to vector<32x8xf32>
    %122 = vector.extract_strided_slice %57 {offsets = [0, 24], sizes = [32, 8], strides = [1, 1]} : vector<32x32xf32> to vector<32x8xf32>
    %123 = vector.extract_strided_slice %62 {offsets = [0, 24], sizes = [32, 8], strides = [1, 1]} : vector<32x32xf32> to vector<32x8xf32>
    %cst_56 = arith.constant dense<0.000000e+00> : vector<32x32xf32>
    %124 = tpu.matmul %121, %122, %cst_56 {dimension_numbers = #tpu.dot_dimension_numbers<[1], [1], [0], [0], [0, 0, 1, 0], [], []>} : vector<32x8xf32>, vector<32x8xf32>, vector<32x32xf32> -> vector<32x32xf32>
    %125 = arith.addf %124, %23 : vector<32x32xf32>
    %cst_57 = arith.constant dense<0xFF800000> : vector<32xf32>
    %126 = vector.multi_reduction <maximumf>, %125, %cst_57 [1] : vector<32x32xf32> to vector<32xf32>
    %127 = vector.shape_cast %126 : vector<32xf32> to vector<32x1xf32>
    %128 = vector.broadcast %127 : vector<32x1xf32> to vector<32x32xf32>
    %129 = arith.subf %125, %128 : vector<32x32xf32>
    %130 = math.exp %129 : vector<32x32xf32>
    %cst_58 = arith.constant dense<0.000000e+00> : vector<32xf32>
    %131 = vector.multi_reduction <add>, %130, %cst_58 [1] : vector<32x32xf32> to vector<32xf32>
    %132 = vector.shape_cast %131 : vector<32xf32> to vector<32x1xf32>
    %133 = tpu.reciprocal %132 {approx = true} : vector<32x1xf32> -> vector<32x1xf32>
    %134 = vector.broadcast %133 : vector<32x1xf32> to vector<32x32xf32>
    %135 = arith.mulf %130, %134 : vector<32x32xf32>
    %cst_59 = arith.constant dense<0.000000e+00> : vector<32x8xf32>
    %136 = tpu.matmul %135, %123, %cst_59 {dimension_numbers = #tpu.dot_dimension_numbers<[1], [0], [0], [1], [0, 0, 1, 1], [], []>} : vector<32x32xf32>, vector<32x8xf32>, vector<32x8xf32> -> vector<32x8xf32>
    %c24 = arith.constant 24 : index
    %c0_60 = arith.constant 0 : index
    %137 = vector.load %arg12[%c24, %c0_60] : memref<32x32xf32, #tpu.memory_space<vmem>>, vector<8x32xf32>
    %cst_61 = arith.constant dense<0.000000e+00> : vector<32x32xf32>
    %138 = tpu.matmul %136, %137, %cst_61 {dimension_numbers = #tpu.dot_dimension_numbers<[1], [0], [0], [1], [0, 0, 1, 1], [], []>} : vector<32x8xf32>, vector<8x32xf32>, vector<32x32xf32> -> vector<32x32xf32>
    %139 = arith.addf %120, %138 : vector<32x32xf32>
    %140 = arith.addf %5, %139 : vector<32x32xf32>
    %c0_62 = arith.constant 0 : index
    %c0_63 = arith.constant 0 : index
    %141 = vector.load %arg13[%c0_62, %c0_63] : memref<1x32xf32, #tpu.memory_space<vmem>>, vector<1x32xf32>
    %142 = vector.broadcast %141 : vector<1x32xf32> to vector<32x32xf32>
    %143 = arith.addf %140, %142 : vector<32x32xf32>
    %c0_64 = arith.constant 0 : index
    %c0_65 = arith.constant 0 : index
    %144 = vector.load %arg14[%c0_64, %c0_65] : memref<1x32xf32, #tpu.memory_space<vmem>>, vector<1x32xf32>
    %c0_66 = arith.constant 0 : index
    %c0_67 = arith.constant 0 : index
    %145 = vector.load %arg15[%c0_66, %c0_67] : memref<1x32xf32, #tpu.memory_space<vmem>>, vector<1x32xf32>
    %cst_68 = arith.constant dense<0.000000e+00> : vector<32xf32>
    %146 = vector.multi_reduction <add>, %143, %cst_68 [1] : vector<32x32xf32> to vector<32xf32>
    %147 = vector.shape_cast %146 : vector<32xf32> to vector<32x1xf32>
    %cst_69 = arith.constant 3.200000e+01 : f32
    %148 = vector.broadcast %cst_69 : f32 to vector<32x1xf32>
    %149 = arith.divf %147, %148 : vector<32x1xf32>
    %150 = vector.broadcast %149 : vector<32x1xf32> to vector<32x32xf32>
    %151 = arith.subf %143, %150 : vector<32x32xf32>
    %152 = arith.mulf %151, %151 : vector<32x32xf32>
    %cst_70 = arith.constant dense<0.000000e+00> : vector<32xf32>
    %153 = vector.multi_reduction <add>, %152, %cst_70 [1] : vector<32x32xf32> to vector<32xf32>
    %154 = vector.shape_cast %153 : vector<32xf32> to vector<32x1xf32>
    %cst_71 = arith.constant 3.200000e+01 : f32
    %155 = vector.broadcast %cst_71 : f32 to vector<32x1xf32>
    %156 = arith.divf %154, %155 : vector<32x1xf32>
    %cst_72 = arith.constant 9.99999974E-6 : f32
    %157 = vector.broadcast %cst_72 : f32 to vector<32x1xf32>
    %158 = arith.addf %156, %157 : vector<32x1xf32>
    %159 = math.rsqrt %158 : vector<32x1xf32>
    %160 = vector.broadcast %159 : vector<32x1xf32> to vector<32x32xf32>
    %161 = arith.mulf %151, %160 : vector<32x32xf32>
    %162 = vector.broadcast %144 : vector<1x32xf32> to vector<32x32xf32>
    %163 = arith.mulf %161, %162 : vector<32x32xf32>
    %164 = vector.broadcast %145 : vector<1x32xf32> to vector<32x32xf32>
    %165 = arith.addf %163, %164 : vector<32x32xf32>
    %c0_73 = arith.constant 0 : index
    %c0_74 = arith.constant 0 : index
    %166 = vector.load %arg16[%c0_73, %c0_74] : memref<32x64xf32, #tpu.memory_space<vmem>>, vector<32x64xf32>
    %cst_75 = arith.constant dense<0.000000e+00> : vector<32x64xf32>
    %167 = tpu.matmul %165, %166, %cst_75 {dimension_numbers = #tpu.dot_dimension_numbers<[1], [0], [0], [1], [0, 0, 1, 1], [], []>} : vector<32x32xf32>, vector<32x64xf32>, vector<32x64xf32> -> vector<32x64xf32>
    %c0_76 = arith.constant 0 : index
    %c0_77 = arith.constant 0 : index
    %168 = vector.load %arg17[%c0_76, %c0_77] : memref<1x64xf32, #tpu.memory_space<vmem>>, vector<1x64xf32>
    %169 = vector.broadcast %168 : vector<1x64xf32> to vector<32x64xf32>
    %170 = arith.addf %167, %169 : vector<32x64xf32>
    %cst_78 = arith.constant 5.000000e-01 : f32
    %171 = vector.broadcast %cst_78 : f32 to vector<32x64xf32>
    %172 = arith.mulf %171, %170 : vector<32x64xf32>
    %cst_79 = arith.constant 0.707106769 : f32
    %173 = vector.broadcast %cst_79 : f32 to vector<32x64xf32>
    %174 = arith.mulf %170, %173 : vector<32x64xf32>
    %175 = math.erf %174 : vector<32x64xf32>
    %cst_80 = arith.constant 1.000000e+00 : f32
    %176 = vector.broadcast %cst_80 : f32 to vector<32x64xf32>
    %177 = arith.addf %176, %175 : vector<32x64xf32>
    %178 = arith.mulf %172, %177 : vector<32x64xf32>
    %c0_81 = arith.constant 0 : index
    %c0_82 = arith.constant 0 : index
    %179 = vector.load %arg18[%c0_81, %c0_82] : memref<64x32xf32, #tpu.memory_space<vmem>>, vector<64x32xf32>
    %cst_83 = arith.constant dense<0.000000e+00> : vector<32x32xf32>
    %180 = tpu.matmul %178, %179, %cst_83 {dimension_numbers = #tpu.dot_dimension_numbers<[1], [0], [0], [1], [0, 0, 1, 1], [], []>} : vector<32x64xf32>, vector<64x32xf32>, vector<32x32xf32> -> vector<32x32xf32>
    %c0_84 = arith.constant 0 : index
    %c0_85 = arith.constant 0 : index
    %181 = vector.load %arg19[%c0_84, %c0_85] : memref<1x32xf32, #tpu.memory_space<vmem>>, vector<1x32xf32>
    %182 = vector.broadcast %181 : vector<1x32xf32> to vector<32x32xf32>
    %183 = arith.addf %180, %182 : vector<32x32xf32>
    %184 = arith.addf %143, %183 : vector<32x32xf32>
    %c0_86 = arith.constant 0 : index
    %c0_87 = arith.constant 0 : index
    %185 = vector.load %arg20[%c0_86, %c0_87] : memref<32x9xf32, #tpu.memory_space<vmem>>, vector<32x9xf32>
    %cst_88 = arith.constant dense<0.000000e+00> : vector<32x9xf32>
    %186 = tpu.matmul %184, %185, %cst_88 {dimension_numbers = #tpu.dot_dimension_numbers<[1], [0], [0], [1], [0, 0, 1, 1], [], []>} : vector<32x32xf32>, vector<32x9xf32>, vector<32x9xf32> -> vector<32x9xf32>
    %c0_89 = arith.constant 0 : index
    %c0_90 = arith.constant 0 : index
    %187 = vector.load %arg21[%c0_89, %c0_90] : memref<1x9xf32, #tpu.memory_space<vmem>>, vector<1x9xf32>
    %188 = vector.broadcast %187 : vector<1x9xf32> to vector<32x9xf32>
    %189 = arith.addf %186, %188 : vector<32x9xf32>
    %c0_91 = arith.constant 0 : index
    %c0_92 = arith.constant 0 : index
    %190 = vector.load %arg22[%c0_91, %c0_92] : memref<32x9xf32, #tpu.memory_space<vmem>>, vector<32x9xf32>
    tpu.vector_store %arg22[%c0_91, %c0_92], %189 {strides = array<i32>} : memref<32x9xf32, #tpu.memory_space<vmem>>, vector<32x9xf32>,
    return
  }
  func.func @transform_0(%arg0: i32) -> (i32, i32) {
    %c0_i32 = arith.constant 0 : i32
    %c0_i32_0 = arith.constant 0 : i32
    return %arg0, %c0_i32 : i32, i32
  }
  func.func @transform_1(%arg0: i32) -> (i32, i32) {
    %c0_i32 = arith.constant 0 : i32
    %c0_i32_0 = arith.constant 0 : i32
    %c0_i32_1 = arith.constant 0 : i32
    return %c0_i32, %c0_i32_0 : i32, i32
  }
  func.func @transform_2(%arg0: i32) -> (i32, i32) {
    %c0_i32 = arith.constant 0 : i32
    %c0_i32_0 = arith.constant 0 : i32
    %c0_i32_1 = arith.constant 0 : i32
    return %c0_i32, %c0_i32_0 : i32, i32
  }
  func.func @transform_3(%arg0: i32) -> (i32, i32) {
    %c0_i32 = arith.constant 0 : i32
    %c0_i32_0 = arith.constant 0 : i32
    %c0_i32_1 = arith.constant 0 : i32
    return %c0_i32, %c0_i32_0 : i32, i32
  }
  func.func @transform_4(%arg0: i32) -> (i32, i32) {
    %c0_i32 = arith.constant 0 : i32
    %c0_i32_0 = arith.constant 0 : i32
    %c0_i32_1 = arith.constant 0 : i32
    return %c0_i32, %c0_i32_0 : i32, i32
  }
  func.func @transform_5(%arg0: i32) -> (i32, i32) {
    %c0_i32 = arith.constant 0 : i32
    %c0_i32_0 = arith.constant 0 : i32
    %c0_i32_1 = arith.constant 0 : i32
    return %c0_i32, %c0_i32_0 : i32, i32
  }
  func.func @transform_6(%arg0: i32) -> (i32, i32) {
    %c0_i32 = arith.constant 0 : i32
    %c0_i32_0 = arith.constant 0 : i32
    %c0_i32_1 = arith.constant 0 : i32
    return %c0_i32, %c0_i32_0 : i32, i32
  }
  func.func @transform_7(%arg0: i32) -> (i32, i32) {
    %c0_i32 = arith.constant 0 : i32
    %c0_i32_0 = arith.constant 0 : i32
    %c0_i32_1 = arith.constant 0 : i32
    return %c0_i32, %c0_i32_0 : i32, i32
  }
  func.func @transform_8(%arg0: i32) -> (i32, i32) {
    %c0_i32 = arith.constant 0 : i32
    %c0_i32_0 = arith.constant 0 : i32
    %c0_i32_1 = arith.constant 0 : i32
    return %c0_i32, %c0_i32_0 : i32, i32
  }
  func.func @transform_9(%arg0: i32) -> (i32, i32) {
    %c0_i32 = arith.constant 0 : i32
    %c0_i32_0 = arith.constant 0 : i32
    %c0_i32_1 = arith.constant 0 : i32
    return %c0_i32, %c0_i32_0 : i32, i32
  }
  func.func @transform_10(%arg0: i32) -> (i32, i32) {
    %c0_i32 = arith.constant 0 : i32
    %c0_i32_0 = arith.constant 0 : i32
    %c0_i32_1 = arith.constant 0 : i32
    return %c0_i32, %c0_i32_0 : i32, i32
  }
  func.func @transform_11(%arg0: i32) -> (i32, i32) {
    %c0_i32 = arith.constant 0 : i32
    %c0_i32_0 = arith.constant 0 : i32
    %c0_i32_1 = arith.constant 0 : i32
    return %c0_i32, %c0_i32_0 : i32, i32
  }
  func.func @transform_12(%arg0: i32) -> (i32, i32) {
    %c0_i32 = arith.constant 0 : i32
    %c0_i32_0 = arith.constant 0 : i32
    %c0_i32_1 = arith.constant 0 : i32
    return %c0_i32, %c0_i32_0 : i32, i32
  }
  func.func @transform_13(%arg0: i32) -> (i32, i32) {
    %c0_i32 = arith.constant 0 : i32
    %c0_i32_0 = arith.constant 0 : i32
    %c0_i32_1 = arith.constant 0 : i32
    return %c0_i32, %c0_i32_0 : i32, i32
  }
  func.func @transform_14(%arg0: i32) -> (i32, i32) {
    %c0_i32 = arith.constant 0 : i32
    %c0_i32_0 = arith.constant 0 : i32
    %c0_i32_1 = arith.constant 0 : i32
    return %c0_i32, %c0_i32_0 : i32, i32
  }
  func.func @transform_15(%arg0: i32) -> (i32, i32) {
    %c0_i32 = arith.constant 0 : i32
    %c0_i32_0 = arith.constant 0 : i32
    %c0_i32_1 = arith.constant 0 : i32
    return %c0_i32, %c0_i32_0 : i32, i32
  }
  func.func @transform_16(%arg0: i32) -> (i32, i32) {
    %c0_i32 = arith.constant 0 : i32
    %c0_i32_0 = arith.constant 0 : i32
    %c0_i32_1 = arith.constant 0 : i32
    return %c0_i32, %c0_i32_0 : i32, i32
  }
  func.func @transform_17(%arg0: i32) -> (i32, i32) {
    %c0_i32 = arith.constant 0 : i32
    %c0_i32_0 = arith.constant 0 : i32
    %c0_i32_1 = arith.constant 0 : i32
    return %c0_i32, %c0_i32_0 : i32, i32
  }
  func.func @transform_18(%arg0: i32) -> (i32, i32) {
    %c0_i32 = arith.constant 0 : i32
    %c0_i32_0 = arith.constant 0 : i32
    %c0_i32_1 = arith.constant 0 : i32
    return %c0_i32, %c0_i32_0 : i32, i32
  }
  func.func @transform_19(%arg0: i32) -> (i32, i32) {
    %c0_i32 = arith.constant 0 : i32
    %c0_i32_0 = arith.constant 0 : i32
    %c0_i32_1 = arith.constant 0 : i32
    return %c0_i32, %c0_i32_0 : i32, i32
  }
  func.func @transform_20(%arg0: i32) -> (i32, i32) {
    %c0_i32 = arith.constant 0 : i32
    %c0_i32_0 = arith.constant 0 : i32
    %c0_i32_1 = arith.constant 0 : i32
    return %c0_i32, %c0_i32_0 : i32, i32
  }
  func.func @transform_21(%arg0: i32) -> (i32, i32) {
    %c0_i32 = arith.constant 0 : i32
    %c0_i32_0 = arith.constant 0 : i32
    return %arg0, %c0_i32 : i32, i32
  }
}

module attributes {stable_mosaic.version = 11 : i64} {
  func.func @_fused_branch_kernel(%arg0: i32, %arg1: memref<64x4xf32, #tpu.memory_space<vmem>>, %arg2: memref<4x32xf32, #tpu.memory_space<vmem>>, %arg3: memref<1x32xf32, #tpu.memory_space<vmem>>, %arg4: memref<1x32xf32, #tpu.memory_space<vmem>>, %arg5: memref<1x32xf32, #tpu.memory_space<vmem>>, %arg6: memref<32x32xf32, #tpu.memory_space<vmem>>, %arg7: memref<1x32xf32, #tpu.memory_space<vmem>>, %arg8: memref<32x32xf32, #tpu.memory_space<vmem>>, %arg9: memref<1x32xf32, #tpu.memory_space<vmem>>, %arg10: memref<32x32xf32, #tpu.memory_space<vmem>>, %arg11: memref<1x32xf32, #tpu.memory_space<vmem>>, %arg12: memref<32x32xf32, #tpu.memory_space<vmem>>, %arg13: memref<1x32xf32, #tpu.memory_space<vmem>>, %arg14: memref<1x32xf32, #tpu.memory_space<vmem>>, %arg15: memref<1x32xf32, #tpu.memory_space<vmem>>, %arg16: memref<32x64xf32, #tpu.memory_space<vmem>>, %arg17: memref<1x64xf32, #tpu.memory_space<vmem>>, %arg18: memref<64x32xf32, #tpu.memory_space<vmem>>, %arg19: memref<1x32xf32, #tpu.memory_space<vmem>>, %arg20: memref<32x4xf32, #tpu.memory_space<vmem>>, %arg21: memref<1x4xf32, #tpu.memory_space<vmem>>, %arg22: memref<64x4xf32, #tpu.memory_space<vmem>>) attributes {dimension_semantics = [#tpu.dimension_semantics<parallel>], iteration_bounds = array<i64: 1>, scalar_prefetch = 0 : i64, scratch_operands = 0 : i64, tpu.core_type = #tpu.core_type<tc>, window_params = [{transform_indices = @transform_0, window_bounds = array<i64: 64, 4>}, {pipeline_mode = #tpu.pipeline_mode<synchronous>, transform_indices = @transform_1, window_bounds = array<i64: 4, 32>}, {pipeline_mode = #tpu.pipeline_mode<synchronous>, transform_indices = @transform_2, window_bounds = array<i64: 1, 32>}, {pipeline_mode = #tpu.pipeline_mode<synchronous>, transform_indices = @transform_3, window_bounds = array<i64: 1, 32>}, {pipeline_mode = #tpu.pipeline_mode<synchronous>, transform_indices = @transform_4, window_bounds = array<i64: 1, 32>}, {pipeline_mode = #tpu.pipeline_mode<synchronous>, transform_indices = @transform_5, window_bounds = array<i64: 32, 32>}, {pipeline_mode = #tpu.pipeline_mode<synchronous>, transform_indices = @transform_6, window_bounds = array<i64: 1, 32>}, {pipeline_mode = #tpu.pipeline_mode<synchronous>, transform_indices = @transform_7, window_bounds = array<i64: 32, 32>}, {pipeline_mode = #tpu.pipeline_mode<synchronous>, transform_indices = @transform_8, window_bounds = array<i64: 1, 32>}, {pipeline_mode = #tpu.pipeline_mode<synchronous>, transform_indices = @transform_9, window_bounds = array<i64: 32, 32>}, {pipeline_mode = #tpu.pipeline_mode<synchronous>, transform_indices = @transform_10, window_bounds = array<i64: 1, 32>}, {pipeline_mode = #tpu.pipeline_mode<synchronous>, transform_indices = @transform_11, window_bounds = array<i64: 32, 32>}, {pipeline_mode = #tpu.pipeline_mode<synchronous>, transform_indices = @transform_12, window_bounds = array<i64: 1, 32>}, {pipeline_mode = #tpu.pipeline_mode<synchronous>, transform_indices = @transform_13, window_bounds = array<i64: 1, 32>}, {pipeline_mode = #tpu.pipeline_mode<synchronous>, transform_indices = @transform_14, window_bounds = array<i64: 1, 32>}, {pipeline_mode = #tpu.pipeline_mode<synchronous>, transform_indices = @transform_15, window_bounds = array<i64: 32, 64>}, {pipeline_mode = #tpu.pipeline_mode<synchronous>, transform_indices = @transform_16, window_bounds = array<i64: 1, 64>}, {pipeline_mode = #tpu.pipeline_mode<synchronous>, transform_indices = @transform_17, window_bounds = array<i64: 64, 32>}, {pipeline_mode = #tpu.pipeline_mode<synchronous>, transform_indices = @transform_18, window_bounds = array<i64: 1, 32>}, {pipeline_mode = #tpu.pipeline_mode<synchronous>, transform_indices = @transform_19, window_bounds = array<i64: 32, 4>}, {pipeline_mode = #tpu.pipeline_mode<synchronous>, transform_indices = @transform_20, window_bounds = array<i64: 1, 4>}, {transform_indices = @transform_21, window_bounds = array<i64: 64, 4>}]} {
    %c0 = arith.constant 0 : index
    %c0_0 = arith.constant 0 : index
    %0 = vector.load %arg1[%c0, %c0_0] : memref<64x4xf32, #tpu.memory_space<vmem>>, vector<64x4xf32>
    %c0_1 = arith.constant 0 : index
    %c0_2 = arith.constant 0 : index
    %1 = vector.load %arg2[%c0_1, %c0_2] : memref<4x32xf32, #tpu.memory_space<vmem>>, vector<4x32xf32>
    %cst = arith.constant dense<0.000000e+00> : vector<64x32xf32>
    %2 = tpu.matmul %0, %1, %cst {dimension_numbers = #tpu.dot_dimension_numbers<[1], [0], [0], [1], [0, 0, 1, 1], [], []>} : vector<64x4xf32>, vector<4x32xf32>, vector<64x32xf32> -> vector<64x32xf32>
    %c0_3 = arith.constant 0 : index
    %c0_4 = arith.constant 0 : index
    %3 = vector.load %arg3[%c0_3, %c0_4] : memref<1x32xf32, #tpu.memory_space<vmem>>, vector<1x32xf32>
    %4 = vector.broadcast %3 : vector<1x32xf32> to vector<64x32xf32>
    %5 = arith.addf %2, %4 : vector<64x32xf32>
    %6 = tpu.iota {dimensions = array<i32: 0>} : vector<64x64xi32>
    %7 = arith.sitofp %6 : vector<64x64xi32> to vector<64x64xf32>
    %8 = tpu.iota {dimensions = array<i32: 1>} : vector<64x64xi32>
    %9 = arith.sitofp %8 : vector<64x64xi32> to vector<64x64xf32>
    %cst_5 = arith.constant 5.000000e-01 : f32
    %10 = vector.broadcast %cst_5 : f32 to vector<64x64xf32>
    %11 = arith.addf %7, %10 : vector<64x64xf32>
    %cst_6 = arith.constant 3.125000e-02 : f32
    %12 = vector.broadcast %cst_6 : f32 to vector<64x64xf32>
    %13 = arith.mulf %11, %12 : vector<64x64xf32>
    %14 = math.floor %13 : vector<64x64xf32>
    %cst_7 = arith.constant 5.000000e-01 : f32
    %15 = vector.broadcast %cst_7 : f32 to vector<64x64xf32>
    %16 = arith.addf %9, %15 : vector<64x64xf32>
    %cst_8 = arith.constant 3.125000e-02 : f32
    %17 = vector.broadcast %cst_8 : f32 to vector<64x64xf32>
    %18 = arith.mulf %16, %17 : vector<64x64xf32>
    %19 = math.floor %18 : vector<64x64xf32>
    %20 = arith.cmpf oeq, %14, %19 : vector<64x64xf32>
    %cst_9 = arith.constant 0.000000e+00 : f32
    %cst_10 = arith.constant -1.000000e+30 : f32
    %21 = vector.broadcast %cst_9 : f32 to vector<64x64xf32>
    %22 = vector.broadcast %cst_10 : f32 to vector<64x64xf32>
    %23 = arith.select %20, %21, %22 : vector<64x64xi1>, vector<64x64xf32>
    %c0_11 = arith.constant 0 : index
    %c0_12 = arith.constant 0 : index
    %24 = vector.load %arg4[%c0_11, %c0_12] : memref<1x32xf32, #tpu.memory_space<vmem>>, vector<1x32xf32>
    %c0_13 = arith.constant 0 : index
    %c0_14 = arith.constant 0 : index
    %25 = vector.load %arg5[%c0_13, %c0_14] : memref<1x32xf32, #tpu.memory_space<vmem>>, vector<1x32xf32>
    %cst_15 = arith.constant dense<0.000000e+00> : vector<64xf32>
    %26 = vector.multi_reduction <add>, %5, %cst_15 [1] : vector<64x32xf32> to vector<64xf32>
    %27 = vector.shape_cast %26 : vector<64xf32> to vector<64x1xf32>
    %cst_16 = arith.constant 3.200000e+01 : f32
    %28 = vector.broadcast %cst_16 : f32 to vector<64x1xf32>
    %29 = arith.divf %27, %28 : vector<64x1xf32>
    %30 = vector.broadcast %29 : vector<64x1xf32> to vector<64x32xf32>
    %31 = arith.subf %5, %30 : vector<64x32xf32>
    %32 = arith.mulf %31, %31 : vector<64x32xf32>
    %cst_17 = arith.constant dense<0.000000e+00> : vector<64xf32>
    %33 = vector.multi_reduction <add>, %32, %cst_17 [1] : vector<64x32xf32> to vector<64xf32>
    %34 = vector.shape_cast %33 : vector<64xf32> to vector<64x1xf32>
    %cst_18 = arith.constant 3.200000e+01 : f32
    %35 = vector.broadcast %cst_18 : f32 to vector<64x1xf32>
    %36 = arith.divf %34, %35 : vector<64x1xf32>
    %cst_19 = arith.constant 9.99999974E-6 : f32
    %37 = vector.broadcast %cst_19 : f32 to vector<64x1xf32>
    %38 = arith.addf %36, %37 : vector<64x1xf32>
    %39 = math.rsqrt %38 : vector<64x1xf32>
    %40 = vector.broadcast %39 : vector<64x1xf32> to vector<64x32xf32>
    %41 = arith.mulf %31, %40 : vector<64x32xf32>
    %42 = vector.broadcast %24 : vector<1x32xf32> to vector<64x32xf32>
    %43 = arith.mulf %41, %42 : vector<64x32xf32>
    %44 = vector.broadcast %25 : vector<1x32xf32> to vector<64x32xf32>
    %45 = arith.addf %43, %44 : vector<64x32xf32>
    %c0_20 = arith.constant 0 : index
    %c0_21 = arith.constant 0 : index
    %46 = vector.load %arg6[%c0_20, %c0_21] : memref<32x32xf32, #tpu.memory_space<vmem>>, vector<32x32xf32>
    %cst_22 = arith.constant dense<0.000000e+00> : vector<64x32xf32>
    %47 = tpu.matmul %45, %46, %cst_22 {dimension_numbers = #tpu.dot_dimension_numbers<[1], [0], [0], [1], [0, 0, 1, 1], [], []>} : vector<64x32xf32>, vector<32x32xf32>, vector<64x32xf32> -> vector<64x32xf32>
    %c0_23 = arith.constant 0 : index
    %c0_24 = arith.constant 0 : index
    %48 = vector.load %arg7[%c0_23, %c0_24] : memref<1x32xf32, #tpu.memory_space<vmem>>, vector<1x32xf32>
    %49 = vector.broadcast %48 : vector<1x32xf32> to vector<64x32xf32>
    %50 = arith.addf %47, %49 : vector<64x32xf32>
    %cst_25 = arith.constant 0.353553385 : f32
    %51 = vector.broadcast %cst_25 : f32 to vector<64x32xf32>
    %52 = arith.mulf %50, %51 : vector<64x32xf32>
    %c0_26 = arith.constant 0 : index
    %c0_27 = arith.constant 0 : index
    %53 = vector.load %arg8[%c0_26, %c0_27] : memref<32x32xf32, #tpu.memory_space<vmem>>, vector<32x32xf32>
    %cst_28 = arith.constant dense<0.000000e+00> : vector<64x32xf32>
    %54 = tpu.matmul %45, %53, %cst_28 {dimension_numbers = #tpu.dot_dimension_numbers<[1], [0], [0], [1], [0, 0, 1, 1], [], []>} : vector<64x32xf32>, vector<32x32xf32>, vector<64x32xf32> -> vector<64x32xf32>
    %c0_29 = arith.constant 0 : index
    %c0_30 = arith.constant 0 : index
    %55 = vector.load %arg9[%c0_29, %c0_30] : memref<1x32xf32, #tpu.memory_space<vmem>>, vector<1x32xf32>
    %56 = vector.broadcast %55 : vector<1x32xf32> to vector<64x32xf32>
    %57 = arith.addf %54, %56 : vector<64x32xf32>
    %c0_31 = arith.constant 0 : index
    %c0_32 = arith.constant 0 : index
    %58 = vector.load %arg10[%c0_31, %c0_32] : memref<32x32xf32, #tpu.memory_space<vmem>>, vector<32x32xf32>
    %cst_33 = arith.constant dense<0.000000e+00> : vector<64x32xf32>
    %59 = tpu.matmul %45, %58, %cst_33 {dimension_numbers = #tpu.dot_dimension_numbers<[1], [0], [0], [1], [0, 0, 1, 1], [], []>} : vector<64x32xf32>, vector<32x32xf32>, vector<64x32xf32> -> vector<64x32xf32>
    %c0_34 = arith.constant 0 : index
    %c0_35 = arith.constant 0 : index
    %60 = vector.load %arg11[%c0_34, %c0_35] : memref<1x32xf32, #tpu.memory_space<vmem>>, vector<1x32xf32>
    %61 = vector.broadcast %60 : vector<1x32xf32> to vector<64x32xf32>
    %62 = arith.addf %59, %61 : vector<64x32xf32>
    %cst_36 = arith.constant 0.000000e+00 : f32
    %63 = vector.broadcast %cst_36 : f32 to vector<64x32xf32>
    %64 = vector.extract_strided_slice %52 {offsets = [0, 0], sizes = [64, 8], strides = [1, 1]} : vector<64x32xf32> to vector<64x8xf32>
    %65 = vector.extract_strided_slice %57 {offsets = [0, 0], sizes = [64, 8], strides = [1, 1]} : vector<64x32xf32> to vector<64x8xf32>
    %66 = vector.extract_strided_slice %62 {offsets = [0, 0], sizes = [64, 8], strides = [1, 1]} : vector<64x32xf32> to vector<64x8xf32>
    %cst_37 = arith.constant dense<0.000000e+00> : vector<64x64xf32>
    %67 = tpu.matmul %64, %65, %cst_37 {dimension_numbers = #tpu.dot_dimension_numbers<[1], [1], [0], [0], [0, 0, 1, 0], [], []>} : vector<64x8xf32>, vector<64x8xf32>, vector<64x64xf32> -> vector<64x64xf32>
    %68 = arith.addf %67, %23 : vector<64x64xf32>
    %cst_38 = arith.constant dense<0xFF800000> : vector<64xf32>
    %69 = vector.multi_reduction <maximumf>, %68, %cst_38 [1] : vector<64x64xf32> to vector<64xf32>
    %70 = vector.shape_cast %69 : vector<64xf32> to vector<64x1xf32>
    %71 = vector.broadcast %70 : vector<64x1xf32> to vector<64x64xf32>
    %72 = arith.subf %68, %71 : vector<64x64xf32>
    %73 = math.exp %72 : vector<64x64xf32>
    %cst_39 = arith.constant dense<0.000000e+00> : vector<64xf32>
    %74 = vector.multi_reduction <add>, %73, %cst_39 [1] : vector<64x64xf32> to vector<64xf32>
    %75 = vector.shape_cast %74 : vector<64xf32> to vector<64x1xf32>
    %76 = tpu.reciprocal %75 {approx = true} : vector<64x1xf32> -> vector<64x1xf32>
    %77 = vector.broadcast %76 : vector<64x1xf32> to vector<64x64xf32>
    %78 = arith.mulf %73, %77 : vector<64x64xf32>
    %cst_40 = arith.constant dense<0.000000e+00> : vector<64x8xf32>
    %79 = tpu.matmul %78, %66, %cst_40 {dimension_numbers = #tpu.dot_dimension_numbers<[1], [0], [0], [1], [0, 0, 1, 1], [], []>} : vector<64x64xf32>, vector<64x8xf32>, vector<64x8xf32> -> vector<64x8xf32>
    %c0_41 = arith.constant 0 : index
    %c0_42 = arith.constant 0 : index
    %80 = vector.load %arg12[%c0_41, %c0_42] : memref<32x32xf32, #tpu.memory_space<vmem>>, vector<8x32xf32>
    %cst_43 = arith.constant dense<0.000000e+00> : vector<64x32xf32>
    %81 = tpu.matmul %79, %80, %cst_43 {dimension_numbers = #tpu.dot_dimension_numbers<[1], [0], [0], [1], [0, 0, 1, 1], [], []>} : vector<64x8xf32>, vector<8x32xf32>, vector<64x32xf32> -> vector<64x32xf32>
    %82 = arith.addf %63, %81 : vector<64x32xf32>
    %83 = vector.extract_strided_slice %52 {offsets = [0, 8], sizes = [64, 8], strides = [1, 1]} : vector<64x32xf32> to vector<64x8xf32>
    %84 = vector.extract_strided_slice %57 {offsets = [0, 8], sizes = [64, 8], strides = [1, 1]} : vector<64x32xf32> to vector<64x8xf32>
    %85 = vector.extract_strided_slice %62 {offsets = [0, 8], sizes = [64, 8], strides = [1, 1]} : vector<64x32xf32> to vector<64x8xf32>
    %cst_44 = arith.constant dense<0.000000e+00> : vector<64x64xf32>
    %86 = tpu.matmul %83, %84, %cst_44 {dimension_numbers = #tpu.dot_dimension_numbers<[1], [1], [0], [0], [0, 0, 1, 0], [], []>} : vector<64x8xf32>, vector<64x8xf32>, vector<64x64xf32> -> vector<64x64xf32>
    %87 = arith.addf %86, %23 : vector<64x64xf32>
    %cst_45 = arith.constant dense<0xFF800000> : vector<64xf32>
    %88 = vector.multi_reduction <maximumf>, %87, %cst_45 [1] : vector<64x64xf32> to vector<64xf32>
    %89 = vector.shape_cast %88 : vector<64xf32> to vector<64x1xf32>
    %90 = vector.broadcast %89 : vector<64x1xf32> to vector<64x64xf32>
    %91 = arith.subf %87, %90 : vector<64x64xf32>
    %92 = math.exp %91 : vector<64x64xf32>
    %cst_46 = arith.constant dense<0.000000e+00> : vector<64xf32>
    %93 = vector.multi_reduction <add>, %92, %cst_46 [1] : vector<64x64xf32> to vector<64xf32>
    %94 = vector.shape_cast %93 : vector<64xf32> to vector<64x1xf32>
    %95 = tpu.reciprocal %94 {approx = true} : vector<64x1xf32> -> vector<64x1xf32>
    %96 = vector.broadcast %95 : vector<64x1xf32> to vector<64x64xf32>
    %97 = arith.mulf %92, %96 : vector<64x64xf32>
    %cst_47 = arith.constant dense<0.000000e+00> : vector<64x8xf32>
    %98 = tpu.matmul %97, %85, %cst_47 {dimension_numbers = #tpu.dot_dimension_numbers<[1], [0], [0], [1], [0, 0, 1, 1], [], []>} : vector<64x64xf32>, vector<64x8xf32>, vector<64x8xf32> -> vector<64x8xf32>
    %c8 = arith.constant 8 : index
    %c0_48 = arith.constant 0 : index
    %99 = vector.load %arg12[%c8, %c0_48] : memref<32x32xf32, #tpu.memory_space<vmem>>, vector<8x32xf32>
    %cst_49 = arith.constant dense<0.000000e+00> : vector<64x32xf32>
    %100 = tpu.matmul %98, %99, %cst_49 {dimension_numbers = #tpu.dot_dimension_numbers<[1], [0], [0], [1], [0, 0, 1, 1], [], []>} : vector<64x8xf32>, vector<8x32xf32>, vector<64x32xf32> -> vector<64x32xf32>
    %101 = arith.addf %82, %100 : vector<64x32xf32>
    %102 = vector.extract_strided_slice %52 {offsets = [0, 16], sizes = [64, 8], strides = [1, 1]} : vector<64x32xf32> to vector<64x8xf32>
    %103 = vector.extract_strided_slice %57 {offsets = [0, 16], sizes = [64, 8], strides = [1, 1]} : vector<64x32xf32> to vector<64x8xf32>
    %104 = vector.extract_strided_slice %62 {offsets = [0, 16], sizes = [64, 8], strides = [1, 1]} : vector<64x32xf32> to vector<64x8xf32>
    %cst_50 = arith.constant dense<0.000000e+00> : vector<64x64xf32>
    %105 = tpu.matmul %102, %103, %cst_50 {dimension_numbers = #tpu.dot_dimension_numbers<[1], [1], [0], [0], [0, 0, 1, 0], [], []>} : vector<64x8xf32>, vector<64x8xf32>, vector<64x64xf32> -> vector<64x64xf32>
    %106 = arith.addf %105, %23 : vector<64x64xf32>
    %cst_51 = arith.constant dense<0xFF800000> : vector<64xf32>
    %107 = vector.multi_reduction <maximumf>, %106, %cst_51 [1] : vector<64x64xf32> to vector<64xf32>
    %108 = vector.shape_cast %107 : vector<64xf32> to vector<64x1xf32>
    %109 = vector.broadcast %108 : vector<64x1xf32> to vector<64x64xf32>
    %110 = arith.subf %106, %109 : vector<64x64xf32>
    %111 = math.exp %110 : vector<64x64xf32>
    %cst_52 = arith.constant dense<0.000000e+00> : vector<64xf32>
    %112 = vector.multi_reduction <add>, %111, %cst_52 [1] : vector<64x64xf32> to vector<64xf32>
    %113 = vector.shape_cast %112 : vector<64xf32> to vector<64x1xf32>
    %114 = tpu.reciprocal %113 {approx = true} : vector<64x1xf32> -> vector<64x1xf32>
    %115 = vector.broadcast %114 : vector<64x1xf32> to vector<64x64xf32>
    %116 = arith.mulf %111, %115 : vector<64x64xf32>
    %cst_53 = arith.constant dense<0.000000e+00> : vector<64x8xf32>
    %117 = tpu.matmul %116, %104, %cst_53 {dimension_numbers = #tpu.dot_dimension_numbers<[1], [0], [0], [1], [0, 0, 1, 1], [], []>} : vector<64x64xf32>, vector<64x8xf32>, vector<64x8xf32> -> vector<64x8xf32>
    %c16 = arith.constant 16 : index
    %c0_54 = arith.constant 0 : index
    %118 = vector.load %arg12[%c16, %c0_54] : memref<32x32xf32, #tpu.memory_space<vmem>>, vector<8x32xf32>
    %cst_55 = arith.constant dense<0.000000e+00> : vector<64x32xf32>
    %119 = tpu.matmul %117, %118, %cst_55 {dimension_numbers = #tpu.dot_dimension_numbers<[1], [0], [0], [1], [0, 0, 1, 1], [], []>} : vector<64x8xf32>, vector<8x32xf32>, vector<64x32xf32> -> vector<64x32xf32>
    %120 = arith.addf %101, %119 : vector<64x32xf32>
    %121 = vector.extract_strided_slice %52 {offsets = [0, 24], sizes = [64, 8], strides = [1, 1]} : vector<64x32xf32> to vector<64x8xf32>
    %122 = vector.extract_strided_slice %57 {offsets = [0, 24], sizes = [64, 8], strides = [1, 1]} : vector<64x32xf32> to vector<64x8xf32>
    %123 = vector.extract_strided_slice %62 {offsets = [0, 24], sizes = [64, 8], strides = [1, 1]} : vector<64x32xf32> to vector<64x8xf32>
    %cst_56 = arith.constant dense<0.000000e+00> : vector<64x64xf32>
    %124 = tpu.matmul %121, %122, %cst_56 {dimension_numbers = #tpu.dot_dimension_numbers<[1], [1], [0], [0], [0, 0, 1, 0], [], []>} : vector<64x8xf32>, vector<64x8xf32>, vector<64x64xf32> -> vector<64x64xf32>
    %125 = arith.addf %124, %23 : vector<64x64xf32>
    %cst_57 = arith.constant dense<0xFF800000> : vector<64xf32>
    %126 = vector.multi_reduction <maximumf>, %125, %cst_57 [1] : vector<64x64xf32> to vector<64xf32>
    %127 = vector.shape_cast %126 : vector<64xf32> to vector<64x1xf32>
    %128 = vector.broadcast %127 : vector<64x1xf32> to vector<64x64xf32>
    %129 = arith.subf %125, %128 : vector<64x64xf32>
    %130 = math.exp %129 : vector<64x64xf32>
    %cst_58 = arith.constant dense<0.000000e+00> : vector<64xf32>
    %131 = vector.multi_reduction <add>, %130, %cst_58 [1] : vector<64x64xf32> to vector<64xf32>
    %132 = vector.shape_cast %131 : vector<64xf32> to vector<64x1xf32>
    %133 = tpu.reciprocal %132 {approx = true} : vector<64x1xf32> -> vector<64x1xf32>
    %134 = vector.broadcast %133 : vector<64x1xf32> to vector<64x64xf32>
    %135 = arith.mulf %130, %134 : vector<64x64xf32>
    %cst_59 = arith.constant dense<0.000000e+00> : vector<64x8xf32>
    %136 = tpu.matmul %135, %123, %cst_59 {dimension_numbers = #tpu.dot_dimension_numbers<[1], [0], [0], [1], [0, 0, 1, 1], [], []>} : vector<64x64xf32>, vector<64x8xf32>, vector<64x8xf32> -> vector<64x8xf32>
    %c24 = arith.constant 24 : index
    %c0_60 = arith.constant 0 : index
    %137 = vector.load %arg12[%c24, %c0_60] : memref<32x32xf32, #tpu.memory_space<vmem>>, vector<8x32xf32>
    %cst_61 = arith.constant dense<0.000000e+00> : vector<64x32xf32>
    %138 = tpu.matmul %136, %137, %cst_61 {dimension_numbers = #tpu.dot_dimension_numbers<[1], [0], [0], [1], [0, 0, 1, 1], [], []>} : vector<64x8xf32>, vector<8x32xf32>, vector<64x32xf32> -> vector<64x32xf32>
    %139 = arith.addf %120, %138 : vector<64x32xf32>
    %140 = arith.addf %5, %139 : vector<64x32xf32>
    %c0_62 = arith.constant 0 : index
    %c0_63 = arith.constant 0 : index
    %141 = vector.load %arg13[%c0_62, %c0_63] : memref<1x32xf32, #tpu.memory_space<vmem>>, vector<1x32xf32>
    %142 = vector.broadcast %141 : vector<1x32xf32> to vector<64x32xf32>
    %143 = arith.addf %140, %142 : vector<64x32xf32>
    %c0_64 = arith.constant 0 : index
    %c0_65 = arith.constant 0 : index
    %144 = vector.load %arg14[%c0_64, %c0_65] : memref<1x32xf32, #tpu.memory_space<vmem>>, vector<1x32xf32>
    %c0_66 = arith.constant 0 : index
    %c0_67 = arith.constant 0 : index
    %145 = vector.load %arg15[%c0_66, %c0_67] : memref<1x32xf32, #tpu.memory_space<vmem>>, vector<1x32xf32>
    %cst_68 = arith.constant dense<0.000000e+00> : vector<64xf32>
    %146 = vector.multi_reduction <add>, %143, %cst_68 [1] : vector<64x32xf32> to vector<64xf32>
    %147 = vector.shape_cast %146 : vector<64xf32> to vector<64x1xf32>
    %cst_69 = arith.constant 3.200000e+01 : f32
    %148 = vector.broadcast %cst_69 : f32 to vector<64x1xf32>
    %149 = arith.divf %147, %148 : vector<64x1xf32>
    %150 = vector.broadcast %149 : vector<64x1xf32> to vector<64x32xf32>
    %151 = arith.subf %143, %150 : vector<64x32xf32>
    %152 = arith.mulf %151, %151 : vector<64x32xf32>
    %cst_70 = arith.constant dense<0.000000e+00> : vector<64xf32>
    %153 = vector.multi_reduction <add>, %152, %cst_70 [1] : vector<64x32xf32> to vector<64xf32>
    %154 = vector.shape_cast %153 : vector<64xf32> to vector<64x1xf32>
    %cst_71 = arith.constant 3.200000e+01 : f32
    %155 = vector.broadcast %cst_71 : f32 to vector<64x1xf32>
    %156 = arith.divf %154, %155 : vector<64x1xf32>
    %cst_72 = arith.constant 9.99999974E-6 : f32
    %157 = vector.broadcast %cst_72 : f32 to vector<64x1xf32>
    %158 = arith.addf %156, %157 : vector<64x1xf32>
    %159 = math.rsqrt %158 : vector<64x1xf32>
    %160 = vector.broadcast %159 : vector<64x1xf32> to vector<64x32xf32>
    %161 = arith.mulf %151, %160 : vector<64x32xf32>
    %162 = vector.broadcast %144 : vector<1x32xf32> to vector<64x32xf32>
    %163 = arith.mulf %161, %162 : vector<64x32xf32>
    %164 = vector.broadcast %145 : vector<1x32xf32> to vector<64x32xf32>
    %165 = arith.addf %163, %164 : vector<64x32xf32>
    %c0_73 = arith.constant 0 : index
    %c0_74 = arith.constant 0 : index
    %166 = vector.load %arg16[%c0_73, %c0_74] : memref<32x64xf32, #tpu.memory_space<vmem>>, vector<32x64xf32>
    %cst_75 = arith.constant dense<0.000000e+00> : vector<64x64xf32>
    %167 = tpu.matmul %165, %166, %cst_75 {dimension_numbers = #tpu.dot_dimension_numbers<[1], [0], [0], [1], [0, 0, 1, 1], [], []>} : vector<64x32xf32>, vector<32x64xf32>, vector<64x64xf32> -> vector<64x64xf32>
    %c0_76 = arith.constant 0 : index
    %c0_77 = arith.constant 0 : index
    %168 = vector.load %arg17[%c0_76, %c0_77] : memref<1x64xf32, #tpu.memory_space<vmem>>, vector<1x64xf32>
    %169 = vector.broadcast %168 : vector<1x64xf32> to vector<64x64xf32>
    %170 = arith.addf %167, %169 : vector<64x64xf32>
    %cst_78 = arith.constant 5.000000e-01 : f32
    %171 = vector.broadcast %cst_78 : f32 to vector<64x64xf32>
    %172 = arith.mulf %171, %170 : vector<64x64xf32>
    %cst_79 = arith.constant 0.707106769 : f32
    %173 = vector.broadcast %cst_79 : f32 to vector<64x64xf32>
    %174 = arith.mulf %170, %173 : vector<64x64xf32>
    %175 = math.erf %174 : vector<64x64xf32>
    %cst_80 = arith.constant 1.000000e+00 : f32
    %176 = vector.broadcast %cst_80 : f32 to vector<64x64xf32>
    %177 = arith.addf %176, %175 : vector<64x64xf32>
    %178 = arith.mulf %172, %177 : vector<64x64xf32>
    %c0_81 = arith.constant 0 : index
    %c0_82 = arith.constant 0 : index
    %179 = vector.load %arg18[%c0_81, %c0_82] : memref<64x32xf32, #tpu.memory_space<vmem>>, vector<64x32xf32>
    %cst_83 = arith.constant dense<0.000000e+00> : vector<64x32xf32>
    %180 = tpu.matmul %178, %179, %cst_83 {dimension_numbers = #tpu.dot_dimension_numbers<[1], [0], [0], [1], [0, 0, 1, 1], [], []>} : vector<64x64xf32>, vector<64x32xf32>, vector<64x32xf32> -> vector<64x32xf32>
    %c0_84 = arith.constant 0 : index
    %c0_85 = arith.constant 0 : index
    %181 = vector.load %arg19[%c0_84, %c0_85] : memref<1x32xf32, #tpu.memory_space<vmem>>, vector<1x32xf32>
    %182 = vector.broadcast %181 : vector<1x32xf32> to vector<64x32xf32>
    %183 = arith.addf %180, %182 : vector<64x32xf32>
    %184 = arith.addf %143, %183 : vector<64x32xf32>
    %c0_86 = arith.constant 0 : index
    %c0_87 = arith.constant 0 : index
    %185 = vector.load %arg20[%c0_86, %c0_87] : memref<32x4xf32, #tpu.memory_space<vmem>>, vector<32x4xf32>
    %cst_88 = arith.constant dense<0.000000e+00> : vector<64x4xf32>
    %186 = tpu.matmul %184, %185, %cst_88 {dimension_numbers = #tpu.dot_dimension_numbers<[1], [0], [0], [1], [0, 0, 1, 1], [], []>} : vector<64x32xf32>, vector<32x4xf32>, vector<64x4xf32> -> vector<64x4xf32>
    %c0_89 = arith.constant 0 : index
    %c0_90 = arith.constant 0 : index
    %187 = vector.load %arg21[%c0_89, %c0_90] : memref<1x4xf32, #tpu.memory_space<vmem>>, vector<1x4xf32>
    %188 = vector.broadcast %187 : vector<1x4xf32> to vector<64x4xf32>
    %189 = arith.addf %186, %188 : vector<64x4xf32>
    %c0_91 = arith.constant 0 : index
    %c0_92 = arith.constant 0 : index
    %190 = vector.load %arg22[%c0_91, %c0_92] : memref<64x4xf32, #tpu.memory_space<vmem>>, vector<64x4xf32>
    tpu.vector_store %arg22[%c0_91, %c0_92], %189 {strides = array<i32>} : memref<64x4xf32, #tpu.memory_space<vmem>>, vector<64x4xf32>,
    return
  }
  func.func @transform_0(%arg0: i32) -> (i32, i32) {
    %c0_i32 = arith.constant 0 : i32
    %c0_i32_0 = arith.constant 0 : i32
    return %arg0, %c0_i32 : i32, i32
  }
  func.func @transform_1(%arg0: i32) -> (i32, i32) {
    %c0_i32 = arith.constant 0 : i32
    %c0_i32_0 = arith.constant 0 : i32
    %c0_i32_1 = arith.constant 0 : i32
    return %c0_i32, %c0_i32_0 : i32, i32
  }
  func.func @transform_2(%arg0: i32) -> (i32, i32) {
    %c0_i32 = arith.constant 0 : i32
    %c0_i32_0 = arith.constant 0 : i32
    %c0_i32_1 = arith.constant 0 : i32
    return %c0_i32, %c0_i32_0 : i32, i32
  }
  func.func @transform_3(%arg0: i32) -> (i32, i32) {
    %c0_i32 = arith.constant 0 : i32
    %c0_i32_0 = arith.constant 0 : i32
    %c0_i32_1 = arith.constant 0 : i32
    return %c0_i32, %c0_i32_0 : i32, i32
  }
  func.func @transform_4(%arg0: i32) -> (i32, i32) {
    %c0_i32 = arith.constant 0 : i32
    %c0_i32_0 = arith.constant 0 : i32
    %c0_i32_1 = arith.constant 0 : i32
    return %c0_i32, %c0_i32_0 : i32, i32
  }
  func.func @transform_5(%arg0: i32) -> (i32, i32) {
    %c0_i32 = arith.constant 0 : i32
    %c0_i32_0 = arith.constant 0 : i32
    %c0_i32_1 = arith.constant 0 : i32
    return %c0_i32, %c0_i32_0 : i32, i32
  }
  func.func @transform_6(%arg0: i32) -> (i32, i32) {
    %c0_i32 = arith.constant 0 : i32
    %c0_i32_0 = arith.constant 0 : i32
    %c0_i32_1 = arith.constant 0 : i32
    return %c0_i32, %c0_i32_0 : i32, i32
  }
  func.func @transform_7(%arg0: i32) -> (i32, i32) {
    %c0_i32 = arith.constant 0 : i32
    %c0_i32_0 = arith.constant 0 : i32
    %c0_i32_1 = arith.constant 0 : i32
    return %c0_i32, %c0_i32_0 : i32, i32
  }
  func.func @transform_8(%arg0: i32) -> (i32, i32) {
    %c0_i32 = arith.constant 0 : i32
    %c0_i32_0 = arith.constant 0 : i32
    %c0_i32_1 = arith.constant 0 : i32
    return %c0_i32, %c0_i32_0 : i32, i32
  }
  func.func @transform_9(%arg0: i32) -> (i32, i32) {
    %c0_i32 = arith.constant 0 : i32
    %c0_i32_0 = arith.constant 0 : i32
    %c0_i32_1 = arith.constant 0 : i32
    return %c0_i32, %c0_i32_0 : i32, i32
  }
  func.func @transform_10(%arg0: i32) -> (i32, i32) {
    %c0_i32 = arith.constant 0 : i32
    %c0_i32_0 = arith.constant 0 : i32
    %c0_i32_1 = arith.constant 0 : i32
    return %c0_i32, %c0_i32_0 : i32, i32
  }
  func.func @transform_11(%arg0: i32) -> (i32, i32) {
    %c0_i32 = arith.constant 0 : i32
    %c0_i32_0 = arith.constant 0 : i32
    %c0_i32_1 = arith.constant 0 : i32
    return %c0_i32, %c0_i32_0 : i32, i32
  }
  func.func @transform_12(%arg0: i32) -> (i32, i32) {
    %c0_i32 = arith.constant 0 : i32
    %c0_i32_0 = arith.constant 0 : i32
    %c0_i32_1 = arith.constant 0 : i32
    return %c0_i32, %c0_i32_0 : i32, i32
  }
  func.func @transform_13(%arg0: i32) -> (i32, i32) {
    %c0_i32 = arith.constant 0 : i32
    %c0_i32_0 = arith.constant 0 : i32
    %c0_i32_1 = arith.constant 0 : i32
    return %c0_i32, %c0_i32_0 : i32, i32
  }
  func.func @transform_14(%arg0: i32) -> (i32, i32) {
    %c0_i32 = arith.constant 0 : i32
    %c0_i32_0 = arith.constant 0 : i32
    %c0_i32_1 = arith.constant 0 : i32
    return %c0_i32, %c0_i32_0 : i32, i32
  }
  func.func @transform_15(%arg0: i32) -> (i32, i32) {
    %c0_i32 = arith.constant 0 : i32
    %c0_i32_0 = arith.constant 0 : i32
    %c0_i32_1 = arith.constant 0 : i32
    return %c0_i32, %c0_i32_0 : i32, i32
  }
  func.func @transform_16(%arg0: i32) -> (i32, i32) {
    %c0_i32 = arith.constant 0 : i32
    %c0_i32_0 = arith.constant 0 : i32
    %c0_i32_1 = arith.constant 0 : i32
    return %c0_i32, %c0_i32_0 : i32, i32
  }
  func.func @transform_17(%arg0: i32) -> (i32, i32) {
    %c0_i32 = arith.constant 0 : i32
    %c0_i32_0 = arith.constant 0 : i32
    %c0_i32_1 = arith.constant 0 : i32
    return %c0_i32, %c0_i32_0 : i32, i32
  }
  func.func @transform_18(%arg0: i32) -> (i32, i32) {
    %c0_i32 = arith.constant 0 : i32
    %c0_i32_0 = arith.constant 0 : i32
    %c0_i32_1 = arith.constant 0 : i32
    return %c0_i32, %c0_i32_0 : i32, i32
  }
  func.func @transform_19(%arg0: i32) -> (i32, i32) {
    %c0_i32 = arith.constant 0 : i32
    %c0_i32_0 = arith.constant 0 : i32
    %c0_i32_1 = arith.constant 0 : i32
    return %c0_i32, %c0_i32_0 : i32, i32
  }
  func.func @transform_20(%arg0: i32) -> (i32, i32) {
    %c0_i32 = arith.constant 0 : i32
    %c0_i32_0 = arith.constant 0 : i32
    %c0_i32_1 = arith.constant 0 : i32
    return %c0_i32, %c0_i32_0 : i32, i32
  }
  func.func @transform_21(%arg0: i32) -> (i32, i32) {
    %c0_i32 = arith.constant 0 : i32
    %c0_i32_0 = arith.constant 0 : i32
    return %arg0, %c0_i32 : i32, i32
  }
}

</mosaic_0001>

<bundles_post_ra>
// kernel: spec_tnt_forward.2
= control target key start
LH: loop header
LB: loop body
LE: loop exit
PB: predicated region body
PF: predicated region fallthrough
CT: control target
= control target key end

     0   :  { %vm94_vm0 = vcmask 1040384   ;;  %vm81_vm1 = vcmask 72704   ;;  %vm220_vm2 = vcmask 261120   ;;  %vm598_vm3 = vcmask 64512   ;;  %s3742_s1 = inlined_call_operand.vmem [shape: f32[9,32], index: 1, kind: input, shape index: {}]   ;;  %s3743_s0 = inlined_call_operand.vmem [shape: f32[32,9], index: 0, kind: input, shape index: {}]   ;;  %s3744_s2 = inlined_call_operand.vmem [shape: f32[1,32], index: 2, kind: input, shape index: {}]   ;;  %s3745_s5 = inlined_call_operand.vmem [shape: f32[32,32], index: 5, kind: input, shape index: {}]   ;;  %s3746_s7 = inlined_call_operand.vmem [shape: f32[32,32], index: 7, kind: input, shape index: {}]   ;;  %s3747_s9 = inlined_call_operand.vmem [shape: f32[32,32], index: 9, kind: input, shape index: {}]   ;;  %s3748_s3 = inlined_call_operand.vmem [shape: f32[1,32], index: 3, kind: input, shape index: {}]   ;;  %s3749_s4 = inlined_call_operand.vmem [shape: f32[1,32], index: 4, kind: input, shape index: {}]   ;;  %s3750_s6 = inlined_call_operand.vmem [shape: f32[1,32], index: 6, kind: input, shape index: {}]   ;;  %s3751_s8 = inlined_call_operand.vmem [shape: f32[1,32], index: 8, kind: input, shape index: {}]   ;;  %s3752_s10 = inlined_call_operand.vmem [shape: f32[1,32], index: 10, kind: input, shape index: {}]   ;;  %s3753_s11 = inlined_call_operand.vmem [shape: f32[32,32], index: 11, kind: input, shape index: {}]   ;;  %s3754_s12 = inlined_call_operand.vmem [shape: f32[1,32], index: 12, kind: input, shape index: {}]   ;;  %s3755_s15 = inlined_call_operand.vmem [shape: f32[32,64], index: 15, kind: input, shape index: {}]   ;;  %s3756_s13 = inlined_call_operand.vmem [shape: f32[1,32], index: 13, kind: input, shape index: {}]   ;;  %s3757_s14 = inlined_call_operand.vmem [shape: f32[1,32], index: 14, kind: input, shape index: {}]   ;;  %s3758_s17 = inlined_call_operand.vmem [shape: f32[64,32], index: 17, kind: input, shape index: {}]   ;;  %s3759_s16 = inlined_call_operand.vmem [shape: f32[1,64], index: 16, kind: input, shape index: {}]   ;;  %s3760_s19 = inlined_call_operand.vmem [shape: f32[32,9], index: 19, kind: input, shape index: {}]   ;;  %s3761_s18 = inlined_call_operand.vmem [shape: f32[1,32], index: 18, kind: input, shape index: {}]   ;;  %s3762_s20 = inlined_call_operand.vmem [shape: f32[1,9], index: 20, kind: input, shape index: {}]   ;;  %s3763_s21 = inlined_call_operand.vmem [shape: f32[32,9], index: 21, kind: output, shape index: {}]  }
   0x1   :  { %3769 = sst [smem:[#allocation2_spill]] %s3742_s1  ;;  %v2519_v61 = vld [vmem:[%s3748_s3] ss:$0 sm:$0xff]  ;;  %vm2295_vm8 = vcmask 523264  }
   0x2   :  { %3770 = sst [smem:[#allocation3_spill]] %s3743_s0  ;;  %v2520_v63 = vld [vmem:[%s3749_s4] ss:$0 sm:$0xff] }
   0x3   :  { %3771 = sst [smem:[#allocation4_spill]] %s3744_s2 }
   0x4   :  { %3772 = sst [smem:[#allocation5_spill]] %s3745_s5 }
   0x5   :  { %3773 = sst [smem:[#allocation6_spill]] %s3746_s7 }
   0x6   :  { %3774 = sst [smem:[#allocation7_spill]] %s3747_s9 }
   0x7   :  { %s3775_s26 = sld [smem:[#allocation2_spill]] }
   0x8   :  { %s3776_s1 = sld [smem:[#allocation3_spill]] }
   0x9   :  { %s3777_s25 = sld [smem:[#allocation4_spill]] }
   0xa   :  { %s3778_s5 = sld [smem:[#allocation5_spill]] }
   0xb   :  { %s3780_s30 = sld [smem:[#allocation7_spill]] }
   0xd   :  { %v73_v0 = vld [vmem:[%s3775_s26 + $0x8] sm:$0x1]  ;;  %v72_v1 = vld [vmem:[%s3775_s26] sm:$0xff] }
   0xe   :  { %v68_v2 = vld [vmem:[%s3776_s1] sm:$0xff]  ;;  %2760 = vmatprep.subr.msk.mxu0 %vm94_vm0, %v73_v0  ;;  %v69_v3 = vld [vmem:[%s3776_s1 + $0x8] sm:$0xff]  ;;  %v70_v4 = vld [vmem:[%s3776_s1 + $0x10] sm:$0xff] }
   0xf   :  { %2764 = vmatprep.mubr.msk.f32.mxu0 %vm81_vm1, %v68_v2  ;;  %2761 = vmatpush3.msk.msra.mxu0 %vm94_vm0, %v73_v0  ;;  %v71_v5 = vld [vmem:[%s3776_s1 + $0x18] sm:$0xff]  ;;  %v2513_v7 = vld [vmem:[%s3777_s25] ss:$0 sm:$0xff]  ;;  %s3779_s1 = sld [smem:[#allocation6_spill]] }
  0x10   :  { %2762 = vmatprep.subr.mxu0 %v72_v1  ;;  %v297_v39 = vld [vmem:[%s3778_s5 + $0x18] sm:$0xff]  ;;  %v296_v41 = vld [vmem:[%s3778_s5 + $0x10] sm:$0xff]  ;;  %v295_v43 = vld [vmem:[%s3778_s5 + $0x8] sm:$0xff] }
  0x11   :  { %2763 = vmatpush3.msra.mxu0 %v72_v1  ;;  %2770 = vmatprep.subr.mxu1 %v297_v39  ;;  %v294_v45 = vld [vmem:[%s3778_s5] sm:$0xff]  ;;  %v505_v47 = vld [vmem:[%s3780_s30 + $0x18] sm:$0xff]  ;;  %s3101_s5 = smov 104  }
  0x12   :  { %2765 = vmatmul.mubr.msk.f32.vlgmr.msra.gmra.mxu0 %vm81_vm1, %v69_v3  ;;  %2771 = vmatpush3.msra.mxu1 %v297_v39 }
  0x13   :  { %2767 = vmatprep.mubr.msk.f32.mxu0 %vm81_vm1, %v70_v4  ;;  %2772 = vmatprep.subr.mxu1 %v296_v41 }
  0x14   :  { %2773 = vmatpush3.msra.mxu1 %v296_v41 }
  0x15   :  { %v409_v40 = vld [vmem:[%s3779_s1 + $0x18] sm:$0xff]  ;;  %v408_v42 = vld [vmem:[%s3779_s1 + $0x10] sm:$0xff]  ;;  %2774 = vmatprep.subr.mxu1 %v295_v43  ;;  %v407_v44 = vld [vmem:[%s3779_s1 + $0x8] sm:$0xff] }
  0x16   :  { %2768 = vmatmul.mubr.msk.f32.gmra.mxu0 %vm81_vm1, %v71_v5  ;;  %2784 = vmatprep.subr.mxu0 %v409_v40  ;;  %v406_v46 = vld [vmem:[%s3779_s1] sm:$0xff] }
  0x17   :  { %2785 = vmatpush3.msra.mxu0 %v409_v40  ;;  %2775 = vmatpush3.msra.mxu1 %v295_v43 }
  0x18   :  { %2786 = vmatprep.subr.mxu0 %v408_v42  ;;  %2776 = vmatprep.subr.mxu1 %v294_v45 }
  0x19   :  { %2787 = vmatpush3.msra.mxu0 %v408_v42  ;;  %2777 = vmatpush3.msra.mxu1 %v294_v45 }
  0x1a   :  { %2788 = vmatprep.subr.mxu0 %v407_v44  ;;  %2798 = vmatprep.subr.mxu1 %v505_v47 }
  0x1b   :  { %2789 = vmatpush3.msra.mxu0 %v407_v44 }
  0x1c   :  { %2790 = vmatprep.subr.mxu0 %v406_v46 }
  0x1d   :  { %2791 = vmatpush3.msra.mxu0 %v406_v46 }
  0xd2   :  { %v2766_v6 = vpop.f32.mrf.mxu0 }
  0xd3   :  { %v3239_v11 = vadd.f32 %v2766_v6, %v2513_v7 }
  0xd4   :  { %v164_v8 = vpop.f32.mrf.mxu0 }
  0xd5   :  { %v3237_v9 = vadd.f32 %v2513_v7, %v164_v8  ;;  %v224_v17 = vsel %vm220_vm2, %v3239_v11, 0.0 }
  0xd6   :  { %v2769_v10 = vpop.f32.mrf.mxu0 }
  0xd7   :  { %v221_v12 = vsel %vm220_vm2, %v3237_v9, 0.0  ;;  %v3245_v15 = vadd.f32 %v2769_v10, %v2513_v7 }
  0xd8   :  { %v174_v13 = vpop.f32.mrf.mxu0  ;;  %222 = vadd.xlane.f32.xlu0 %v221_v12 }
  0xd9   :  { %v3243_v14 = vadd.f32 %v2513_v7, %v174_v13  ;;  %v230_v18 = vsel %vm220_vm2, %v3245_v15, 0.0 }
  0xdb   :  { %v227_v16 = vsel %vm220_vm2, %v3243_v14, 0.0 }
  0xdc   :  { %228 = vadd.xlane.f32.xlu1 %v227_v16  ;;  %225 = vadd.xlane.f32.xlu0 %v224_v17  ;;  %v504_v16 = vld [vmem:[%s3780_s30 + $0x10] sm:$0xff] }
  0xe0   :  { %231 = vadd.xlane.f32.xlu1 %v230_v18 }
 0x161   :  { %v223_v19 = vpop.xlane.xlu0 %222 }
 0x162   :  { %v234_v20 = vmul.f32 0.03125, %v223_v19  ;;  %v503_v19 = vld [vmem:[%s3780_s30 + $0x8] sm:$0xff] }
 0x164   :  { %v3254_v21 = vsub.f32 %v3237_v9, %v234_v20  ;;  %v502_v20 = vld [vmem:[%s3780_s30] sm:$0xff]  ;;  %s3100_s30 = smov 112  }
 0x165   :  { %v229_v22 = vpop.xlane.xlu1 %228  ;;  %v226_v23 = vpop.xlane.xlu0 %225 }
 0x166   :  { %v236_v24 = vmul.f32 0.03125, %v229_v22  ;;  %v235_v25 = vmul.f32 0.03125, %v226_v23  ;;  %v242_v26 = vmul.f32 %v3254_v21, %v3254_v21  ;;  %v2521_v23 = vld [vmem:[%s3750_s6] ss:$0 sm:$0xff] }
 0x168   :  { %v3259_v27 = vsub.f32 %v3243_v14, %v236_v24  ;;  %v3262_v28 = vsub.f32 %v3239_v11, %v235_v25  ;;  %v246_v29 = vsel %vm220_vm2, %v242_v26, 0.0 }
 0x169   :  { %v232_v30 = vpop.xlane.xlu1 %231  ;;  %247 = vadd.xlane.f32.xlu0 %v246_v29 }
 0x16a   :  { %v237_v31 = vmul.f32 0.03125, %v232_v30  ;;  %v244_v32 = vmul.f32 %v3259_v27, %v3259_v27  ;;  %v243_v33 = vmul.f32 %v3262_v28, %v3262_v28 }
 0x16c   :  { %v3270_v34 = vsub.f32 %v3245_v15, %v237_v31  ;;  %v252_v35 = vsel %vm220_vm2, %v244_v32, 0.0  ;;  %v249_v36 = vsel %vm220_vm2, %v243_v33, 0.0 }
 0x16d   :  { %253 = vadd.xlane.f32.xlu0 %v252_v35  ;;  %250 = vadd.xlane.f32.xlu1 %v249_v36 }
 0x16e   :  { %v245_v37 = vmul.f32 %v3270_v34, %v3270_v34 }
 0x170   :  { %v255_v38 = vsel %vm220_vm2, %v245_v37, 0.0 }
 0x171   :  { %256 = vadd.xlane.f32.xlu1 %v255_v38  ;;  %v2531_v38 = vld [vmem:[%s3752_s10] ss:$0 sm:$0xff]  ;;  %s3099_s10 = smov 120  }
 0x1f2   :  { %v248_v48 = vpop.xlane.xlu0 %247 }
 0x1f3   :  { %v258_v49 = vmul.f32 0.03125, %v248_v48 }
 0x1f5   :  { %v262_v50 = vadd.f32 1e-05, %v258_v49 }
 0x1f6   :  { %v251_v51 = vpop.xlane.xlu1 %250  ;;  %v254_v52 = vpop.xlane.xlu0 %253 }
 0x1f7   :  { %3010 = vrsqrt.f32 %v262_v50  ;;  %v259_v53 = vmul.f32 0.03125, %v251_v51  ;;  %v260_v54 = vmul.f32 0.03125, %v254_v52  ;;  %v183_v52 = vlaneseq }
 0x1f9   :  { %v263_v55 = vadd.f32 1e-05, %v259_v53  ;;  %v264_v56 = vadd.f32 1e-05, %v260_v54  ;;  %v184_v53 = vshrl.u32 %v183_v52, 7 }
 0x1fa   :  { %v257_v57 = vpop.xlane.xlu1 %256 }
 0x1fb   :  { %3012 = vrsqrt.f32 %v263_v55  ;;  %v261_v58 = vmul.f32 0.03125, %v257_v57  ;;  %v185_v54 = vadd.s32 8, %v184_v53  ;;  %v193_v55 = vand.u32 127, %v183_v52 }
 0x1fc   :  { %3014 = vrsqrt.f32 %v264_v56 }
 0x1fd   :  { %v265_v59 = vadd.f32 1e-05, %v261_v58  ;;  %v189_v56 = vcvt.s32.f32 %v185_v54  ;;  %v194_v57 = vcvt.s32.f32 %v193_v55  ;;  %v187_v58 = vadd.s32 24, %v184_v53 }
 0x1ff   :  { %3016 = vrsqrt.f32 %v265_v59  ;;  %v188_v59 = vcvt.s32.f32 %v184_v53 }
 0x204   :  { %v3011_v60 = vpop.eup %3010 }
 0x205   :  { %v270_v62 = vmul.f32 %v3011_v60, %v3254_v21  ;;  %v186_v60 = vadd.s32 16, %v184_v53 }
 0x207   :  { %v280_v0 = vmul.f32 %v2519_v61, %v270_v62  ;;  %v207_v62 = vadd.f32 0.5, %v194_v57 }
 0x208   :  { %v3013_v1 = vpop.eup %3012 }
 0x209   :  { %v3015_v2 = vpop.eup %3014  ;;  %v290_v3 = vadd.f32 %v2520_v63, %v280_v0  ;;  %v271_v4 = vmul.f32 %v3013_v1, %v3262_v28  ;;  %v195_v0 = vadd.f32 0.5, %v188_v59  ;;  %v190_v1 = vcvt.s32.f32 %v186_v60 }
 0x20a   :  { %v272_v5 = vmul.f32 %v3015_v2, %v3259_v27  ;;  %v2526_v27 = vld [vmem:[%s3751_s8] ss:$0 sm:$0xff] }
 0x20b   :  { %2778 = vmatprep.mubr.msk.f32.mxu1 %vm220_vm2, %v290_v3  ;;  %2792 = vmatprep.mubr.msk.f32.mxu0 %vm220_vm2, %v290_v3  ;;  %v281_v6 = vmul.f32 %v2519_v61, %v271_v4 }
 0x20c   :  { %v3017_v7 = vpop.eup %3016  ;;  %v282_v8 = vmul.f32 %v2519_v61, %v272_v5  ;;  %v199_v5 = vmul.f32 0.25, %v195_v0 }
 0x20d   :  { %v291_v10 = vadd.f32 %v2520_v63, %v281_v6  ;;  %v273_v12 = vmul.f32 %v3017_v7, %v3270_v34  ;;  %v197_v6 = vadd.f32 0.5, %v190_v1 }
 0x20e   :  { %v292_v13 = vadd.f32 %v2520_v63, %v282_v8 }
 0x20f   :  { %2779 = vmatmul.mubr.msk.f32.vlgmr.msra.gmra.mxu1 %vm220_vm2, %v291_v10  ;;  %2793 = vmatmul.mubr.msk.f32.vlgmr.msra.gmra.mxu0 %vm220_vm2, %v291_v10  ;;  %v283_v17 = vmul.f32 %v2519_v61, %v273_v12  ;;  %v196_v61 = vadd.f32 0.5, %v189_v56  ;;  %v203_v12 = vfloor.f32 %v199_v5 }
 0x210   :  { %2781 = vmatprep.mubr.msk.f32.mxu1 %vm220_vm2, %v292_v13  ;;  %2795 = vmatprep.mubr.msk.f32.mxu0 %vm220_vm2, %v292_v13 }
 0x211   :  { %2799 = vmatpush3.msra.mxu1 %v505_v47  ;;  %v293_v18 = vadd.f32 %v2520_v63, %v283_v17  ;;  %v191_v63 = vcvt.s32.f32 %v187_v58  ;;  %v200_v2 = vmul.f32 0.25, %v196_v61 }
 0x212   :  { %2800 = vmatprep.subr.mxu1 %v504_v16 }
 0x213   :  { %2801 = vmatpush3.msra.mxu1 %v504_v16  ;;  %2796 = vmatmul.mubr.msk.f32.gmra.mxu0 %vm220_vm2, %v293_v18  ;;  %v198_v4 = vadd.f32 0.5, %v191_v63  ;;  %v204_v7 = vfloor.f32 %v200_v2 }
 0x214   :  { %2782 = vmatmul.mubr.msk.f32.gmra.mxu1 %vm220_vm2, %v293_v18  ;;  %2802 = vmatprep.subr.mxu1 %v503_v19 }
 0x215   :  { %2803 = vmatpush3.msra.mxu1 %v503_v19  ;;  %2806 = vmatprep.mubr.msk.f32.mxu1 %vm220_vm2, %v290_v3  ;;  %v208_v3 = vmul.f32 0.25, %v207_v62 }
 0x216   :  { %2804 = vmatprep.subr.mxu1 %v502_v20 }
 0x217   :  { %2805 = vmatpush3.msra.mxu1 %v502_v20  ;;  %v209_v8 = vfloor.f32 %v208_v3 }
 0x218   :  { %2807 = vmatmul.mubr.msk.f32.vlgmr.msra.gmra.mxu1 %vm220_vm2, %v291_v10  ;;  %v202_v10 = vmul.f32 0.25, %v198_v4 }
 0x219   :  { %2809 = vmatprep.mubr.msk.f32.mxu1 %vm220_vm2, %v292_v13  ;;  %v201_v13 = vmul.f32 0.25, %v197_v6  ;;  %vm211_vm4 = vcmp.eq.f32.partialorder %v204_v7, %v209_v8  ;;  %vm210_vm5 = vcmp.eq.f32.partialorder %v203_v12, %v209_v8 }
 0x21a   :  { %v206_v16 = vfloor.f32 %v202_v10 }
 0x21b   :  { %v205_v17 = vfloor.f32 %v201_v13 }
 0x21c   :  { %2810 = vmatmul.mubr.msk.f32.gmra.mxu1 %vm220_vm2, %v293_v18  ;;  %v3098_v18 = vmov -1e+30   ;;  %vm213_vm6 = vcmp.eq.f32.partialorder %v206_v16, %v209_v8 }
 0x21d   :  { %v3400_v19 = vsel %vm211_vm4, 0.0, %v3098_v18  ;;  %vm212_vm7 = vcmp.eq.f32.partialorder %v205_v17, %v209_v8 }
 0x2cf   :  { %v2780_v21 = vpop.f32.mrf.mxu1  ;;  %v2794_v22 = vpop.f32.mrf.mxu0 }
 0x2d0   :  { %v3355_v36 = vadd.f32 %v2794_v22, %v2526_v27  ;;  %v389_v44 = vadd.f32 %v2780_v21, %v2521_v23  ;;  %v3402_v21 = vsel %vm210_vm5, 0.0, %v3098_v18 }
 0x2d1   :  { %v383_v24 = vpop.f32.mrf.mxu1  ;;  %v483_v25 = vpop.f32.mrf.mxu0 }
 0x2d2   :  { %v384_v26 = vadd.f32 %v2521_v23, %v383_v24  ;;  %v3366_v41 = vadd.f32 %v2526_v27, %v483_v25  ;;  %v3385_v48 = vmul.f32 0.35355338, %v389_v44  ;;  %v3405_v24 = vsel %vm213_vm6, 0.0, %v3098_v18 }
 0x2d3   :  { %v2797_v28 = vpop.f32.mrf.mxu0 }
 0x2d4   :  { %v3341_v29 = vmul.f32 0.35355338, %v384_v26  ;;  %v2783_v30 = vpop.f32.mrf.mxu1  ;;  %v3343_v31 = vadd.f32 %v2797_v28, %v2526_v27  ;;  %v3409_v28 = vsel %vm212_vm7, 0.0, %v3098_v18 }
 0x2d5   :  { %v493_v32 = vpop.f32.mrf.mxu0  ;;  %v399_v49 = vadd.f32 %v2783_v30, %v2521_v23 }
 0x2d6   :  { %v393_v33 = vpop.f32.mrf.mxu1  ;;  %v3345_v34 = vadd.f32 %v2526_v27, %v493_v32  ;;  %2812 = vmatprep.subr.msk.mxu0 %vm598_vm3, %v3343_v31  ;;  %2820 = vmatprep.mubr.msk.f32.mxu0 %vm598_vm3, %v3341_v29 }
 0x2d7   :  { %2813 = vmatpush3.xpose.msk.msra.mxu0 %vm598_vm3, %v3343_v31  ;;  %v394_v45 = vadd.f32 %v2521_v23, %v393_v33  ;;  %v3396_v51 = vmul.f32 0.35355338, %v399_v49 }
 0x2d8   :  { %v2808_v35 = vpop.f32.mrf.mxu1  ;;  %2814 = vmatprep.subr.msk.mxu0 %vm598_vm3, %v3345_v34 }
 0x2d9   :  { %v3376_v46 = vadd.f32 %v2808_v35, %v2531_v38  ;;  %v3388_v50 = vmul.f32 0.35355338, %v394_v45 }
 0x2da   :  { %v579_v37 = vpop.f32.mrf.mxu1 }
 0x2db   :  { %2815 = vmatpush3.xpose.msk.msra.mxu0 %vm598_vm3, %v3345_v34  ;;  %v3380_v47 = vadd.f32 %v2531_v38, %v579_v37 }
 0x2dc   :  { %v2811_v39 = vpop.f32.mrf.mxu1  ;;  %2816 = vmatprep.subr.msk.mxu0 %vm598_vm3, %v3355_v36 }
 0x2dd   :  { %v3364_v40 = vadd.f32 %v2811_v39, %v2531_v38 }
 0x2de   :  { %v589_v42 = vpop.f32.mrf.mxu1 }
 0x2df   :  { %v3368_v43 = vadd.f32 %v2531_v38, %v589_v42  ;;  %2826 = vmatprep.subr.mxu1 %v3364_v40  ;;  %2817 = vmatpush3.xpose.msk.msra.mxu0 %vm598_vm3, %v3355_v36 }
 0x2e0   :  { %2827 = vmatpush3.msra.mxu1 %v3364_v40  ;;  %2818 = vmatprep.subr.msk.mxu0 %vm598_vm3, %v3366_v41 }
 0x2e1   :  { %2828 = vmatprep.subr.mxu1 %v3368_v43 }
 0x2e2   :  { %2829 = vmatpush3.msra.mxu1 %v3368_v43 }
 0x2e3   :  { %2830 = vmatprep.subr.mxu1 %v3376_v46  ;;  %2819 = vmatpush3.xpose.msk.msra.mxu0 %vm598_vm3, %v3366_v41 }
 0x2e4   :  { %2831 = vmatpush3.msra.mxu1 %v3376_v46 }
 0x2e5   :  { %2832 = vmatprep.subr.mxu1 %v3380_v47 }
 0x2e6   :  { %2833 = vmatpush3.msra.mxu1 %v3380_v47  ;;  %2821 = vmatmul.mubr.msk.f32.vlgmr.msra.gmra.mxu0 %vm598_vm3, %v3385_v48 }
 0x2e7   :  { %2823 = vmatprep.mubr.msk.f32.mxu0 %vm598_vm3, %v3388_v50 }
 0x2ea   :  { %2824 = vmatmul.mubr.msk.f32.gmra.mxu0 %vm598_vm3, %v3396_v51 }
 0x3a6   :  { %v2822_v20 = vpop.f32.mrf.mxu0 }
 0x3a7   :  { %v695_v22 = vadd.f32 %v2822_v20, %v3400_v19 }
 0x3a8   :  { %v689_v23 = vpop.f32.mrf.mxu0 }
 0x3a9   :  { %v690_v25 = vadd.f32 %v689_v23, %v3402_v21  ;;  %v711_v26 = vsel %vm220_vm2, %v695_v22, -inf }
 0x3aa   :  { %712 = vmax.xlane.f32.xlu1 %v711_v26  ;;  %v2825_v27 = vpop.f32.mrf.mxu0 }
 0x3ab   :  { %v705_v30 = vadd.f32 %v2825_v27, %v3405_v24  ;;  %v708_v32 = vsel %vm220_vm2, %v690_v25, -inf }
 0x3ac   :  { %709 = vmax.xlane.f32.xlu0 %v708_v32  ;;  %v699_v33 = vpop.f32.mrf.mxu0 }
 0x3ad   :  { %v700_v35 = vadd.f32 %v699_v33, %v3409_v28  ;;  %v717_v37 = vsel %vm220_vm2, %v705_v30, -inf  ;;  %v849_v33 = vld [vmem:[%s3753_s11] sm:$0xff] }
 0x3ae   :  { %718 = vmax.xlane.f32.xlu1 %v717_v37 }
 0x3af   :  { %v714_v38 = vsel %vm220_vm2, %v700_v35, -inf }
 0x3b0   :  { %715 = vmax.xlane.f32.xlu0 %v714_v38 }
 0x433   :  { %v713_v39 = vpop.xlane.xlu1 %712 }
 0x434   :  { %v721_v42 = vsub.f32 %v695_v22, %v713_v39 }
 0x435   :  { %v710_v44 = vpop.xlane.xlu0 %709 }
 0x436   :  { %v726_v45 = vmul.f32 1.442695, %v721_v42  ;;  %v720_v49 = vsub.f32 %v690_v25, %v710_v44 }
 0x437   :  { %v719_v52 = vpop.xlane.xlu1 %718 }
 0x438   :  { %3018 = vpow2.f32 %v726_v45  ;;  %v724_v53 = vmul.f32 1.442695, %v720_v49  ;;  %v723_v54 = vsub.f32 %v705_v30, %v719_v52 }
 0x439   :  { %v716_v55 = vpop.xlane.xlu0 %715 }
 0x43a   :  { %3020 = vpow2.f32 %v724_v53  ;;  %v730_v56 = vmul.f32 1.442695, %v723_v54  ;;  %v722_v57 = vsub.f32 %v700_v35, %v716_v55 }
 0x43c   :  { %3022 = vpow2.f32 %v730_v56  ;;  %v728_v58 = vmul.f32 1.442695, %v722_v57 }
 0x43e   :  { %3024 = vpow2.f32 %v728_v58 }
 0x445   :  { %v3019_v59 = vpop.eup %3018 }
 0x446   :  { %v735_v60 = vsel %vm220_vm2, %v3019_v59, 0.0 }
 0x447   :  { %v3021_v61 = vpop.eup %3020  ;;  %736 = vadd.xlane.f32.xlu1 %v735_v60 }
 0x448   :  { %v732_v62 = vsel %vm220_vm2, %v3021_v61, 0.0 }
 0x449   :  { %v3023_v63 = vpop.eup %3022  ;;  %733 = vadd.xlane.f32.xlu0 %v732_v62 }
 0x44a   :  { %v741_v0 = vsel %vm220_vm2, %v3023_v63, 0.0 }
 0x44b   :  { %v3025_v1 = vpop.eup %3024  ;;  %742 = vadd.xlane.f32.xlu1 %v741_v0 }
 0x44c   :  { %v738_v2 = vsel %vm220_vm2, %v3025_v1, 0.0 }
 0x44d   :  { %739 = vadd.xlane.f32.xlu0 %v738_v2 }
 0x45c   :  { %862 = vrot.lane.b32.xlu1 %v3345_v34, %s3099_s10 }
 0x460   :  { %860 = vrot.lane.b32.xlu1 %v3355_v36, %s3099_s10 }
 0x463   :  { %864 = vrot.lane.b32.xlu0 %v3343_v31, %s3099_s10 }
 0x464   :  { %858 = vrot.lane.b32.xlu1 %v3366_v41, %s3099_s10 }
 0x467   :  { %850 = vrot.lane.b32.xlu0 %v3341_v29, %s3099_s10 }
 0x468   :  { %852 = vrot.lane.b32.xlu1 %v3385_v48, %s3099_s10 }
 0x46b   :  { %854 = vrot.lane.b32.xlu0 %v3388_v50, %s3099_s10 }
 0x46c   :  { %856 = vrot.lane.b32.xlu1 %v3396_v51, %s3099_s10 }
 0x4d0   :  { %v737_v3 = vpop.xlane.xlu1 %736 }
 0x4d1   :  { %3026 = vrcp.f32 %v737_v3 }
 0x4d2   :  { %v734_v4 = vpop.xlane.xlu0 %733 }
 0x4d3   :  { %3028 = vrcp.f32 %v734_v4 }
 0x4d4   :  { %v743_v5 = vpop.xlane.xlu1 %742 }
 0x4d5   :  { %3030 = vrcp.f32 %v743_v5 }
 0x4d6   :  { %v740_v6 = vpop.xlane.xlu0 %739 }
 0x4d7   :  { %3032 = vrcp.f32 %v740_v6 }
 0x4d8   :  { %v863_v10 = vpop.permute.xlu1 %862 }
 0x4da   :  { %v865_v7 = vpop.permute.xlu0 %864 }
 0x4db   :  { %2840 = vmatprep.subr.msk.mxu1 %vm598_vm3, %v865_v7 }
 0x4dc   :  { %v861_v20 = vpop.permute.xlu1 %860 }
 0x4de   :  { %v3027_v8 = vpop.eup %3026  ;;  %v851_v25 = vpop.permute.xlu0 %850 }
 0x4df   :  { %v749_v16 = vmul.f32 %v3027_v8, %v3019_v59 }
 0x4e0   :  { %v3029_v12 = vpop.eup %3028  ;;  %v859_v26 = vpop.permute.xlu1 %858 }
 0x4e1   :  { %v748_v13 = vmul.f32 %v3029_v12, %v3021_v61 }
 0x4e2   :  { %v3031_v17 = vpop.eup %3030  ;;  %v855_v30 = vpop.permute.xlu0 %854 }
 0x4e3   :  { %2834 = vmatprep.mubr.msk.f32.mxu1 %vm220_vm2, %v748_v13  ;;  %v751_v23 = vmul.f32 %v3031_v17, %v3023_v63 }
 0x4e4   :  { %v3033_v18 = vpop.eup %3032  ;;  %2835 = vmatmul.mubr.msk.f32.vlgmr.msra.gmra.mxu1 %vm220_vm2, %v749_v16  ;;  %v853_v27 = vpop.permute.xlu1 %852 }
 0x4e5   :  { %2841 = vmatpush3.xpose.msk.msra.mxu1 %vm598_vm3, %v865_v7  ;;  %v750_v22 = vmul.f32 %v3033_v18, %v3025_v1 }
 0x4e6   :  { %2842 = vmatprep.subr.msk.mxu1 %vm598_vm3, %v863_v10 }
 0x4e7   :  { %2837 = vmatprep.mubr.msk.f32.mxu1 %vm220_vm2, %v750_v22 }
 0x4e8   :  { %2838 = vmatmul.mubr.msk.f32.gmra.mxu1 %vm220_vm2, %v751_v23  ;;  %v857_v32 = vpop.permute.xlu1 %856 }
 0x4e9   :  { %2843 = vmatpush3.xpose.msk.msra.mxu1 %vm598_vm3, %v863_v10  ;;  %2848 = vmatprep.mubr.msk.f32.mxu1 %vm598_vm3, %v851_v25 }
 0x4ea   :  { %2844 = vmatprep.subr.msk.mxu1 %vm598_vm3, %v861_v20 }
 0x4ed   :  { %2845 = vmatpush3.xpose.msk.msra.mxu1 %vm598_vm3, %v861_v20 }
 0x4ee   :  { %2846 = vmatprep.subr.msk.mxu1 %vm598_vm3, %v859_v26 }
 0x4f1   :  { %2847 = vmatpush3.xpose.msk.msra.mxu1 %vm598_vm3, %v859_v26 }
 0x4f2   :  { %2876 = vmatprep.subr.mxu1 %v849_v33 }
 0x4f4   :  { %2849 = vmatmul.mubr.msk.f32.vlgmr.msra.gmra.mxu1 %vm598_vm3, %v853_v27  ;;  %v1124_v27 = vld [vmem:[%s3753_s11 + $0x8] sm:$0xff] }
 0x4f5   :  { %2851 = vmatprep.mubr.msk.f32.mxu1 %vm598_vm3, %v855_v30  ;;  %2877 = vmatpush3.msra.mxu1 %v849_v33 }
 0x4f8   :  { %2852 = vmatmul.mubr.msk.f32.gmra.mxu1 %vm598_vm3, %v857_v32 }
 0x5a4   :  { %v2836_v35 = vpop.f32.mrf.mxu1 }
 0x5a6   :  { %v830_v37 = vpop.f32.mrf.mxu1 }
 0x5a7   :  { %2878 = vmatprep.mubr.msk.f32.mxu1 %vm598_vm3, %v830_v37 }
 0x5a8   :  { %v2839_v38 = vpop.f32.mrf.mxu1  ;;  %2879 = vmatmul.mubr.msk.f32.vlgmr.msra.gmra.mxu1 %vm598_vm3, %v2836_v35 }
 0x5aa   :  { %v840_v39 = vpop.f32.mrf.mxu1 }
 0x5ab   :  { %2881 = vmatprep.mubr.msk.f32.mxu1 %vm598_vm3, %v840_v39 }
 0x5ac   :  { %2882 = vmatmul.mubr.msk.f32.gmra.mxu1 %vm598_vm3, %v2839_v38 }
 0x5b4   :  { %v2850_v42 = vpop.f32.mrf.mxu1 }
 0x5b5   :  { %v954_v44 = vadd.f32 %v2850_v42, %v3400_v19 }
 0x5b6   :  { %v948_v45 = vpop.f32.mrf.mxu1 }
 0x5b7   :  { %v949_v49 = vadd.f32 %v948_v45, %v3402_v21  ;;  %v970_v52 = vsel %vm220_vm2, %v954_v44, -inf }
 0x5b8   :  { %971 = vmax.xlane.f32.xlu1 %v970_v52  ;;  %v2853_v53 = vpop.f32.mrf.mxu1 }
 0x5b9   :  { %v967_v54 = vsel %vm220_vm2, %v949_v49, -inf  ;;  %v964_v57 = vadd.f32 %v2853_v53, %v3405_v24 }
 0x5ba   :  { %968 = vmax.xlane.f32.xlu0 %v967_v54  ;;  %v958_v55 = vpop.f32.mrf.mxu1 }
 0x5bb   :  { %v959_v56 = vadd.f32 %v958_v55, %v3409_v28  ;;  %v976_v59 = vsel %vm220_vm2, %v964_v57, -inf }
 0x5bd   :  { %v973_v58 = vsel %vm220_vm2, %v959_v56, -inf }
 0x5be   :  { %974 = vmax.xlane.f32.xlu0 %v973_v58 }
 0x5c2   :  { %977 = vmax.xlane.f32.xlu0 %v976_v59 }
 0x641   :  { %v972_v60 = vpop.xlane.xlu1 %971 }
 0x642   :  { %v980_v61 = vsub.f32 %v954_v44, %v972_v60 }
 0x643   :  { %v969_v62 = vpop.xlane.xlu0 %968 }
 0x644   :  { %v985_v63 = vmul.f32 1.442695, %v980_v61  ;;  %v979_v0 = vsub.f32 %v949_v49, %v969_v62 }
 0x646   :  { %3034 = vpow2.f32 %v985_v63  ;;  %v983_v1 = vmul.f32 1.442695, %v979_v0 }
 0x647   :  { %v975_v2 = vpop.xlane.xlu0 %974 }
 0x648   :  { %3036 = vpow2.f32 %v983_v1  ;;  %v981_v3 = vsub.f32 %v959_v56, %v975_v2 }
 0x64a   :  { %v987_v4 = vmul.f32 1.442695, %v981_v3 }
 0x64b   :  { %v978_v5 = vpop.xlane.xlu0 %977 }
 0x64c   :  { %3038 = vpow2.f32 %v987_v4  ;;  %v982_v6 = vsub.f32 %v964_v57, %v978_v5 }
 0x64e   :  { %v989_v7 = vmul.f32 1.442695, %v982_v6 }
 0x650   :  { %3040 = vpow2.f32 %v989_v7 }
 0x653   :  { %v3035_v8 = vpop.eup %3034 }
 0x654   :  { %v994_v10 = vsel %vm220_vm2, %v3035_v8, 0.0 }
 0x655   :  { %v3037_v12 = vpop.eup %3036  ;;  %995 = vadd.xlane.f32.xlu1 %v994_v10 }
 0x656   :  { %v991_v13 = vsel %vm220_vm2, %v3037_v12, 0.0 }
 0x657   :  { %992 = vadd.xlane.f32.xlu0 %v991_v13 }
 0x659   :  { %v3039_v16 = vpop.eup %3038 }
 0x65a   :  { %v997_v17 = vsel %vm220_vm2, %v3039_v16, 0.0 }
 0x65b   :  { %998 = vadd.xlane.f32.xlu0 %v997_v17 }
 0x65d   :  { %v3041_v18 = vpop.eup %3040 }
 0x65e   :  { %v1000_v20 = vsel %vm220_vm2, %v3041_v18, 0.0 }
 0x65f   :  { %1001 = vadd.xlane.f32.xlu1 %v1000_v20 }
 0x670   :  { %1019 = vrot.lane.b32.xlu1 %v3368_v43, %s3099_s10 }
 0x671   :  { %1021 = vrot.lane.b32.xlu0 %v3364_v40, %s3099_s10 }
 0x674   :  { %1017 = vrot.lane.b32.xlu1 %v3376_v46, %s3099_s10 }
 0x675   :  { %1333 = vrot.lane.b32.xlu0 %v3343_v31, %s3100_s30 }
 0x678   :  { %1015 = vrot.lane.b32.xlu1 %v3380_v47, %s3099_s10 }
 0x679   :  { %1329 = vrot.lane.b32.xlu0 %v3355_v36, %s3100_s30 }
 0x67c   :  { %1331 = vrot.lane.b32.xlu1 %v3345_v34, %s3100_s30 }
 0x67d   :  { %1319 = vrot.lane.b32.xlu0 %v3341_v29, %s3100_s30 }
 0x680   :  { %1327 = vrot.lane.b32.xlu1 %v3366_v41, %s3100_s30 }
 0x681   :  { %1323 = vrot.lane.b32.xlu0 %v3388_v50, %s3100_s30 }
 0x684   :  { %1321 = vrot.lane.b32.xlu1 %v3385_v48, %s3100_s30 }
 0x685   :  { %1705 = vrot.lane.b32.xlu0 %v3343_v31, %s3101_s5 }
 0x688   :  { %1325 = vrot.lane.b32.xlu1 %v3396_v51, %s3100_s30 }
 0x689   :  { %1701 = vrot.lane.b32.xlu0 %v3355_v36, %s3101_s5 }
 0x68c   :  { %1703 = vrot.lane.b32.xlu1 %v3345_v34, %s3101_s5 }
 0x68d   :  { %1691 = vrot.lane.b32.xlu0 %v3341_v29, %s3101_s5 }
 0x690   :  { %1699 = vrot.lane.b32.xlu1 %v3366_v41, %s3101_s5 }
 0x691   :  { %1695 = vrot.lane.b32.xlu0 %v3388_v50, %s3101_s5 }
 0x694   :  { %1693 = vrot.lane.b32.xlu1 %v3385_v48, %s3101_s5 }
 0x698   :  { %1697 = vrot.lane.b32.xlu1 %v3396_v51, %s3101_s5 }
 0x6de   :  { %v996_v36 = vpop.xlane.xlu1 %995 }
 0x6e0   :  { %v993_v31 = vpop.xlane.xlu0 %992 }
 0x6e1   :  { %3042 = vrcp.f32 %v993_v31 }
 0x6e2   :  { %3044 = vrcp.f32 %v996_v36 }
 0x6e4   :  { %v999_v22 = vpop.xlane.xlu0 %998 }
 0x6e5   :  { %3046 = vrcp.f32 %v999_v22 }
 0x6e8   :  { %v1002_v34 = vpop.xlane.xlu1 %1001  ;;  %v1022_v29 = vpop.permute.xlu0 %1021 }
 0x6e9   :  { %3048 = vrcp.f32 %v1002_v34  ;;  %2854 = vmatprep.subr.mxu0 %v1022_v29 }
 0x6ea   :  { %2855 = vmatpush3.msra.mxu0 %v1022_v29 }
 0x6ec   :  { %v1020_v41 = vpop.permute.xlu1 %1019  ;;  %v1334_v35 = vpop.permute.xlu0 %1333 }
 0x6ed   :  { %2856 = vmatprep.subr.mxu0 %v1020_v41 }
 0x6ee   :  { %v3043_v50 = vpop.eup %3042  ;;  %2857 = vmatpush3.msra.mxu0 %v1020_v41 }
 0x6ef   :  { %v1007_v23 = vmul.f32 %v3043_v50, %v3037_v12  ;;  %v3045_v51 = vpop.eup %3044 }
 0x6f0   :  { %v1018_v48 = vpop.permute.xlu1 %1017  ;;  %v1008_v30 = vmul.f32 %v3045_v51, %v3035_v8  ;;  %v1330_v38 = vpop.permute.xlu0 %1329 }
 0x6f1   :  { %2858 = vmatprep.subr.mxu0 %v1018_v48  ;;  %2862 = vmatprep.mubr.msk.f32.mxu0 %vm220_vm2, %v1007_v23 }
 0x6f2   :  { %2859 = vmatpush3.msra.mxu0 %v1018_v48  ;;  %v3047_v25 = vpop.eup %3046 }
 0x6f3   :  { %v1009_v33 = vmul.f32 %v3047_v25, %v3039_v16 }
 0x6f4   :  { %v1016_v26 = vpop.permute.xlu1 %1015  ;;  %v1320_v42 = vpop.permute.xlu0 %1319 }
 0x6f5   :  { %2860 = vmatprep.subr.mxu0 %v1016_v26 }
 0x6f6   :  { %v3049_v32 = vpop.eup %3048  ;;  %2861 = vmatpush3.msra.mxu0 %v1016_v26 }
 0x6f7   :  { %2863 = vmatmul.mubr.msk.f32.vlgmr.msra.gmra.mxu0 %vm220_vm2, %v1008_v30  ;;  %2868 = vmatprep.subr.mxu0 %v1124_v27  ;;  %v1010_v37 = vmul.f32 %v3049_v32, %v3041_v18 }
 0x6f8   :  { %2865 = vmatprep.mubr.msk.f32.mxu0 %vm220_vm2, %v1009_v33  ;;  %2869 = vmatpush3.msra.mxu0 %v1124_v27  ;;  %v1332_v39 = vpop.permute.xlu1 %1331  ;;  %v1324_v53 = vpop.permute.xlu0 %1323 }
 0x6f9   :  { %2884 = vmatprep.subr.msk.mxu0 %vm598_vm3, %v1334_v35 }
 0x6fb   :  { %2866 = vmatmul.mubr.msk.f32.gmra.mxu0 %vm220_vm2, %v1010_v37 }
 0x6fc   :  { %v1328_v49 = vpop.permute.xlu1 %1327  ;;  %v1706_v56 = vpop.permute.xlu0 %1705 }
 0x700   :  { %v1322_v55 = vpop.permute.xlu1 %1321  ;;  %v1702_v58 = vpop.permute.xlu0 %1701 }
 0x704   :  { %v1326_v57 = vpop.permute.xlu1 %1325  ;;  %v1692_v60 = vpop.permute.xlu0 %1691 }
 0x708   :  { %v1704_v59 = vpop.permute.xlu1 %1703  ;;  %v1696_v63 = vpop.permute.xlu0 %1695 }
 0x70c   :  { %v1700_v61 = vpop.permute.xlu1 %1699 }
 0x710   :  { %v1694_v62 = vpop.permute.xlu1 %1693 }
 0x714   :  { %v1698_v0 = vpop.permute.xlu1 %1697 }
 0x7b7   :  { %v2864_v44 = vpop.f32.mrf.mxu0 }
 0x7b9   :  { %v1105_v45 = vpop.f32.mrf.mxu0 }
 0x7ba   :  { %2870 = vmatprep.mubr.msk.f32.mxu0 %vm598_vm3, %v1105_v45 }
 0x7bb   :  { %v2867_v52 = vpop.f32.mrf.mxu0  ;;  %2871 = vmatmul.mubr.msk.f32.vlgmr.msra.gmra.mxu0 %vm598_vm3, %v2864_v44 }
 0x7bc   :  { %2885 = vmatpush3.xpose.msk.msra.mxu0 %vm598_vm3, %v1334_v35 }
 0x7bd   :  { %2886 = vmatprep.subr.msk.mxu0 %vm598_vm3, %v1332_v39  ;;  %v1115_v54 = vpop.f32.mrf.mxu0 }
 0x7be   :  { %2873 = vmatprep.mubr.msk.f32.mxu0 %vm598_vm3, %v1115_v54 }
 0x7bf   :  { %2874 = vmatmul.mubr.msk.f32.gmra.mxu0 %vm598_vm3, %v2867_v52 }
 0x7c0   :  { %2887 = vmatpush3.xpose.msk.msra.mxu0 %vm598_vm3, %v1332_v39  ;;  %2892 = vmatprep.mubr.msk.f32.mxu0 %vm598_vm3, %v1320_v42 }
 0x7c1   :  { %2888 = vmatprep.subr.msk.mxu0 %vm598_vm3, %v1330_v38 }
 0x7c4   :  { %2889 = vmatpush3.xpose.msk.msra.mxu0 %vm598_vm3, %v1330_v38 }
 0x7c5   :  { %2890 = vmatprep.subr.msk.mxu0 %vm598_vm3, %v1328_v49 }
 0x7c8   :  { %2891 = vmatpush3.xpose.msk.msra.mxu0 %vm598_vm3, %v1328_v49 }
 0x7c9   :  { %2920 = vmatprep.subr.msk.mxu0 %vm598_vm3, %v1706_v56 }
 0x7cb   :  { %2893 = vmatmul.mubr.msk.f32.vlgmr.msra.gmra.mxu0 %vm598_vm3, %v1322_v55 }
 0x7cc   :  { %2895 = vmatprep.mubr.msk.f32.mxu0 %vm598_vm3, %v1324_v53  ;;  %2921 = vmatpush3.xpose.msk.msra.mxu0 %vm598_vm3, %v1706_v56 }
 0x7cd   :  { %2922 = vmatprep.subr.msk.mxu0 %vm598_vm3, %v1704_v59 }
 0x7cf   :  { %2896 = vmatmul.mubr.msk.f32.gmra.mxu0 %vm598_vm3, %v1326_v57 }
 0x7d0   :  { %2923 = vmatpush3.xpose.msk.msra.mxu0 %vm598_vm3, %v1704_v59  ;;  %2928 = vmatprep.mubr.msk.f32.mxu0 %vm598_vm3, %v1692_v60 }
 0x7d1   :  { %2924 = vmatprep.subr.msk.mxu0 %vm598_vm3, %v1702_v58 }
 0x7d4   :  { %2925 = vmatpush3.xpose.msk.msra.mxu0 %vm598_vm3, %v1702_v58 }
 0x7d5   :  { %2926 = vmatprep.subr.msk.mxu0 %vm598_vm3, %v1700_v61 }
 0x7d8   :  { %2927 = vmatpush3.xpose.msk.msra.mxu0 %vm598_vm3, %v1700_v61 }
 0x7db   :  { %2929 = vmatmul.mubr.msk.f32.vlgmr.msra.gmra.mxu0 %vm598_vm3, %v1694_v62 }
 0x7dc   :  { %2931 = vmatprep.mubr.msk.f32.mxu0 %vm598_vm3, %v1696_v63 }
 0x7df   :  { %2932 = vmatmul.mubr.msk.f32.gmra.mxu0 %vm598_vm3, %v1698_v0 }
 0x87b   :  { %v3546_v1 = vpop.f32.mrf.mxu0 }
 0x87d   :  { %v3548_v2 = vpop.f32.mrf.mxu0 }
 0x87f   :  { %v3550_v3 = vpop.f32.mrf.mxu0 }
 0x881   :  { %v3552_v4 = vpop.f32.mrf.mxu0 }
 0x88b   :  { %v2894_v5 = vpop.f32.mrf.mxu0 }
 0x88c   :  { %v1423_v6 = vadd.f32 %v2894_v5, %v3400_v19 }
 0x88d   :  { %v1417_v7 = vpop.f32.mrf.mxu0 }
 0x88e   :  { %v1418_v8 = vadd.f32 %v1417_v7, %v3402_v21  ;;  %v1439_v10 = vsel %vm220_vm2, %v1423_v6, -inf }
 0x88f   :  { %1440 = vmax.xlane.f32.xlu1 %v1439_v10  ;;  %v2897_v12 = vpop.f32.mrf.mxu0 }
 0x890   :  { %v1436_v13 = vsel %vm220_vm2, %v1418_v8, -inf  ;;  %v1433_v18 = vadd.f32 %v2897_v12, %v3405_v24 }
 0x891   :  { %1437 = vmax.xlane.f32.xlu0 %v1436_v13  ;;  %v1427_v16 = vpop.f32.mrf.mxu0 }
 0x892   :  { %v1428_v17 = vadd.f32 %v1427_v16, %v3409_v28  ;;  %v1445_v31 = vsel %vm220_vm2, %v1433_v18, -inf }
 0x894   :  { %v1442_v20 = vsel %vm220_vm2, %v1428_v17, -inf }
 0x895   :  { %1443 = vmax.xlane.f32.xlu0 %v1442_v20 }
 0x899   :  { %1446 = vmax.xlane.f32.xlu0 %v1445_v31 }
 0x89b   :  { %v2930_v44 = vpop.f32.mrf.mxu0 }
 0x89c   :  { %v1795_v58 = vadd.f32 %v2930_v44, %v3400_v19 }
 0x89d   :  { %v1789_v45 = vpop.f32.mrf.mxu0 }
 0x89e   :  { %v1790_v52 = vadd.f32 %v1789_v45, %v3402_v21  ;;  %v1811_v60 = vsel %vm220_vm2, %v1795_v58, -inf }
 0x89f   :  { %v2933_v49 = vpop.f32.mrf.mxu0 }
 0x8a0   :  { %v1808_v55 = vsel %vm220_vm2, %v1790_v52, -inf  ;;  %v1805_v56 = vadd.f32 %v2933_v49, %v3405_v24 }
 0x8a1   :  { %v1799_v53 = vpop.f32.mrf.mxu0 }
 0x8a2   :  { %v1800_v54 = vadd.f32 %v1799_v53, %v3409_v28  ;;  %v1817_v59 = vsel %vm220_vm2, %v1805_v56, -inf }
 0x8a4   :  { %v1814_v57 = vsel %vm220_vm2, %v1800_v54, -inf }
 0x918   :  { %v1441_v36 = vpop.xlane.xlu1 %1440 }
 0x919   :  { %v1449_v22 = vsub.f32 %v1423_v6, %v1441_v36 }
 0x91a   :  { %v1438_v34 = vpop.xlane.xlu0 %1437 }
 0x91b   :  { %v1454_v29 = vmul.f32 1.442695, %v1449_v22  ;;  %v1448_v41 = vsub.f32 %v1418_v8, %v1438_v34 }
 0x91d   :  { %3050 = vpow2.f32 %v1454_v29  ;;  %v1452_v50 = vmul.f32 1.442695, %v1448_v41 }
 0x91e   :  { %v1444_v23 = vpop.xlane.xlu0 %1443 }
 0x91f   :  { %3052 = vpow2.f32 %v1452_v50  ;;  %v1450_v48 = vsub.f32 %v1428_v17, %v1444_v23 }
 0x921   :  { %v1456_v51 = vmul.f32 1.442695, %v1450_v48 }
 0x922   :  { %v1447_v25 = vpop.xlane.xlu0 %1446 }
 0x923   :  { %3054 = vpow2.f32 %v1456_v51  ;;  %v1451_v26 = vsub.f32 %v1433_v18, %v1447_v25 }
 0x925   :  { %v1458_v27 = vmul.f32 1.442695, %v1451_v26 }
 0x927   :  { %3056 = vpow2.f32 %v1458_v27 }
 0x92a   :  { %v3051_v30 = vpop.eup %3050 }
 0x92b   :  { %v1463_v32 = vsel %vm220_vm2, %v3051_v30, 0.0 }
 0x92c   :  { %v3053_v33 = vpop.eup %3052  ;;  %1464 = vadd.xlane.f32.xlu1 %v1463_v32 }
 0x92d   :  { %v1460_v35 = vsel %vm220_vm2, %v3053_v33, 0.0 }
 0x92e   :  { %1461 = vadd.xlane.f32.xlu0 %v1460_v35 }
 0x930   :  { %v3055_v37 = vpop.eup %3054 }
 0x931   :  { %v1466_v38 = vsel %vm220_vm2, %v3055_v37, 0.0 }
 0x932   :  { %1467 = vadd.xlane.f32.xlu0 %v1466_v38  ;;  %v2880_v38 = vpop.f32.mrf.mxu1 }
 0x934   :  { %v3057_v39 = vpop.eup %3056 }
 0x935   :  { %v1469_v42 = vsel %vm220_vm2, %v3057_v39, 0.0 }
 0x936   :  { %1470 = vadd.xlane.f32.xlu1 %v1469_v42 }
 0x947   :  { %1484 = vrot.lane.b32.xlu1 %v3368_v43, %s3100_s30 }
 0x948   :  { %1486 = vrot.lane.b32.xlu0 %v3364_v40, %s3100_s30 }
 0x94b   :  { %1482 = vrot.lane.b32.xlu1 %v3376_v46, %s3100_s30 }
 0x94f   :  { %1480 = vrot.lane.b32.xlu1 %v3380_v47, %s3100_s30 }
 0x967   :  { %1809 = vmax.xlane.f32.xlu0 %v1808_v55 }
 0x96b   :  { %1815 = vmax.xlane.f32.xlu0 %v1814_v57 }
 0x96f   :  { %1818 = vmax.xlane.f32.xlu0 %v1817_v59 }
 0x973   :  { %1812 = vmax.xlane.f32.xlu1 %v1811_v60 }
 0x9b5   :  { %v1465_v61 = vpop.xlane.xlu1 %1464 }
 0x9b7   :  { %v1462_v21 = vpop.xlane.xlu0 %1461 }
 0x9b8   :  { %3058 = vrcp.f32 %v1462_v21 }
 0x9b9   :  { %3060 = vrcp.f32 %v1465_v61 }
 0x9bb   :  { %v1468_v28 = vpop.xlane.xlu0 %1467 }
 0x9bc   :  { %3062 = vrcp.f32 %v1468_v28 }
 0x9bf   :  { %v1471_v62 = vpop.xlane.xlu1 %1470  ;;  %v1487_v63 = vpop.permute.xlu0 %1486 }
 0x9c0   :  { %3064 = vrcp.f32 %v1471_v62  ;;  %2898 = vmatprep.subr.mxu1 %v1487_v63 }
 0x9c1   :  { %2899 = vmatpush3.msra.mxu1 %v1487_v63 }
 0x9c3   :  { %v1485_v24 = vpop.permute.xlu1 %1484 }
 0x9c4   :  { %2900 = vmatprep.subr.mxu1 %v1485_v24 }
 0x9c5   :  { %v3059_v19 = vpop.eup %3058  ;;  %2901 = vmatpush3.msra.mxu1 %v1485_v24  ;;  %v1961_v24 = vld [vmem:[%s3753_s11 + $0x18] sm:$0xff] }
 0x9c6   :  { %v1476_v0 = vmul.f32 %v3059_v19, %v3053_v33  ;;  %v3061_v6 = vpop.eup %3060  ;;  %v1589_v33 = vld [vmem:[%s3753_s11 + $0x10] sm:$0xff]  ;;  %v1306_v19 = vadd.f32 %v2880_v38, %v3546_v1 }
 0x9c7   :  { %v1483_v5 = vpop.permute.xlu1 %1482  ;;  %v1477_v10 = vmul.f32 %v3061_v6, %v3051_v30 }
 0x9c8   :  { %2902 = vmatprep.subr.mxu1 %v1483_v5  ;;  %2906 = vmatprep.mubr.msk.f32.mxu1 %vm220_vm2, %v1476_v0 }
 0x9c9   :  { %2903 = vmatpush3.msra.mxu1 %v1483_v5  ;;  %v3063_v7 = vpop.eup %3062 }
 0x9ca   :  { %v1478_v13 = vmul.f32 %v3063_v7, %v3055_v37 }
 0x9cb   :  { %v1481_v8 = vpop.permute.xlu1 %1480 }
 0x9cc   :  { %2904 = vmatprep.subr.mxu1 %v1481_v8 }
 0x9cd   :  { %v3065_v12 = vpop.eup %3064  ;;  %2905 = vmatpush3.msra.mxu1 %v1481_v8 }
 0x9ce   :  { %2907 = vmatmul.mubr.msk.f32.vlgmr.msra.gmra.mxu1 %vm220_vm2, %v1477_v10  ;;  %v1479_v16 = vmul.f32 %v3065_v12, %v3057_v39  ;;  %2912 = vmatprep.subr.mxu1 %v1589_v33  ;;  %v1300_v39 = vpop.f32.mrf.mxu1 }
 0x9cf   :  { %2909 = vmatprep.mubr.msk.f32.mxu1 %vm220_vm2, %v1478_v13  ;;  %2913 = vmatpush3.msra.mxu1 %v1589_v33  ;;  %v1301_v5 = vadd.f32 %v1300_v39, %v3548_v2 }
 0x9d0   :  { %v2883_v42 = vpop.f32.mrf.mxu1 }
 0x9d1   :  { %v1316_v8 = vadd.f32 %v2883_v42, %v3550_v3 }
 0x9d2   :  { %2910 = vmatmul.mubr.msk.f32.gmra.mxu1 %vm220_vm2, %v1479_v16  ;;  %v1310_v44 = vpop.f32.mrf.mxu1 }
 0x9d3   :  { %v1311_v13 = vadd.f32 %v1310_v44, %v3552_v4  ;;  %v2600_v4 = vld [vmem:[%s3754_s12] ss:$0 sm:$0xff] }
 0x9f0   :  { %v1810_v17 = vpop.xlane.xlu0 %1809 }
 0x9f1   :  { %v1820_v18 = vsub.f32 %v1790_v52, %v1810_v17 }
 0x9f3   :  { %v1824_v20 = vmul.f32 1.442695, %v1820_v18 }
 0x9f4   :  { %v1816_v31 = vpop.xlane.xlu0 %1815 }
 0x9f5   :  { %3066 = vpow2.f32 %v1824_v20  ;;  %v1822_v36 = vsub.f32 %v1800_v54, %v1816_v31 }
 0x9f7   :  { %v1828_v22 = vmul.f32 1.442695, %v1822_v36 }
 0x9f8   :  { %v1819_v34 = vpop.xlane.xlu0 %1818 }
 0x9f9   :  { %3068 = vpow2.f32 %v1828_v22  ;;  %v1823_v29 = vsub.f32 %v1805_v56, %v1819_v34 }
 0x9fb   :  { %v1830_v23 = vmul.f32 1.442695, %v1823_v29 }
 0x9fc   :  { %v1813_v41 = vpop.xlane.xlu1 %1812 }
 0x9fd   :  { %v1821_v50 = vsub.f32 %v1795_v58, %v1813_v41 }
 0x9ff   :  { %v1826_v48 = vmul.f32 1.442695, %v1821_v50 }
 0xa01   :  { %3070 = vpow2.f32 %v1826_v48 }
 0xa02   :  { %v3067_v51 = vpop.eup %3066  ;;  %3072 = vpow2.f32 %v1830_v23 }
 0xa03   :  { %v1832_v25 = vsel %vm220_vm2, %v3067_v51, 0.0 }
 0xa04   :  { %1833 = vadd.xlane.f32.xlu0 %v1832_v25 }
 0xa06   :  { %v3069_v26 = vpop.eup %3068 }
 0xa07   :  { %v1838_v27 = vsel %vm220_vm2, %v3069_v26, 0.0 }
 0xa08   :  { %1839 = vadd.xlane.f32.xlu0 %v1838_v27 }
 0xa0e   :  { %v3071_v30 = vpop.eup %3070 }
 0xa0f   :  { %v1835_v32 = vsel %vm220_vm2, %v3071_v30, 0.0  ;;  %v3073_v35 = vpop.eup %3072 }
 0xa10   :  { %1836 = vadd.xlane.f32.xlu1 %v1835_v32  ;;  %v1841_v37 = vsel %vm220_vm2, %v3073_v35, 0.0 }
 0xa14   :  { %1842 = vadd.xlane.f32.xlu1 %v1841_v37 }
 0xa1e   :  { %1858 = vrot.lane.b32.xlu0 %v3364_v40, %s3101_s5 }
 0xa25   :  { %1856 = vrot.lane.b32.xlu1 %v3368_v43, %s3101_s5 }
 0xa29   :  { %1854 = vrot.lane.b32.xlu1 %v3376_v46, %s3101_s5 }
 0xa2d   :  { %1852 = vrot.lane.b32.xlu1 %v3380_v47, %s3101_s5 }
 0xa8d   :  { %v1834_v45 = vpop.xlane.xlu0 %1833 }
 0xa8e   :  { %3074 = vrcp.f32 %v1834_v45  ;;  %v2908_v49 = vpop.f32.mrf.mxu1 }
 0xa90   :  { %v1570_v52 = vpop.f32.mrf.mxu1 }
 0xa91   :  { %2914 = vmatprep.mubr.msk.f32.mxu1 %vm598_vm3, %v1570_v52  ;;  %v1840_v40 = vpop.xlane.xlu0 %1839 }
 0xa92   :  { %v2911_v53 = vpop.f32.mrf.mxu1  ;;  %2915 = vmatmul.mubr.msk.f32.vlgmr.msra.gmra.mxu1 %vm598_vm3, %v2908_v49 }
 0xa94   :  { %v1580_v43 = vpop.f32.mrf.mxu1 }
 0xa95   :  { %2917 = vmatprep.mubr.msk.f32.mxu1 %vm598_vm3, %v1580_v43  ;;  %v1859_v46 = vpop.permute.xlu0 %1858 }
 0xa96   :  { %2918 = vmatmul.mubr.msk.f32.gmra.mxu1 %vm598_vm3, %v2911_v53  ;;  %2934 = vmatprep.subr.mxu1 %v1859_v46 }
 0xa97   :  { %2935 = vmatpush3.msra.mxu1 %v1859_v46 }
 0xa99   :  { %v1837_v47 = vpop.xlane.xlu1 %1836 }
 0xa9a   :  { %3076 = vrcp.f32 %v1837_v47 }
 0xa9b   :  { %v3075_v54 = vpop.eup %3074  ;;  %3078 = vrcp.f32 %v1840_v40 }
 0xa9c   :  { %v1848_v55 = vmul.f32 %v3075_v54, %v3067_v51 }
 0xa9d   :  { %v1843_v56 = vpop.xlane.xlu1 %1842 }
 0xa9e   :  { %3080 = vrcp.f32 %v1843_v56  ;;  %2942 = vmatprep.mubr.msk.f32.mxu1 %vm220_vm2, %v1848_v55 }
 0xaa1   :  { %v1857_v57 = vpop.permute.xlu1 %1856 }
 0xaa2   :  { %2936 = vmatprep.subr.mxu1 %v1857_v57 }
 0xaa3   :  { %2937 = vmatpush3.msra.mxu1 %v1857_v57 }
 0xaa5   :  { %v1855_v58 = vpop.permute.xlu1 %1854 }
 0xaa6   :  { %2938 = vmatprep.subr.mxu1 %v1855_v58 }
 0xaa7   :  { %v3077_v59 = vpop.eup %3076  ;;  %2939 = vmatpush3.msra.mxu1 %v1855_v58 }
 0xaa8   :  { %v3079_v60 = vpop.eup %3078  ;;  %v1849_v61 = vmul.f32 %v3077_v59, %v3071_v30 }
 0xaa9   :  { %v1853_v21 = vpop.permute.xlu1 %1852  ;;  %v1850_v62 = vmul.f32 %v3079_v60, %v3069_v26  ;;  %v2155_v60 = vld [vmem:[%s3755_s15 + $0x18] sm:$0xff] }
 0xaaa   :  { %2940 = vmatprep.subr.mxu1 %v1853_v21  ;;  %2956 = vmatprep.subr.mxu0 %v2155_v60 }
 0xaab   :  { %v3081_v28 = vpop.eup %3080  ;;  %2941 = vmatpush3.msra.mxu1 %v1853_v21  ;;  %v2154_v21 = vld [vmem:[%s3755_s15 + $0x10] sm:$0xff]  ;;  %2957 = vmatpush3.msra.mxu0 %v2155_v60 }
 0xaac   :  { %2943 = vmatmul.mubr.msk.f32.vlgmr.msra.gmra.mxu1 %vm220_vm2, %v1849_v61  ;;  %v1851_v63 = vmul.f32 %v3081_v28, %v3073_v35  ;;  %2948 = vmatprep.subr.mxu1 %v1961_v24  ;;  %v2153_v61 = vld [vmem:[%s3755_s15 + $0x8] sm:$0xff]  ;;  %v2152_v28 = vld [vmem:[%s3755_s15] sm:$0xff] }
 0xaad   :  { %2945 = vmatprep.mubr.msk.f32.mxu1 %vm220_vm2, %v1850_v62  ;;  %2949 = vmatpush3.msra.mxu1 %v1961_v24 }
 0xaae   :  { %2958 = vmatprep.subr.mxu0 %v2154_v21 }
 0xaaf   :  { %2959 = vmatpush3.msra.mxu0 %v2154_v21 }
 0xab0   :  { %2946 = vmatmul.mubr.msk.f32.gmra.mxu1 %vm220_vm2, %v1851_v63  ;;  %2960 = vmatprep.subr.mxu0 %v2153_v61 }
 0xab1   :  { %2961 = vmatpush3.msra.mxu0 %v2153_v61 }
 0xab2   :  { %2962 = vmatprep.subr.mxu0 %v2152_v28 }
 0xab3   :  { %2963 = vmatpush3.msra.mxu0 %v2152_v28 }
 0xb52   :  { %v2916_v0 = vpop.f32.mrf.mxu1 }
 0xb53   :  { %v1688_v6 = vadd.f32 %v2916_v0, %v1306_v19 }
 0xb54   :  { %v1668_v7 = vpop.f32.mrf.mxu1 }
 0xb55   :  { %v1687_v10 = vadd.f32 %v1668_v7, %v1301_v5 }
 0xb56   :  { %v2919_v12 = vpop.f32.mrf.mxu1 }
 0xb57   :  { %v1690_v16 = vadd.f32 %v2919_v12, %v1316_v8 }
 0xb58   :  { %v1678_v17 = vpop.f32.mrf.mxu1 }
 0xb59   :  { %v1689_v18 = vadd.f32 %v1678_v17, %v1311_v13 }
 0xb6c   :  { %v2944_v20 = vpop.f32.mrf.mxu1 }
 0xb6e   :  { %v1942_v31 = vpop.f32.mrf.mxu1 }
 0xb6f   :  { %2950 = vmatprep.mubr.msk.f32.mxu1 %vm598_vm3, %v1942_v31 }
 0xb70   :  { %v2947_v36 = vpop.f32.mrf.mxu1  ;;  %2951 = vmatmul.mubr.msk.f32.vlgmr.msra.gmra.mxu1 %vm598_vm3, %v2944_v20 }
 0xb72   :  { %v1952_v1 = vpop.f32.mrf.mxu1 }
 0xb73   :  { %2953 = vmatprep.mubr.msk.f32.mxu1 %vm598_vm3, %v1952_v1  ;;  %v2602_v1 = vld [vmem:[%s3757_s14] ss:$0 sm:$0xff] }
 0xb74   :  { %2954 = vmatmul.mubr.msk.f32.gmra.mxu1 %vm598_vm3, %v2947_v36 }
 0xc30   :  { %v2952_v2 = vpop.f32.mrf.mxu1 }
 0xc31   :  { %v2060_v3 = vadd.f32 %v2952_v2, %v1688_v6 }
 0xc32   :  { %v2040_v22 = vpop.f32.mrf.mxu1 }
 0xc33   :  { %v2064_v34 = vadd.f32 %v2060_v3, %v3239_v11  ;;  %v2059_v29 = vadd.f32 %v2040_v22, %v1687_v10 }
 0xc34   :  { %v2955_v41 = vpop.f32.mrf.mxu1 }
 0xc35   :  { %v3624_v50 = vadd.f32 %v2600_v4, %v2064_v34  ;;  %v2063_v23 = vadd.f32 %v2059_v29, %v3237_v9  ;;  %v2062_v48 = vadd.f32 %v2955_v41, %v1690_v16 }
 0xc36   :  { %v2050_v51 = vpop.f32.mrf.mxu1 }
 0xc37   :  { %v3627_v25 = vadd.f32 %v2600_v4, %v2063_v23  ;;  %v2061_v26 = vadd.f32 %v2050_v51, %v1689_v18  ;;  %v2083_v27 = vsel %vm220_vm2, %v3624_v50, 0.0  ;;  %v2066_v30 = vadd.f32 %v2062_v48, %v3245_v15  ;;  %v2601_v18 = vld [vmem:[%s3756_s13] ss:$0 sm:$0xff] }
 0xc38   :  { %2084 = vadd.xlane.f32.xlu1 %v2083_v27  ;;  %v2287_v27 = vld [vmem:[%s3758_s17 + $0x38] sm:$0xff] }
 0xc39   :  { %v2065_v32 = vadd.f32 %v2061_v26, %v3243_v14  ;;  %v2080_v11 = vsel %vm220_vm2, %v3627_v25, 0.0  ;;  %v3637_v9 = vadd.f32 %v2600_v4, %v2066_v30  ;;  %2970 = vmatprep.subr.mxu1 %v2287_v27  ;;  %v2286_v30 = vld [vmem:[%s3758_s17 + $0x30] sm:$0xff] }
 0xc3a   :  { %2081 = vadd.xlane.f32.xlu0 %v2080_v11  ;;  %2971 = vmatpush3.msra.mxu1 %v2287_v27  ;;  %v2284_v11 = vld [vmem:[%s3758_s17 + $0x20] sm:$0xff] }
 0xc3b   :  { %v3635_v33 = vadd.f32 %v2600_v4, %v2065_v32  ;;  %v2089_v37 = vsel %vm220_vm2, %v3637_v9, 0.0  ;;  %2972 = vmatprep.subr.mxu1 %v2286_v30  ;;  %v2285_v32 = vld [vmem:[%s3758_s17 + $0x28] sm:$0xff] }
 0xc3c   :  { %2973 = vmatpush3.msra.mxu1 %v2286_v30 }
 0xc3d   :  { %v2086_v35 = vsel %vm220_vm2, %v3635_v33, 0.0  ;;  %2974 = vmatprep.subr.mxu1 %v2285_v32 }
 0xc3e   :  { %2087 = vadd.xlane.f32.xlu0 %v2086_v35  ;;  %2975 = vmatpush3.msra.mxu1 %v2285_v32  ;;  %v2283_v35 = vld [vmem:[%s3758_s17 + $0x18] sm:$0xff] }
 0xc3f   :  { %2976 = vmatprep.subr.mxu1 %v2284_v11 }
 0xc40   :  { %2977 = vmatpush3.msra.mxu1 %v2284_v11 }
 0xc41   :  { %2978 = vmatprep.subr.mxu1 %v2283_v35 }
 0xc42   :  { %2090 = vadd.xlane.f32.xlu0 %v2089_v37  ;;  %2979 = vmatpush3.msra.mxu1 %v2283_v35  ;;  %v2282_v37 = vld [vmem:[%s3758_s17 + $0x10] sm:$0xff] }
 0xc43   :  { %2980 = vmatprep.subr.mxu1 %v2282_v37 }
 0xc44   :  { %2981 = vmatpush3.msra.mxu1 %v2282_v37 }
 0xcc1   :  { %v2085_v38 = vpop.xlane.xlu1 %2084 }
 0xcc2   :  { %v2093_v15 = vmul.f32 0.03125, %v2085_v38  ;;  %v2281_v38 = vld [vmem:[%s3758_s17 + $0x8] sm:$0xff] }
 0xcc3   :  { %v2082_v39 = vpop.xlane.xlu0 %2081  ;;  %2982 = vmatprep.subr.mxu1 %v2281_v38 }
 0xcc4   :  { %v2097_v14 = vsub.f32 %v3624_v50, %v2093_v15  ;;  %v2092_v42 = vmul.f32 0.03125, %v2082_v39  ;;  %2983 = vmatpush3.msra.mxu1 %v2281_v38  ;;  %v2280_v15 = vld [vmem:[%s3758_s17] sm:$0xff] }
 0xcc5   :  { %2984 = vmatprep.subr.mxu1 %v2280_v15  ;;  %v2603_v39 = vld [vmem:[%s3759_s16] ss:$0 sm:$0xff] }
 0xcc6   :  { %v2096_v44 = vsub.f32 %v3627_v25, %v2092_v42  ;;  %v2101_v45 = vmul.f32 %v2097_v14, %v2097_v14  ;;  %2985 = vmatpush3.msra.mxu1 %v2280_v15 }
 0xcc7   :  { %v2088_v49 = vpop.xlane.xlu0 %2087 }
 0xcc8   :  { %v2094_v52 = vmul.f32 0.03125, %v2088_v49  ;;  %v2107_v40 = vsel %vm220_vm2, %v2101_v45, 0.0  ;;  %v2100_v53 = vmul.f32 %v2096_v44, %v2096_v44 }
 0xcc9   :  { %2108 = vadd.xlane.f32.xlu1 %v2107_v40 }
 0xcca   :  { %v2098_v43 = vsub.f32 %v3635_v33, %v2094_v52  ;;  %v2104_v46 = vsel %vm220_vm2, %v2100_v53, 0.0 }
 0xccb   :  { %2105 = vadd.xlane.f32.xlu0 %v2104_v46  ;;  %v2091_v47 = vpop.xlane.xlu0 %2090 }
 0xccc   :  { %v2095_v54 = vmul.f32 0.03125, %v2091_v47  ;;  %v2102_v55 = vmul.f32 %v2098_v43, %v2098_v43 }
 0xcce   :  { %v2099_v56 = vsub.f32 %v3637_v9, %v2095_v54  ;;  %v2110_v57 = vsel %vm220_vm2, %v2102_v55, 0.0 }
 0xccf   :  { %2111 = vadd.xlane.f32.xlu0 %v2110_v57 }
 0xcd0   :  { %v2103_v58 = vmul.f32 %v2099_v56, %v2099_v56 }
 0xcd2   :  { %v2113_v59 = vsel %vm220_vm2, %v2103_v58, 0.0 }
 0xcd3   :  { %2114 = vadd.xlane.f32.xlu1 %v2113_v59 }
 0xd52   :  { %v2109_v62 = vpop.xlane.xlu1 %2108 }
 0xd53   :  { %v2117_v63 = vmul.f32 0.03125, %v2109_v62 }
 0xd54   :  { %v2106_v24 = vpop.xlane.xlu0 %2105 }
 0xd55   :  { %v2121_v19 = vadd.f32 1e-05, %v2117_v63  ;;  %v2116_v0 = vmul.f32 0.03125, %v2106_v24 }
 0xd57   :  { %3082 = vrsqrt.f32 %v2121_v19  ;;  %v2120_v5 = vadd.f32 1e-05, %v2116_v0 }
 0xd58   :  { %v2112_v6 = vpop.xlane.xlu0 %2111 }
 0xd59   :  { %3084 = vrsqrt.f32 %v2120_v5  ;;  %v2118_v7 = vmul.f32 0.03125, %v2112_v6 }
 0xd5b   :  { %v2122_v8 = vadd.f32 1e-05, %v2118_v7  ;;  %v2400_v7 = vld [vmem:[%s3760_s19 + $0x18] sm:$0xff] }
 0xd5c   :  { %v2115_v10 = vpop.xlane.xlu1 %2114  ;;  %2992 = vmatprep.subr.mxu0 %v2400_v7 }
 0xd5d   :  { %3086 = vrsqrt.f32 %v2122_v8  ;;  %v2119_v12 = vmul.f32 0.03125, %v2115_v10  ;;  %v2399_v8 = vld [vmem:[%s3760_s19 + $0x10] sm:$0xff]  ;;  %v2398_v10 = vld [vmem:[%s3760_s19 + $0x8] sm:$0xff] }
 0xd5f   :  { %v2123_v13 = vadd.f32 1e-05, %v2119_v12  ;;  %v2397_v12 = vld [vmem:[%s3760_s19] sm:$0xff] }
 0xd61   :  { %3088 = vrsqrt.f32 %v2123_v13  ;;  %v2608_v13 = vld [vmem:[%s3761_s18] ss:$0 sm:$0xff] }
 0xd64   :  { %v3083_v16 = vpop.eup %3082 }
 0xd65   :  { %v2129_v17 = vmul.f32 %v3083_v16, %v2097_v14 }
 0xd66   :  { %v3085_v20 = vpop.eup %3084 }
 0xd67   :  { %v2128_v31 = vmul.f32 %v3085_v20, %v2096_v44  ;;  %v2139_v36 = vmul.f32 %v2601_v18, %v2129_v17 }
 0xd69   :  { %v2138_v2 = vmul.f32 %v2601_v18, %v2128_v31  ;;  %v2149_v34 = vadd.f32 %v2602_v1, %v2139_v36 }
 0xd6a   :  { %v3087_v3 = vpop.eup %3086 }
 0xd6b   :  { %v2148_v4 = vadd.f32 %v2602_v1, %v2138_v2  ;;  %v2130_v22 = vmul.f32 %v3087_v3, %v2098_v43 }
 0xd6d   :  { %2964 = vmatprep.mubr.msk.f32.mxu0 %vm220_vm2, %v2148_v4  ;;  %v2140_v29 = vmul.f32 %v2601_v18, %v2130_v22 }
 0xd6e   :  { %v3089_v41 = vpop.eup %3088  ;;  %2965 = vmatmul.mubr.msk.f32.vlgmr.msra.gmra.mxu0 %vm220_vm2, %v2149_v34 }
 0xd6f   :  { %v2150_v23 = vadd.f32 %v2602_v1, %v2140_v29  ;;  %v2131_v48 = vmul.f32 %v3089_v41, %v2099_v56  ;;  %2993 = vmatpush3.msra.mxu0 %v2400_v7 }
 0xd70   :  { %2994 = vmatprep.subr.mxu0 %v2399_v8 }
 0xd71   :  { %2967 = vmatprep.mubr.msk.f32.mxu0 %vm220_vm2, %v2150_v23  ;;  %v2141_v51 = vmul.f32 %v2601_v18, %v2131_v48  ;;  %2995 = vmatpush3.msra.mxu0 %v2399_v8 }
 0xd72   :  { %2996 = vmatprep.subr.mxu0 %v2398_v10 }
 0xd73   :  { %v2151_v26 = vadd.f32 %v2602_v1, %v2141_v51  ;;  %2997 = vmatpush3.msra.mxu0 %v2398_v10 }
 0xd74   :  { %2998 = vmatprep.subr.mxu0 %v2397_v12 }
 0xd75   :  { %2968 = vmatmul.mubr.msk.f32.gmra.mxu0 %vm220_vm2, %v2151_v26 }
 0xd76   :  { %2999 = vmatpush3.msra.mxu0 %v2397_v12 }
 0xe2e   :  { %v2966_v14 = vpop.f32.mrf.mxu0 }
 0xe2f   :  { %v2247_v42 = vadd.f32 %v2966_v14, %v2603_v39 }
 0xe30   :  { %v2241_v44 = vpop.f32.mrf.mxu0 }
 0xe31   :  { %v2265_v45 = vmul.f32 0.70710677, %v2247_v42  ;;  %v2242_v49 = vadd.f32 %v2603_v39, %v2241_v44  ;;  %v2261_v60 = vmul.f32 0.5, %v2247_v42 }
 0xe33   :  { %3090 = verf.f32 %v2265_v45  ;;  %v2264_v52 = vmul.f32 0.70710677, %v2242_v49  ;;  %v2260_v58 = vmul.f32 0.5, %v2242_v49 }
 0xe35   :  { %3092 = verf.f32 %v2264_v52  ;;  %v2969_v40 = vpop.f32.mrf.mxu0 }
 0xe36   :  { %v2257_v53 = vadd.f32 %v2969_v40, %v2603_v39 }
 0xe37   :  { %v2251_v43 = vpop.f32.mrf.mxu0 }
 0xe38   :  { %v2267_v46 = vmul.f32 0.70710677, %v2257_v53  ;;  %v2252_v47 = vadd.f32 %v2603_v39, %v2251_v43  ;;  %v2263_v0 = vmul.f32 0.5, %v2257_v53 }
 0xe3a   :  { %3094 = verf.f32 %v2267_v46  ;;  %v2266_v54 = vmul.f32 0.70710677, %v2252_v47  ;;  %v2262_v24 = vmul.f32 0.5, %v2252_v47 }
 0xe3c   :  { %3096 = verf.f32 %v2266_v54 }
 0xe40   :  { %v3091_v55 = vpop.eup %3090 }
 0xe41   :  { %v2273_v57 = vadd.f32 1.0, %v3091_v55 }
 0xe42   :  { %v3093_v56 = vpop.eup %3092 }
 0xe43   :  { %v2272_v59 = vadd.f32 1.0, %v3093_v56  ;;  %v2277_v61 = vmul.f32 %v2273_v57, %v2261_v60 }
 0xe45   :  { %v2276_v21 = vmul.f32 %v2272_v59, %v2260_v58 }
 0xe47   :  { %v3095_v28 = vpop.eup %3094  ;;  %2986 = vmatprep.mubr.msk.f32.mxu1 %vm2295_vm8, %v2276_v21 }
 0xe48   :  { %2987 = vmatmul.mubr.msk.f32.vlgmr.msra.gmra.mxu1 %vm2295_vm8, %v2277_v61  ;;  %v2275_v63 = vadd.f32 1.0, %v3095_v28 }
 0xe49   :  { %v3097_v62 = vpop.eup %3096 }
 0xe4a   :  { %v2274_v19 = vadd.f32 1.0, %v3097_v62  ;;  %v2279_v6 = vmul.f32 %v2275_v63, %v2263_v0 }
 0xe4c   :  { %v2278_v5 = vmul.f32 %v2274_v19, %v2262_v24 }
 0xe4e   :  { %2989 = vmatprep.mubr.msk.f32.mxu1 %vm2295_vm8, %v2278_v5 }
 0xe4f   :  { %2990 = vmatmul.mubr.msk.f32.gmra.mxu1 %vm2295_vm8, %v2279_v6 }
 0xf08   :  { %v2988_v16 = vpop.f32.mrf.mxu1 }
 0xf09   :  { %v2380_v17 = vadd.f32 %v2988_v16, %v2608_v13 }
 0xf0a   :  { %v2374_v18 = vpop.f32.mrf.mxu1 }
 0xf0b   :  { %v2375_v20 = vadd.f32 %v2608_v13, %v2374_v18  ;;  %v2394_v36 = vadd.f32 %v2380_v17, %v3624_v50  ;;  %v2613_v50 = vld [vmem:[%s3762_s20] ss:$0 sm:$0xff] }
 0xf0d   :  { %v2393_v31 = vadd.f32 %v2375_v20, %v3627_v25 }
 0xf0f   :  { %v2991_v1 = vpop.f32.mrf.mxu1  ;;  %3000 = vmatprep.mubr.msk.f32.mxu0 %vm220_vm2, %v2393_v31 }
 0xf10   :  { %3001 = vmatmul.mubr.msk.f32.vlgmr.msra.gmra.mxu0 %vm220_vm2, %v2394_v36  ;;  %v2390_v2 = vadd.f32 %v2991_v1, %v2608_v13 }
 0xf11   :  { %v2384_v3 = vpop.f32.mrf.mxu1 }
 0xf12   :  { %v2385_v4 = vadd.f32 %v2608_v13, %v2384_v3  ;;  %v2396_v34 = vadd.f32 %v2390_v2, %v3637_v9 }
 0xf14   :  { %v2395_v22 = vadd.f32 %v2385_v4, %v3635_v33 }
 0xf16   :  { %3003 = vmatprep.mubr.msk.f32.mxu0 %vm220_vm2, %v2395_v22 }
 0xf17   :  { %3004 = vmatmul.mubr.msk.f32.gmra.mxu0 %vm220_vm2, %v2396_v34 }
 0xfd0   :  { %v3002_v25 = vpop.f32.mrf.mxu0 }
 0xfd1   :  { %v2492_v29 = vadd.f32 %v3002_v25, %v2613_v50 }
 0xfd2   :  { %v2486_v41 = vpop.f32.mrf.mxu0 }
 0xfd3   :  { %2506 = vst.msk [vmem:[%s3763_s21 + $0x8] sm:$0xff] %vm81_vm1, %v2492_v29  ;;  %v2487_v23 = vadd.f32 %v2613_v50, %v2486_v41 }
 0xfd5   :  { %2505 = vst.msk [vmem:[%s3763_s21] sm:$0xff] %vm81_vm1, %v2487_v23 }
 0xfd7   :  { %v3005_v33 = vpop.f32.mrf.mxu0 }
 0xfd8   :  { %v2502_v9 = vadd.f32 %v3005_v33, %v2613_v50 }
 0xfd9   :  { %v2496_v48 = vpop.f32.mrf.mxu0 }
 0xfda   :  { %2508 = vst.msk [vmem:[%s3763_s21 + $0x18] sm:$0xff] %vm81_vm1, %v2502_v9  ;;  %v2497_v51 = vadd.f32 %v2613_v50, %v2496_v48 }
 0xfdc   :  { %2507 = vst.msk [vmem:[%s3763_s21 + $0x10] sm:$0xff] %vm81_vm1, %v2497_v51 }

// kernel: spec_tnt_forward.3
= control target key start
LH: loop header
LB: loop body
LE: loop exit
PB: predicated region body
PF: predicated region fallthrough
CT: control target
= control target key end

     0   :  { %vm109_vm0 = vcmask 1043456   ;;  %vm84_vm1 = vcmask 31744   ;;  %vm283_vm2 = vcmask 261120   ;;  %vm797_vm3 = vcmask 64512   ;;  %s5946_s1 = inlined_call_operand.vmem [shape: f32[4,32], index: 1, kind: input, shape index: {}]   ;;  %s5947_s0 = inlined_call_operand.vmem [shape: f32[64,4], index: 0, kind: input, shape index: {}]   ;;  %s5948_s2 = inlined_call_operand.vmem [shape: f32[1,32], index: 2, kind: input, shape index: {}]   ;;  %s5949_s5 = inlined_call_operand.vmem [shape: f32[32,32], index: 5, kind: input, shape index: {}]   ;;  %s5950_s7 = inlined_call_operand.vmem [shape: f32[32,32], index: 7, kind: input, shape index: {}]   ;;  %s5951_s9 = inlined_call_operand.vmem [shape: f32[32,32], index: 9, kind: input, shape index: {}]   ;;  %s5952_s3 = inlined_call_operand.vmem [shape: f32[1,32], index: 3, kind: input, shape index: {}]   ;;  %s5953_s4 = inlined_call_operand.vmem [shape: f32[1,32], index: 4, kind: input, shape index: {}]   ;;  %s5954_s6 = inlined_call_operand.vmem [shape: f32[1,32], index: 6, kind: input, shape index: {}]   ;;  %s5955_s8 = inlined_call_operand.vmem [shape: f32[1,32], index: 8, kind: input, shape index: {}]   ;;  %s5956_s10 = inlined_call_operand.vmem [shape: f32[1,32], index: 10, kind: input, shape index: {}]   ;;  %s5957_s11 = inlined_call_operand.vmem [shape: f32[32,32], index: 11, kind: input, shape index: {}]   ;;  %s5958_s12 = inlined_call_operand.vmem [shape: f32[1,32], index: 12, kind: input, shape index: {}]   ;;  %s5959_s15 = inlined_call_operand.vmem [shape: f32[32,64], index: 15, kind: input, shape index: {}]   ;;  %s5960_s13 = inlined_call_operand.vmem [shape: f32[1,32], index: 13, kind: input, shape index: {}]   ;;  %s5961_s14 = inlined_call_operand.vmem [shape: f32[1,32], index: 14, kind: input, shape index: {}]   ;;  %s5962_s17 = inlined_call_operand.vmem [shape: f32[64,32], index: 17, kind: input, shape index: {}]   ;;  %s5963_s19 = inlined_call_operand.vmem [shape: f32[32,4], index: 19, kind: input, shape index: {}]   ;;  %s5964_s16 = inlined_call_operand.vmem [shape: f32[1,64], index: 16, kind: input, shape index: {}]   ;;  %s5965_s18 = inlined_call_operand.vmem [shape: f32[1,32], index: 18, kind: input, shape index: {}]   ;;  %s5966_s20 = inlined_call_operand.vmem [shape: f32[1,4], index: 20, kind: input, shape index: {}]   ;;  %s5967_s21 = inlined_call_operand.vmem [shape: f32[64,4], index: 21, kind: output, shape index: {}]  }
   0x1   :  { %5976 = sst [smem:[#allocation6_spill]] %s5946_s1  ;;  %vm951_vm7 = vcmask 523264  }
   0x2   :  { %5977 = sst [smem:[#allocation7_spill]] %s5947_s0 }
   0x3   :  { %5978 = sst [smem:[#allocation8_spill]] %s5948_s2 }
   0x4   :  { %5979 = sst [smem:[#allocation9_spill]] %s5949_s5 }
   0x5   :  { %5980 = sst [smem:[#allocation10_spill]] %s5950_s7 }
   0x6   :  { %5981 = sst [smem:[#allocation11_spill]] %s5951_s9 }
   0x7   :  { %s5982_s26 = sld [smem:[#allocation6_spill]] }
   0x8   :  { %s5983_s28 = sld [smem:[#allocation7_spill]] }
   0x9   :  { %s5984_s7 = sld [smem:[#allocation8_spill]] }
   0xa   :  { %s5989_s9 = sld [smem:[#allocation9_spill]] }
   0xb   :  { %s5990_s0 = sld [smem:[#allocation10_spill]] }
   0xc   :  { %s5991_s2 = sld [smem:[#allocation11_spill]] }
   0xd   :  { %v76_v0 = vld [vmem:[%s5982_s26] sm:$0xf] }
   0xe   :  { %v68_v1 = vld [vmem:[%s5983_s28] sm:$0xff]  ;;  %v69_v2 = vld [vmem:[%s5983_s28 + $0x8] sm:$0xff]  ;;  %4030 = vmatprep.subr.msk.mxu0 %vm109_vm0, %v76_v0  ;;  %v70_v3 = vld [vmem:[%s5983_s28 + $0x10] sm:$0xff]  ;;  %4452 = vmatprep.subr.msk.mxu1 %vm109_vm0, %v76_v0 }
   0xf   :  { %4032 = vmatprep.mubr.msk.f32.mxu0 %vm84_vm1, %v68_v1  ;;  %v72_v4 = vld [vmem:[%s5983_s28 + $0x20] sm:$0xff]  ;;  %4031 = vmatpush3.msk.msra.mxu0 %vm109_vm0, %v76_v0  ;;  %v73_v5 = vld [vmem:[%s5983_s28 + $0x28] sm:$0xff]  ;;  %v74_v6 = vld [vmem:[%s5983_s28 + $0x30] sm:$0xff] }
  0x10   :  { %4033 = vmatmul.mubr.msk.f32.vlgmr.msra.gmra.mxu0 %vm84_vm1, %v69_v2  ;;  %4453 = vmatpush3.msk.msra.mxu1 %vm109_vm0, %v76_v0  ;;  %v71_v7 = vld [vmem:[%s5983_s28 + $0x18] sm:$0xff]  ;;  %v3584_v10 = vld [vmem:[%s5984_s7] ss:$0 sm:$0xff] }
  0x11   :  { %4035 = vmatprep.mubr.msk.f32.mxu0 %vm84_vm1, %v70_v3  ;;  %4038 = vmatprep.mubr.msk.f32.mxu1 %vm84_vm1, %v72_v4  ;;  %v75_v8 = vld [vmem:[%s5983_s28 + $0x38] sm:$0xff] }
  0x12   :  { %4039 = vmatmul.mubr.msk.f32.vlgmr.msra.gmra.mxu1 %vm84_vm1, %v73_v5 }
  0x13   :  { %4041 = vmatprep.mubr.msk.f32.mxu1 %vm84_vm1, %v74_v6 }
  0x14   :  { %4036 = vmatmul.mubr.msk.f32.gmra.mxu0 %vm84_vm1, %v71_v7 }
  0x16   :  { %4042 = vmatmul.mubr.msk.f32.gmra.mxu1 %vm84_vm1, %v75_v8 }
  0xd0   :  { %v4034_v9 = vpop.f32.mrf.mxu0 }
  0xd1   :  { %v4788_v16 = vadd.f32 %v4034_v9, %v3584_v10 }
  0xd2   :  { %v179_v11 = vpop.f32.mrf.mxu0  ;;  %v4040_v12 = vpop.f32.mrf.mxu1 }
  0xd3   :  { %v4786_v13 = vadd.f32 %v3584_v10, %v179_v11  ;;  %v287_v25 = vsel %vm283_vm2, %v4788_v16, 0.0  ;;  %v4806_v28 = vadd.f32 %v4040_v12, %v3584_v10  ;;  %v568_v11 = vld [vmem:[%s5990_s0 + $0x18] sm:$0xff]  ;;  %v419_v12 = vld [vmem:[%s5989_s9 + $0x10] sm:$0xff] }
  0xd4   :  { %v4037_v14 = vpop.f32.mrf.mxu0  ;;  %v199_v15 = vpop.f32.mrf.mxu1  ;;  %4064 = vmatprep.subr.mxu0 %v568_v11 }
  0xd5   :  { %v284_v17 = vsel %vm283_vm2, %v4786_v13, 0.0  ;;  %v4794_v21 = vadd.f32 %v3584_v10, %v199_v15  ;;  %v4796_v23 = vadd.f32 %v4037_v14, %v3584_v10  ;;  %5987 = vst [vmem:[#allocation4_spill] sm:$0xff] %v4806_v28  ;;  %v299_v32 = vsel %vm283_vm2, %v4806_v28, 0.0  ;;  %4065 = vmatpush3.msra.mxu0 %v568_v11  ;;  %v567_v14 = vld [vmem:[%s5990_s0 + $0x10] sm:$0xff]  ;;  %v418_v15 = vld [vmem:[%s5989_s9 + $0x8] sm:$0xff] }
  0xd6   :  { %v189_v18 = vpop.f32.mrf.mxu0  ;;  %285 = vadd.xlane.f32.xlu0 %v284_v17  ;;  %v4043_v19 = vpop.f32.mrf.mxu1  ;;  %4066 = vmatprep.subr.mxu0 %v567_v14  ;;  %v566_v17 = vld [vmem:[%s5990_s0 + $0x8] sm:$0xff] }
  0xd7   :  { %v4792_v20 = vadd.f32 %v3584_v10, %v189_v18  ;;  %5985 = vst [vmem:[#allocation2_spill] sm:$0xff] %v4794_v21  ;;  %v296_v27 = vsel %vm283_vm2, %v4794_v21, 0.0  ;;  %v293_v29 = vsel %vm283_vm2, %v4796_v23, 0.0  ;;  %v4812_v31 = vadd.f32 %v4043_v19, %v3584_v10  ;;  %4067 = vmatpush3.msra.mxu0 %v567_v14  ;;  %v417_v18 = vld [vmem:[%s5989_s9] sm:$0xff] }
  0xd8   :  { %v209_v22 = vpop.f32.mrf.mxu1  ;;  %4068 = vmatprep.subr.mxu0 %v566_v17  ;;  %v565_v19 = vld [vmem:[%s5990_s0] sm:$0xff] }
  0xd9   :  { %v290_v24 = vsel %vm283_vm2, %v4792_v20, 0.0  ;;  %v4802_v26 = vadd.f32 %v3584_v10, %v209_v22  ;;  %5988 = vst [vmem:[#allocation5_spill] sm:$0xff] %v4812_v31  ;;  %v305_v33 = vsel %vm283_vm2, %v4812_v31, 0.0  ;;  %v420_v10 = vld [vmem:[%s5989_s9 + $0x18] sm:$0xff]  ;;  %4069 = vmatpush3.msra.mxu0 %v566_v17  ;;  %s4637_s9 = smov 104  }
  0xda   :  { %291 = vadd.xlane.f32.xlu1 %v290_v24  ;;  %288 = vadd.xlane.f32.xlu0 %v287_v25  ;;  %v4893_v22 = vld [vmem:[%s5991_s2 + $0x18] sm:$0xff] }
  0xdb   :  { %5986 = vst [vmem:[#allocation3_spill] sm:$0xff] %v4802_v26  ;;  %v302_v30 = vsel %vm283_vm2, %v4802_v26, 0.0  ;;  %4044 = vmatprep.subr.mxu1 %v420_v10  ;;  %4070 = vmatprep.subr.mxu0 %v565_v19 }
  0xdc   :  { %4045 = vmatpush3.msra.mxu1 %v420_v10  ;;  %4071 = vmatpush3.msra.mxu0 %v565_v19 }
  0xdd   :  { %4046 = vmatprep.subr.mxu1 %v419_v12 }
  0xde   :  { %294 = vadd.xlane.f32.xlu1 %v293_v29  ;;  %297 = vadd.xlane.f32.xlu0 %v296_v27 }
  0xdf   :  { %4047 = vmatpush3.msra.mxu1 %v419_v12 }
  0xe0   :  { %4048 = vmatprep.subr.mxu1 %v418_v15 }
  0xe1   :  { %4049 = vmatpush3.msra.mxu1 %v418_v15 }
  0xe2   :  { %300 = vadd.xlane.f32.xlu1 %v299_v32  ;;  %303 = vadd.xlane.f32.xlu0 %v302_v30 }
  0xe3   :  { %4050 = vmatprep.subr.mxu1 %v417_v18 }
  0xe4   :  { %4051 = vmatpush3.msra.mxu1 %v417_v18 }
  0xe5   :  { %4084 = vmatprep.subr.mxu1 %v4893_v22 }
  0xe6   :  { %306 = vadd.xlane.f32.xlu1 %v305_v33 }
 0x15f   :  { %v286_v34 = vpop.xlane.xlu0 %285 }
 0x160   :  { %v309_v35 = vmul.f32 0.03125, %v286_v34 }
 0x162   :  { %v4819_v36 = vsub.f32 %v4786_v13, %v309_v35 }
 0x163   :  { %v292_v37 = vpop.xlane.xlu1 %291  ;;  %v289_v38 = vpop.xlane.xlu0 %288 }
 0x164   :  { %v311_v39 = vmul.f32 0.03125, %v292_v37  ;;  %v310_v40 = vmul.f32 0.03125, %v289_v38  ;;  %v325_v41 = vmul.f32 %v4819_v36, %v4819_v36 }
 0x166   :  { %v4824_v42 = vsub.f32 %v4792_v20, %v311_v39  ;;  %v4827_v43 = vsub.f32 %v4788_v16, %v310_v40  ;;  %v333_v44 = vsel %vm283_vm2, %v325_v41, 0.0 }
 0x167   :  { %v295_v45 = vpop.xlane.xlu1 %294  ;;  %334 = vadd.xlane.f32.xlu0 %v333_v44  ;;  %v298_v46 = vpop.xlane.xlu0 %297 }
 0x168   :  { %v312_v47 = vmul.f32 0.03125, %v295_v45  ;;  %v313_v48 = vmul.f32 0.03125, %v298_v46  ;;  %v327_v49 = vmul.f32 %v4824_v42, %v4824_v42  ;;  %v326_v50 = vmul.f32 %v4827_v43, %v4827_v43 }
 0x16a   :  { %v4835_v51 = vsub.f32 %v4796_v23, %v312_v47  ;;  %v4838_v52 = vsub.f32 %v4794_v21, %v313_v48  ;;  %v339_v53 = vsel %vm283_vm2, %v327_v49, 0.0  ;;  %v336_v54 = vsel %vm283_vm2, %v326_v50, 0.0 }
 0x16b   :  { %v301_v55 = vpop.xlane.xlu1 %300  ;;  %340 = vadd.xlane.f32.xlu0 %v339_v53  ;;  %337 = vadd.xlane.f32.xlu1 %v336_v54  ;;  %v304_v56 = vpop.xlane.xlu0 %303 }
 0x16c   :  { %v314_v57 = vmul.f32 0.03125, %v301_v55  ;;  %v315_v58 = vmul.f32 0.03125, %v304_v56  ;;  %v328_v59 = vmul.f32 %v4835_v51, %v4835_v51  ;;  %v329_v60 = vmul.f32 %v4838_v52, %v4838_v52  ;;  %v3594_v56 = vld [vmem:[%s5952_s3] ss:$0 sm:$0xff] }
 0x16e   :  { %v4847_v61 = vsub.f32 %v4806_v28, %v314_v57  ;;  %v4850_v62 = vsub.f32 %v4802_v26, %v315_v58  ;;  %v342_v63 = vsel %vm283_vm2, %v328_v59, 0.0  ;;  %v345_v0 = vsel %vm283_vm2, %v329_v60, 0.0  ;;  %v3595_v59 = vld [vmem:[%s5953_s4] ss:$0 sm:$0xff] }
 0x16f   :  { %v307_v1 = vpop.xlane.xlu1 %306  ;;  %343 = vadd.xlane.f32.xlu1 %v342_v63  ;;  %346 = vadd.xlane.f32.xlu0 %v345_v0 }
 0x170   :  { %v316_v2 = vmul.f32 0.03125, %v307_v1  ;;  %v330_v3 = vmul.f32 %v4847_v61, %v4847_v61  ;;  %v331_v4 = vmul.f32 %v4850_v62, %v4850_v62 }
 0x172   :  { %v4859_v5 = vsub.f32 %v4812_v31, %v316_v2  ;;  %v348_v6 = vsel %vm283_vm2, %v330_v3, 0.0  ;;  %v351_v7 = vsel %vm283_vm2, %v331_v4, 0.0 }
 0x173   :  { %349 = vadd.xlane.f32.xlu1 %v348_v6  ;;  %352 = vadd.xlane.f32.xlu0 %v351_v7 }
 0x174   :  { %v332_v8 = vmul.f32 %v4859_v5, %v4859_v5 }
 0x176   :  { %v354_v9 = vsel %vm283_vm2, %v332_v8, 0.0 }
 0x177   :  { %355 = vadd.xlane.f32.xlu1 %v354_v9 }
 0x1f0   :  { %v335_v24 = vpop.xlane.xlu0 %334 }
 0x1f1   :  { %v357_v25 = vmul.f32 0.03125, %v335_v24  ;;  %v682_v24 = vld [vmem:[%s5991_s2 + $0x8] sm:$0xff] }
 0x1f3   :  { %v365_v27 = vadd.f32 1e-05, %v357_v25 }
 0x1f4   :  { %v338_v29 = vpop.xlane.xlu1 %337  ;;  %v341_v30 = vpop.xlane.xlu0 %340 }
 0x1f5   :  { %4458 = vrsqrt.f32 %v365_v27  ;;  %v358_v32 = vmul.f32 0.03125, %v338_v29  ;;  %v359_v33 = vmul.f32 0.03125, %v341_v30  ;;  %v681_v30 = vld [vmem:[%s5991_s2] sm:$0xff] }
 0x1f7   :  { %v366_v34 = vadd.f32 1e-05, %v358_v32  ;;  %v367_v35 = vadd.f32 1e-05, %v359_v33 }
 0x1f8   :  { %v344_v37 = vpop.xlane.xlu1 %343  ;;  %v347_v38 = vpop.xlane.xlu0 %346 }
 0x1f9   :  { %4460 = vrsqrt.f32 %v366_v34  ;;  %v360_v39 = vmul.f32 0.03125, %v344_v37  ;;  %v361_v40 = vmul.f32 0.03125, %v347_v38  ;;  %v4949_v34 = vld [vmem:[%s5954_s6] ss:$0 sm:$0xff] }
 0x1fa   :  { %4462 = vrsqrt.f32 %v367_v35 }
 0x1fb   :  { %v368_v41 = vadd.f32 1e-05, %v360_v39  ;;  %v369_v44 = vadd.f32 1e-05, %v361_v40 }
 0x1fc   :  { %v350_v45 = vpop.xlane.xlu1 %349  ;;  %v353_v46 = vpop.xlane.xlu0 %352 }
 0x1fd   :  { %4464 = vrsqrt.f32 %v368_v41  ;;  %v362_v47 = vmul.f32 0.03125, %v350_v45  ;;  %v363_v48 = vmul.f32 0.03125, %v353_v46 }
 0x1fe   :  { %4466 = vrsqrt.f32 %v369_v44 }
 0x1ff   :  { %v370_v49 = vadd.f32 1e-05, %v362_v47  ;;  %v371_v50 = vadd.f32 1e-05, %v363_v48 }
 0x200   :  { %v356_v53 = vpop.xlane.xlu1 %355 }
 0x201   :  { %4468 = vrsqrt.f32 %v370_v49  ;;  %v364_v54 = vmul.f32 0.03125, %v356_v53 }
 0x202   :  { %v4459_v55 = vpop.eup %4458  ;;  %4470 = vrsqrt.f32 %v371_v50  ;;  %v3605_v50 = vld [vmem:[%s5955_s8] ss:$0 sm:$0xff] }
 0x203   :  { %v372_v57 = vadd.f32 1e-05, %v364_v54  ;;  %v381_v58 = vmul.f32 %v4459_v55, %v4819_v36 }
 0x205   :  { %4472 = vrsqrt.f32 %v372_v57  ;;  %v395_v60 = vmul.f32 %v3594_v56, %v381_v58 }
 0x206   :  { %v4461_v63 = vpop.eup %4460 }
 0x207   :  { %v4463_v0 = vpop.eup %4462  ;;  %v382_v1 = vmul.f32 %v4461_v63, %v4827_v43  ;;  %v409_v2 = vadd.f32 %v3595_v59, %v395_v60 }
 0x208   :  { %v383_v3 = vmul.f32 %v4463_v0, %v4824_v42  ;;  %v683_v42 = vld [vmem:[%s5991_s2 + $0x10] sm:$0xff]  ;;  %s4636_s2 = smov 112  }
 0x209   :  { %v396_v4 = vmul.f32 %v3594_v56, %v382_v1  ;;  %4052 = vmatprep.mubr.msk.f32.mxu1 %vm283_vm2, %v409_v2  ;;  %4072 = vmatprep.mubr.msk.f32.mxu0 %vm283_vm2, %v409_v2 }
 0x20a   :  { %v4465_v6 = vpop.eup %4464  ;;  %v397_v36 = vmul.f32 %v3594_v56, %v383_v3 }
 0x20b   :  { %v4467_v7 = vpop.eup %4466  ;;  %v410_v8 = vadd.f32 %v3595_v59, %v396_v4  ;;  %v384_v9 = vmul.f32 %v4465_v6, %v4835_v51 }
 0x20c   :  { %v411_v10 = vadd.f32 %v3595_v59, %v397_v36  ;;  %v385_v11 = vmul.f32 %v4467_v7, %v4838_v52  ;;  %v3614_v36 = vld [vmem:[%s5956_s10] ss:$0 sm:$0xff]  ;;  %s4635_s10 = smov 120  }
 0x20d   :  { %4053 = vmatmul.mubr.msk.f32.vlgmr.msra.gmra.mxu1 %vm283_vm2, %v410_v8  ;;  %4073 = vmatmul.mubr.msk.f32.vlgmr.msra.gmra.mxu0 %vm283_vm2, %v410_v8  ;;  %v398_v43 = vmul.f32 %v3594_v56, %v384_v9 }
 0x20e   :  { %v4469_v12 = vpop.eup %4468  ;;  %4055 = vmatprep.mubr.msk.f32.mxu1 %vm283_vm2, %v411_v10  ;;  %4075 = vmatprep.mubr.msk.f32.mxu0 %vm283_vm2, %v411_v10  ;;  %v399_v14 = vmul.f32 %v3594_v56, %v385_v11 }
 0x20f   :  { %v4471_v15 = vpop.eup %4470  ;;  %v412_v51 = vadd.f32 %v3595_v59, %v398_v43  ;;  %v386_v17 = vmul.f32 %v4469_v12, %v4847_v61  ;;  %4085 = vmatpush3.msra.mxu1 %v4893_v22 }
 0x210   :  { %v413_v52 = vadd.f32 %v3595_v59, %v399_v14  ;;  %v387_v18 = vmul.f32 %v4471_v15, %v4850_v62  ;;  %4086 = vmatprep.subr.mxu1 %v683_v42 }
 0x211   :  { %4056 = vmatmul.mubr.msk.f32.gmra.mxu1 %vm283_vm2, %v412_v51  ;;  %4076 = vmatmul.mubr.msk.f32.gmra.mxu0 %vm283_vm2, %v412_v51  ;;  %v400_v19 = vmul.f32 %v3594_v56, %v386_v17 }
 0x212   :  { %v4473_v25 = vpop.eup %4472  ;;  %4058 = vmatprep.mubr.msk.f32.mxu1 %vm283_vm2, %v413_v52  ;;  %4078 = vmatprep.mubr.msk.f32.mxu0 %vm283_vm2, %v413_v52  ;;  %v401_v61 = vmul.f32 %v3594_v56, %v387_v18 }
 0x213   :  { %v414_v22 = vadd.f32 %v3595_v59, %v400_v19  ;;  %4087 = vmatpush3.msra.mxu1 %v683_v42  ;;  %v388_v62 = vmul.f32 %v4473_v25, %v4859_v5 }
 0x214   :  { %v415_v27 = vadd.f32 %v3595_v59, %v401_v61  ;;  %4088 = vmatprep.subr.mxu1 %v682_v24 }
 0x215   :  { %4059 = vmatmul.mubr.msk.f32.gmra.mxu1 %vm283_vm2, %v414_v22  ;;  %4079 = vmatmul.mubr.msk.f32.gmra.mxu0 %vm283_vm2, %v414_v22  ;;  %v402_v29 = vmul.f32 %v3594_v56, %v388_v62 }
 0x216   :  { %4061 = vmatprep.mubr.msk.f32.mxu1 %vm283_vm2, %v415_v27  ;;  %4081 = vmatprep.mubr.msk.f32.mxu0 %vm283_vm2, %v415_v27 }
 0x217   :  { %v416_v32 = vadd.f32 %v3595_v59, %v402_v29  ;;  %4089 = vmatpush3.msra.mxu1 %v682_v24 }
 0x218   :  { %4090 = vmatprep.subr.mxu1 %v681_v30 }
 0x219   :  { %4062 = vmatmul.mubr.msk.f32.gmra.mxu1 %vm283_vm2, %v416_v32  ;;  %4082 = vmatmul.mubr.msk.f32.gmra.mxu0 %vm283_vm2, %v416_v32 }
 0x21a   :  { %4092 = vmatprep.mubr.msk.f32.mxu1 %vm283_vm2, %v409_v2  ;;  %4091 = vmatpush3.msra.mxu1 %v681_v30 }
 0x21d   :  { %4093 = vmatmul.mubr.msk.f32.vlgmr.msra.gmra.mxu1 %vm283_vm2, %v410_v8 }
 0x21e   :  { %4095 = vmatprep.mubr.msk.f32.mxu1 %vm283_vm2, %v411_v10 }
 0x221   :  { %4096 = vmatmul.mubr.msk.f32.gmra.mxu1 %vm283_vm2, %v412_v51 }
 0x222   :  { %4098 = vmatprep.mubr.msk.f32.mxu1 %vm283_vm2, %v413_v52 }
 0x225   :  { %4099 = vmatmul.mubr.msk.f32.gmra.mxu1 %vm283_vm2, %v414_v22 }
 0x226   :  { %4101 = vmatprep.mubr.msk.f32.mxu1 %vm283_vm2, %v415_v27 }
 0x229   :  { %4102 = vmatmul.mubr.msk.f32.gmra.mxu1 %vm283_vm2, %v416_v32 }
 0x2cd   :  { %v4944_v5 = vpop.f32.mrf.mxu1  ;;  %v4074_v33 = vpop.f32.mrf.mxu0 }
 0x2ce   :  { %v5018_v42 = vadd.f32 %v4074_v33, %v3605_v50  ;;  %v524_v17 = vadd.f32 %v4944_v5, %v4949_v34 }
 0x2cf   :  { %v518_v35 = vpop.f32.mrf.mxu1  ;;  %v642_v37 = vpop.f32.mrf.mxu0 }
 0x2d0   :  { %v519_v38 = vadd.f32 %v4949_v34, %v518_v35  ;;  %v5032_v15 = vadd.f32 %v3605_v50, %v642_v37  ;;  %v5056_v24 = vmul.f32 0.35355338, %v524_v17  ;;  %v218_v37 = vlaneseq }
 0x2d1   :  { %v4952_v39 = vpop.f32.mrf.mxu1  ;;  %v4077_v40 = vpop.f32.mrf.mxu0 }
 0x2d2   :  { %v4954_v41 = vmul.f32 0.35355338, %v519_v38  ;;  %v4993_v6 = vadd.f32 %v4077_v40, %v3605_v50  ;;  %v534_v25 = vadd.f32 %v4952_v39, %v4949_v34  ;;  %v219_v38 = vshrl.u32 %v218_v37, 7 }
 0x2d3   :  { %v4956_v44 = vpop.f32.mrf.mxu1  ;;  %v652_v45 = vpop.f32.mrf.mxu0  ;;  %v236_v39 = vand.u32 127, %v218_v37 }
 0x2d4   :  { %4120 = vmatprep.mubr.msk.f32.mxu0 %vm797_vm3, %v4954_v41  ;;  %v5004_v10 = vadd.f32 %v3605_v50, %v652_v45  ;;  %v529_v18 = vadd.f32 %v4949_v34, %v4956_v44  ;;  %v5070_v62 = vmul.f32 0.35355338, %v534_v25  ;;  %v220_v40 = vadd.s32 8, %v219_v38 }
 0x2d5   :  { %v4960_v46 = vpop.f32.mrf.mxu1  ;;  %v4080_v47 = vpop.f32.mrf.mxu0  ;;  %v237_v44 = vcvt.s32.f32 %v236_v39 }
 0x2d6   :  { %v4981_v63 = vadd.f32 %v4080_v47, %v3605_v50  ;;  %v5061_v61 = vmul.f32 0.35355338, %v529_v18  ;;  %v544_v27 = vadd.f32 %v4960_v46, %v4949_v34  ;;  %v228_v45 = vcvt.s32.f32 %v220_v40 }
 0x2d7   :  { %v4962_v48 = vpop.f32.mrf.mxu1  ;;  %v662_v49 = vpop.f32.mrf.mxu0  ;;  %v227_v46 = vcvt.s32.f32 %v219_v38  ;;  %v221_v47 = vadd.s32 16, %v219_v38 }
 0x2d8   :  { %v4987_v2 = vadd.f32 %v3605_v50, %v662_v49  ;;  %v539_v22 = vadd.f32 %v4949_v34, %v4962_v48  ;;  %v5082_v32 = vmul.f32 0.35355338, %v544_v27  ;;  %v262_v48 = vadd.f32 0.5, %v237_v44 }
 0x2d9   :  { %v4967_v53 = vpop.f32.mrf.mxu1  ;;  %v4083_v54 = vpop.f32.mrf.mxu0  ;;  %v239_v49 = vadd.f32 0.5, %v228_v45 }
 0x2da   :  { %v4969_v55 = vadd.f32 %v4083_v54, %v3605_v50  ;;  %v5074_v29 = vmul.f32 0.35355338, %v539_v22  ;;  %v554_v5 = vadd.f32 %v4967_v53, %v4949_v34  ;;  %v224_v53 = vadd.s32 40, %v219_v38 }
 0x2db   :  { %v4971_v56 = vpop.f32.mrf.mxu1  ;;  %v672_v57 = vpop.f32.mrf.mxu0  ;;  %v238_v54 = vadd.f32 0.5, %v227_v46 }
 0x2dc   :  { %v4973_v58 = vadd.f32 %v3605_v50, %v672_v57  ;;  %4104 = vmatprep.subr.msk.mxu0 %vm797_vm3, %v4969_v55  ;;  %v549_v30 = vadd.f32 %v4949_v34, %v4971_v56  ;;  %v5092_v35 = vmul.f32 0.35355338, %v554_v5  ;;  %v222_v34 = vadd.s32 24, %v219_v38 }
 0x2dd   :  { %v4094_v59 = vpop.f32.mrf.mxu1  ;;  %4105 = vmatpush3.xpose.msk.msra.mxu0 %vm797_vm3, %v4969_v55  ;;  %v229_v56 = vcvt.s32.f32 %v221_v47  ;;  %v223_v57 = vadd.s32 32, %v219_v38 }
 0x2de   :  { %4106 = vmatprep.subr.msk.mxu0 %vm797_vm3, %v4973_v58  ;;  %v5042_v52 = vadd.f32 %v4094_v59, %v3614_v36  ;;  %v5086_v33 = vmul.f32 0.35355338, %v549_v30  ;;  %v230_v50 = vcvt.s32.f32 %v222_v34  ;;  %v263_v59 = vmul.f32 0.03125, %v262_v48 }
 0x2df   :  { %v758_v60 = vpop.f32.mrf.mxu1  ;;  %v4634_v48 = vmov -1e+30  }
 0x2e0   :  { %v5050_v19 = vadd.f32 %v3614_v36, %v758_v60  ;;  %v247_v60 = vmul.f32 0.03125, %v239_v49  ;;  %v264_v17 = vfloor.f32 %v263_v59 }
 0x2e1   :  { %v4097_v0 = vpop.f32.mrf.mxu1  ;;  %4107 = vmatpush3.xpose.msk.msra.mxu0 %vm797_vm3, %v4973_v58 }
 0x2e2   :  { %4108 = vmatprep.subr.msk.mxu0 %vm797_vm3, %v4981_v63  ;;  %v5026_v14 = vadd.f32 %v4097_v0, %v3614_v36  ;;  %v241_v0 = vadd.f32 0.5, %v230_v50  ;;  %v255_v18 = vfloor.f32 %v247_v60 }
 0x2e3   :  { %v768_v1 = vpop.f32.mrf.mxu1 }
 0x2e4   :  { %v5034_v51 = vadd.f32 %v3614_v36, %v768_v1  ;;  %v232_v1 = vcvt.s32.f32 %v224_v53  ;;  %v249_v25 = vmul.f32 0.03125, %v241_v0  ;;  %vm266_vm4 = vcmp.eq.f32.partialorder %v255_v18, %v264_v17 }
 0x2e5   :  { %v4100_v3 = vpop.f32.mrf.mxu1  ;;  %4109 = vmatpush3.xpose.msk.msra.mxu0 %vm797_vm3, %v4981_v63  ;;  %v5096_v49 = vsel %vm266_vm4, 0.0, %v4634_v48 }
 0x2e6   :  { %4110 = vmatprep.subr.msk.mxu0 %vm797_vm3, %v4987_v2  ;;  %v5012_v43 = vadd.f32 %v4100_v3, %v3614_v36  ;;  %v226_v3 = vadd.s32 56, %v219_v38  ;;  %v243_v22 = vadd.f32 0.5, %v232_v1  ;;  %v257_v40 = vfloor.f32 %v249_v25 }
 0x2e7   :  { %v778_v4 = vpop.f32.mrf.mxu1 }
 0x2e8   :  { %v5020_v12 = vadd.f32 %v3614_v36, %v778_v4  ;;  %v246_v4 = vmul.f32 0.03125, %v238_v54  ;;  %v234_v27 = vcvt.s32.f32 %v226_v3  ;;  %v251_v44 = vmul.f32 0.03125, %v243_v22 }
 0x2e9   :  { %v4103_v7 = vpop.f32.mrf.mxu1  ;;  %4111 = vmatpush3.xpose.msk.msra.mxu0 %vm797_vm3, %v4987_v2  ;;  %vm268_vm6 = vcmp.eq.f32.partialorder %v257_v40, %v264_v17 }
 0x2ea   :  { %v5000_v8 = vadd.f32 %v4103_v7, %v3614_v36  ;;  %4112 = vmatprep.subr.msk.mxu0 %vm797_vm3, %v4993_v6  ;;  %v231_v7 = vcvt.s32.f32 %v223_v57  ;;  %v254_v30 = vfloor.f32 %v246_v4  ;;  %v245_v45 = vadd.f32 0.5, %v234_v27 }
 0x2eb   :  { %v788_v9 = vpop.f32.mrf.mxu1  ;;  %v5101_v0 = vsel %vm268_vm6, 0.0, %v4634_v48 }
 0x2ec   :  { %v5006_v11 = vadd.f32 %v3614_v36, %v788_v9  ;;  %4132 = vmatprep.subr.mxu1 %v5000_v8  ;;  %v240_v36 = vadd.f32 0.5, %v229_v56  ;;  %v225_v9 = vadd.s32 48, %v219_v38  ;;  %v242_v37 = vadd.f32 0.5, %v231_v7 }
 0x2ed   :  { %4113 = vmatpush3.xpose.msk.msra.mxu0 %vm797_vm3, %v4993_v6  ;;  %4133 = vmatpush3.msra.mxu1 %v5000_v8  ;;  %vm265_vm5 = vcmp.eq.f32.partialorder %v254_v30, %v264_v17  ;;  %v259_v38 = vfloor.f32 %v251_v44  ;;  %v253_v50 = vmul.f32 0.03125, %v245_v45 }
 0x2ee   :  { %4114 = vmatprep.subr.msk.mxu0 %vm797_vm3, %v5004_v10  ;;  %4134 = vmatprep.subr.mxu1 %v5006_v11  ;;  %v248_v5 = vmul.f32 0.03125, %v240_v36  ;;  %v233_v39 = vcvt.s32.f32 %v225_v9  ;;  %v250_v46 = vmul.f32 0.03125, %v242_v37  ;;  %v5098_v54 = vsel %vm265_vm5, 0.0, %v4634_v48 }
 0x2ef   :  { %4135 = vmatpush3.msra.mxu1 %v5006_v11  ;;  %vm270_vm9 = vcmp.eq.f32.partialorder %v259_v38, %v264_v17  ;;  %v261_v4 = vfloor.f32 %v253_v50 }
 0x2f0   :  { %4136 = vmatprep.subr.mxu1 %v5012_v43  ;;  %v256_v34 = vfloor.f32 %v248_v5  ;;  %v244_v47 = vadd.f32 0.5, %v233_v39  ;;  %v258_v57 = vfloor.f32 %v250_v46  ;;  %v5111_v27 = vsel %vm270_vm9, 0.0, %v4634_v48 }
 0x2f1   :  { %4115 = vmatpush3.xpose.msk.msra.mxu0 %vm797_vm3, %v5004_v10  ;;  %4137 = vmatpush3.msra.mxu1 %v5012_v43  ;;  %vm272_vm11 = vcmp.eq.f32.partialorder %v261_v4, %v264_v17 }
 0x2f2   :  { %4116 = vmatprep.subr.msk.mxu0 %vm797_vm3, %v5018_v42  ;;  %4138 = vmatprep.subr.mxu1 %v5020_v12  ;;  %vm267_vm8 = vcmp.eq.f32.partialorder %v256_v34, %v264_v17  ;;  %v252_v59 = vmul.f32 0.03125, %v244_v47  ;;  %vm269_vm10 = vcmp.eq.f32.partialorder %v258_v57, %v264_v17  ;;  %v5120_v34 = vsel %vm272_vm11, 0.0, %v4634_v48 }
 0x2f3   :  { %4139 = vmatpush3.msra.mxu1 %v5020_v12  ;;  %v5105_v7 = vsel %vm267_vm8, 0.0, %v4634_v48  ;;  %v5116_v39 = vsel %vm269_vm10, 0.0, %v4634_v48 }
 0x2f4   :  { %4140 = vmatprep.subr.mxu1 %v5026_v14  ;;  %v260_v25 = vfloor.f32 %v252_v59 }
 0x2f5   :  { %4117 = vmatpush3.xpose.msk.msra.mxu0 %vm797_vm3, %v5018_v42  ;;  %4141 = vmatpush3.msra.mxu1 %v5026_v14 }
 0x2f6   :  { %4118 = vmatprep.subr.msk.mxu0 %vm797_vm3, %v5032_v15  ;;  %4142 = vmatprep.subr.mxu1 %v5034_v51  ;;  %vm271_vm12 = vcmp.eq.f32.partialorder %v260_v25, %v264_v17 }
 0x2f7   :  { %4143 = vmatpush3.msra.mxu1 %v5034_v51  ;;  %v5124_v50 = vsel %vm271_vm12, 0.0, %v4634_v48 }
 0x2f8   :  { %4144 = vmatprep.subr.mxu1 %v5042_v52 }
 0x2f9   :  { %4119 = vmatpush3.xpose.msk.msra.mxu0 %vm797_vm3, %v5032_v15  ;;  %4145 = vmatpush3.msra.mxu1 %v5042_v52 }
 0x2fa   :  { %4146 = vmatprep.subr.mxu1 %v5050_v19 }
 0x2fb   :  { %4147 = vmatpush3.msra.mxu1 %v5050_v19 }
 0x2fc   :  { %4121 = vmatmul.mubr.msk.f32.vlgmr.msra.gmra.mxu0 %vm797_vm3, %v5056_v24 }
 0x2fd   :  { %4123 = vmatprep.mubr.msk.f32.mxu0 %vm797_vm3, %v5061_v61 }
 0x300   :  { %4124 = vmatmul.mubr.msk.f32.gmra.mxu0 %vm797_vm3, %v5070_v62 }
 0x301   :  { %4126 = vmatprep.mubr.msk.f32.mxu0 %vm797_vm3, %v5074_v29 }
 0x304   :  { %4127 = vmatmul.mubr.msk.f32.gmra.mxu0 %vm797_vm3, %v5082_v32 }
 0x305   :  { %4129 = vmatprep.mubr.msk.f32.mxu0 %vm797_vm3, %v5086_v33 }
 0x308   :  { %4130 = vmatmul.mubr.msk.f32.gmra.mxu0 %vm797_vm3, %v5092_v35 }
 0x3bc   :  { %v4122_v53 = vpop.f32.mrf.mxu0 }
 0x3bd   :  { %v918_v56 = vadd.f32 %v4122_v53, %v5096_v49 }
 0x3be   :  { %v912_v60 = vpop.f32.mrf.mxu0 }
 0x3bf   :  { %v913_v1 = vadd.f32 %v912_v60, %v5098_v54  ;;  %v955_v3 = vsel %vm951_vm7, %v918_v56, -inf }
 0x3c0   :  { %956 = vmax.xlane.f32.xlu1 %v955_v3  ;;  %v4125_v36 = vpop.f32.mrf.mxu0 }
 0x3c1   :  { %v5108_v9 = vadd.f32 %v4125_v36, %v5101_v0  ;;  %v952_v18 = vsel %vm951_vm7, %v913_v1, -inf }
 0x3c2   :  { %v922_v22 = vpop.f32.mrf.mxu0  ;;  %953 = vmax.xlane.f32.xlu0 %v952_v18 }
 0x3c3   :  { %v923_v30 = vadd.f32 %v922_v22, %v5105_v7  ;;  %v961_v5 = vsel %vm951_vm7, %v5108_v9, -inf }
 0x3c4   :  { %962 = vmax.xlane.f32.xlu1 %v961_v5  ;;  %v4128_v37 = vpop.f32.mrf.mxu0 }
 0x3c5   :  { %v938_v40 = vadd.f32 %v4128_v37, %v5111_v27  ;;  %v958_v44 = vsel %vm951_vm7, %v923_v30, -inf }
 0x3c6   :  { %v932_v45 = vpop.f32.mrf.mxu0  ;;  %959 = vmax.xlane.f32.xlu0 %v958_v44 }
 0x3c7   :  { %v933_v46 = vadd.f32 %v932_v45, %v5116_v39  ;;  %v967_v47 = vsel %vm951_vm7, %v938_v40, -inf }
 0x3c8   :  { %968 = vmax.xlane.f32.xlu1 %v967_v47  ;;  %v4131_v38 = vpop.f32.mrf.mxu0 }
 0x3c9   :  { %v948_v53 = vadd.f32 %v4131_v38, %v5120_v34  ;;  %v964_v57 = vsel %vm951_vm7, %v933_v46, -inf }
 0x3ca   :  { %965 = vmax.xlane.f32.xlu0 %v964_v57  ;;  %v942_v59 = vpop.f32.mrf.mxu0 }
 0x3cb   :  { %v943_v17 = vadd.f32 %v942_v59, %v5124_v50  ;;  %v973_v60 = vsel %vm951_vm7, %v948_v53, -inf }
 0x3cc   :  { %974 = vmax.xlane.f32.xlu1 %v973_v60 }
 0x3cd   :  { %v970_v3 = vsel %vm951_vm7, %v943_v17, -inf }
 0x3ce   :  { %971 = vmax.xlane.f32.xlu0 %v970_v3 }
 0x3dd   :  { %1198 = vrot.lane.b32.xlu1 %v4973_v58, %s4635_s10 }
 0x3e1   :  { %1196 = vrot.lane.b32.xlu1 %v4981_v63, %s4635_s10 }
 0x3e4   :  { %1200 = vrot.lane.b32.xlu0 %v4969_v55, %s4635_s10 }
 0x3e5   :  { %1194 = vrot.lane.b32.xlu1 %v4987_v2, %s4635_s10 }
 0x449   :  { %v957_v48 = vpop.xlane.xlu1 %956 }
 0x44a   :  { %v977_v4 = vsub.f32 %v918_v56, %v957_v48 }
 0x44b   :  { %v954_v36 = vpop.xlane.xlu0 %953 }
 0x44c   :  { %v986_v18 = vmul.f32 1.442695, %v977_v4  ;;  %v976_v25 = vsub.f32 %v913_v1, %v954_v36 }
 0x44d   :  { %v963_v57 = vpop.xlane.xlu1 %962 }
 0x44e   :  { %4474 = vpow2.f32 %v986_v18  ;;  %v984_v22 = vmul.f32 1.442695, %v976_v25  ;;  %v979_v60 = vsub.f32 %v5108_v9, %v963_v57 }
 0x44f   :  { %v960_v5 = vpop.xlane.xlu0 %959 }
 0x450   :  { %4476 = vpow2.f32 %v984_v22  ;;  %v978_v3 = vsub.f32 %v923_v30, %v960_v5  ;;  %v990_v48 = vmul.f32 1.442695, %v979_v60 }
 0x451   :  { %v969_v59 = vpop.xlane.xlu1 %968 }
 0x452   :  { %v981_v4 = vsub.f32 %v938_v40, %v969_v59  ;;  %v988_v18 = vmul.f32 1.442695, %v978_v3  ;;  %4478 = vpow2.f32 %v990_v48 }
 0x453   :  { %v966_v37 = vpop.xlane.xlu0 %965 }
 0x454   :  { %v980_v25 = vsub.f32 %v933_v46, %v966_v37  ;;  %v994_v22 = vmul.f32 1.442695, %v981_v4  ;;  %4480 = vpow2.f32 %v988_v18 }
 0x455   :  { %v975_v36 = vpop.xlane.xlu1 %974 }
 0x456   :  { %4482 = vpow2.f32 %v994_v22 }
 0x457   :  { %v972_v44 = vpop.xlane.xlu0 %971 }
 0x458   :  { %v982_v26 = vsub.f32 %v943_v17, %v972_v44 }
 0x459   :  { %v1199_v44 = vpop.permute.xlu1 %1198 }
 0x45a   :  { %v996_v21 = vmul.f32 1.442695, %v982_v26 }
 0x45b   :  { %v5139_v45 = vpop.eup %4474  ;;  %v5141_v47 = vpop.permute.xlu0 %1200 }
 0x45c   :  { %4160 = vmatprep.subr.msk.mxu1 %vm797_vm3, %v5141_v47  ;;  %v1003_v38 = vsel %vm951_vm7, %v5139_v45, 0.0 }
 0x45d   :  { %v5147_v56 = vpop.eup %4476  ;;  %1004 = vadd.xlane.f32.xlu1 %v1003_v38  ;;  %v983_v38 = vsub.f32 %v948_v53, %v975_v36  ;;  %v1197_v57 = vpop.permute.xlu1 %1196 }
 0x45e   :  { %v1000_v1 = vsel %vm951_vm7, %v5147_v56, 0.0 }
 0x45f   :  { %1001 = vadd.xlane.f32.xlu0 %v1000_v1  ;;  %v992_v1 = vmul.f32 1.442695, %v980_v25  ;;  %v998_v31 = vmul.f32 1.442695, %v983_v38  ;;  %v5156_v28 = vpop.eup %4478 }
 0x460   :  { %v1009_v30 = vsel %vm951_vm7, %v5156_v28, 0.0 }
 0x461   :  { %4484 = vpow2.f32 %v992_v1  ;;  %v5158_v9 = vpop.eup %4480  ;;  %v1195_v59 = vpop.permute.xlu1 %1194 }
 0x462   :  { %4486 = vpow2.f32 %v998_v31  ;;  %v1006_v46 = vsel %vm951_vm7, %v5158_v9, 0.0 }
 0x463   :  { %4488 = vpow2.f32 %v996_v21  ;;  %v5162_v40 = vpop.eup %4482 }
 0x464   :  { %v1015_v26 = vsel %vm951_vm7, %v5162_v40, 0.0 }
 0x46e   :  { %1190 = vrot.lane.b32.xlu1 %v5004_v10, %s4635_s10  ;;  %v5166_v53 = vpop.eup %4484 }
 0x46f   :  { %v5170_v21 = vpop.eup %4486  ;;  %v1012_v31 = vsel %vm951_vm7, %v5166_v53, 0.0 }
 0x470   :  { %v5174_v17 = vpop.eup %4488  ;;  %v1021_v5 = vsel %vm951_vm7, %v5170_v21, 0.0 }
 0x471   :  { %v1018_v37 = vsel %vm951_vm7, %v5174_v17, 0.0 }
 0x475   :  { %1192 = vrot.lane.b32.xlu0 %v4993_v6, %s4635_s10 }
 0x492   :  { %1010 = vadd.xlane.f32.xlu1 %v1009_v30 }
 0x494   :  { %1007 = vadd.xlane.f32.xlu0 %v1006_v46 }
 0x496   :  { %1016 = vadd.xlane.f32.xlu1 %v1015_v26 }
 0x498   :  { %1013 = vadd.xlane.f32.xlu0 %v1012_v31 }
 0x49a   :  { %1022 = vadd.xlane.f32.xlu1 %v1021_v5 }
 0x49c   :  { %1019 = vadd.xlane.f32.xlu0 %v1018_v37 }
 0x4ab   :  { %1186 = vrot.lane.b32.xlu1 %v5032_v15, %s4635_s10 }
 0x4af   :  { %1172 = vrot.lane.b32.xlu1 %v5056_v24, %s4635_s10 }
 0x4b2   :  { %1188 = vrot.lane.b32.xlu0 %v5018_v42, %s4635_s10 }
 0x4b3   :  { %1176 = vrot.lane.b32.xlu1 %v5070_v62, %s4635_s10 }
 0x4b6   :  { %1170 = vrot.lane.b32.xlu0 %v4954_v41, %s4635_s10 }
 0x4b7   :  { %1180 = vrot.lane.b32.xlu1 %v5082_v32, %s4635_s10 }
 0x4ba   :  { %1174 = vrot.lane.b32.xlu0 %v5061_v61, %s4635_s10 }
 0x4bb   :  { %1184 = vrot.lane.b32.xlu1 %v5092_v35, %s4635_s10 }
 0x4be   :  { %1178 = vrot.lane.b32.xlu0 %v5074_v29, %s4635_s10 }
 0x4bf   :  { %1447 = vrot.lane.b32.xlu1 %v5006_v11, %s4635_s10 }
 0x4c2   :  { %1182 = vrot.lane.b32.xlu0 %v5086_v33, %s4635_s10 }
 0x4c6   :  { %1449 = vrot.lane.b32.xlu0 %v5000_v8, %s4635_s10 }
 0x4e6   :  { %v1005_v60 = vpop.xlane.xlu1 %1004 }
 0x4e7   :  { %4490 = vrcp.f32 %v1005_v60 }
 0x4e8   :  { %v1002_v3 = vpop.xlane.xlu0 %1001 }
 0x4e9   :  { %4492 = vrcp.f32 %v1002_v3 }
 0x4f4   :  { %v4491_v48 = vpop.eup %4490 }
 0x4f5   :  { %v1033_v18 = vmul.f32 %v4491_v48, %v5139_v45  ;;  %v1191_v45 = vpop.permute.xlu1 %1190 }
 0x4f6   :  { %v4493_v4 = vpop.eup %4492 }
 0x4f7   :  { %v1032_v36 = vmul.f32 %v4493_v4, %v5147_v56  ;;  %v1193_v56 = vpop.permute.xlu0 %1192 }
 0x4f9   :  { %4148 = vmatprep.mubr.msk.f32.mxu1 %vm951_vm7, %v1032_v36 }
 0x4fa   :  { %4149 = vmatmul.mubr.msk.f32.vlgmr.msra.gmra.mxu1 %vm951_vm7, %v1033_v18 }
 0x4fb   :  { %4161 = vmatpush3.xpose.msk.msra.mxu1 %vm797_vm3, %v5141_v47 }
 0x4fc   :  { %4162 = vmatprep.subr.msk.mxu1 %vm797_vm3, %v1199_v44 }
 0x4ff   :  { %4163 = vmatpush3.xpose.msk.msra.mxu1 %vm797_vm3, %v1199_v44 }
 0x500   :  { %4164 = vmatprep.subr.msk.mxu1 %vm797_vm3, %v1197_v57 }
 0x503   :  { %4165 = vmatpush3.xpose.msk.msra.mxu1 %vm797_vm3, %v1197_v57 }
 0x504   :  { %4166 = vmatprep.subr.msk.mxu1 %vm797_vm3, %v1195_v59 }
 0x507   :  { %4167 = vmatpush3.xpose.msk.msra.mxu1 %vm797_vm3, %v1195_v59 }
 0x508   :  { %4168 = vmatprep.subr.msk.mxu1 %vm797_vm3, %v1193_v56 }
 0x50b   :  { %4169 = vmatpush3.xpose.msk.msra.mxu1 %vm797_vm3, %v1193_v56 }
 0x50c   :  { %4170 = vmatprep.subr.msk.mxu1 %vm797_vm3, %v1191_v45 }
 0x50f   :  { %4171 = vmatpush3.xpose.msk.msra.mxu1 %vm797_vm3, %v1191_v45 }
 0x51b   :  { %v1011_v47 = vpop.xlane.xlu1 %1010 }
 0x51c   :  { %4494 = vrcp.f32 %v1011_v47 }
 0x51d   :  { %v1008_v25 = vpop.xlane.xlu0 %1007 }
 0x51e   :  { %4496 = vrcp.f32 %v1008_v25 }
 0x51f   :  { %v1017_v22 = vpop.xlane.xlu1 %1016 }
 0x520   :  { %4498 = vrcp.f32 %v1017_v22  ;;  %v1169_v22 = vld [vmem:[%s5957_s11] sm:$0xff] }
 0x521   :  { %v1014_v38 = vpop.xlane.xlu0 %1013 }
 0x522   :  { %4500 = vrcp.f32 %v1014_v38 }
 0x523   :  { %v1023_v1 = vpop.xlane.xlu1 %1022 }
 0x524   :  { %4502 = vrcp.f32 %v1023_v1 }
 0x525   :  { %v1020_v30 = vpop.xlane.xlu0 %1019 }
 0x526   :  { %4504 = vrcp.f32 %v1020_v30 }
 0x527   :  { %v1187_v46 = vpop.permute.xlu1 %1186 }
 0x529   :  { %v1189_v26 = vpop.permute.xlu0 %1188  ;;  %v4495_v31 = vpop.eup %4494 }
 0x52a   :  { %4172 = vmatprep.subr.msk.mxu1 %vm797_vm3, %v1189_v26  ;;  %v1035_v59 = vmul.f32 %v4495_v31, %v5156_v28 }
 0x52b   :  { %v4497_v5 = vpop.eup %4496  ;;  %v1173_v37 = vpop.permute.xlu1 %1172  ;;  %4173 = vmatpush3.xpose.msk.msra.mxu1 %vm797_vm3, %v1189_v26 }
 0x52c   :  { %4174 = vmatprep.subr.msk.mxu1 %vm797_vm3, %v1187_v46  ;;  %v1034_v44 = vmul.f32 %v4497_v5, %v5158_v9 }
 0x52d   :  { %v1171_v57 = vpop.permute.xlu0 %1170  ;;  %v4499_v60 = vpop.eup %4498 }
 0x52e   :  { %4151 = vmatprep.mubr.msk.f32.mxu1 %vm951_vm7, %v1034_v44  ;;  %v1037_v18 = vmul.f32 %v4499_v60, %v5162_v40 }
 0x52f   :  { %v4501_v3 = vpop.eup %4500  ;;  %v1177_v48 = vpop.permute.xlu1 %1176  ;;  %4152 = vmatmul.mubr.msk.f32.gmra.mxu1 %vm951_vm7, %v1035_v59 }
 0x530   :  { %4175 = vmatpush3.xpose.msk.msra.mxu1 %vm797_vm3, %v1187_v46  ;;  %v1036_v4 = vmul.f32 %v4501_v3, %v5166_v53 }
 0x531   :  { %v1175_v36 = vpop.permute.xlu0 %1174  ;;  %v4503_v56 = vpop.eup %4502  ;;  %4230 = vmatprep.subr.mxu1 %v1169_v22 }
 0x532   :  { %4154 = vmatprep.mubr.msk.f32.mxu1 %vm951_vm7, %v1036_v4  ;;  %v1039_v25 = vmul.f32 %v4503_v56, %v5170_v21 }
 0x533   :  { %v4505_v9 = vpop.eup %4504  ;;  %v1181_v45 = vpop.permute.xlu1 %1180  ;;  %4155 = vmatmul.mubr.msk.f32.gmra.mxu1 %vm951_vm7, %v1037_v18 }
 0x534   :  { %v1038_v28 = vmul.f32 %v4505_v9, %v5174_v17 }
 0x535   :  { %v1179_v47 = vpop.permute.xlu0 %1178 }
 0x536   :  { %4157 = vmatprep.mubr.msk.f32.mxu1 %vm951_vm7, %v1038_v28 }
 0x537   :  { %4158 = vmatmul.mubr.msk.f32.gmra.mxu1 %vm951_vm7, %v1039_v25  ;;  %v1185_v53 = vpop.permute.xlu1 %1184 }
 0x538   :  { %4176 = vmatprep.mubr.msk.f32.mxu1 %vm797_vm3, %v1171_v57 }
 0x539   :  { %v1183_v40 = vpop.permute.xlu0 %1182 }
 0x53b   :  { %4177 = vmatmul.mubr.msk.f32.vlgmr.msra.gmra.mxu1 %vm797_vm3, %v1173_v37  ;;  %v1448_v21 = vpop.permute.xlu1 %1447 }
 0x53c   :  { %4179 = vmatprep.mubr.msk.f32.mxu1 %vm797_vm3, %v1175_v36  ;;  %4231 = vmatpush3.msra.mxu1 %v1169_v22 }
 0x53d   :  { %v1450_v17 = vpop.permute.xlu0 %1449 }
 0x53e   :  { %4188 = vmatprep.subr.mxu0 %v1450_v17 }
 0x53f   :  { %4180 = vmatmul.mubr.msk.f32.gmra.mxu1 %vm797_vm3, %v1177_v48  ;;  %4189 = vmatpush3.msra.mxu0 %v1450_v17 }
 0x540   :  { %4182 = vmatprep.mubr.msk.f32.mxu1 %vm797_vm3, %v1179_v47  ;;  %4190 = vmatprep.subr.mxu0 %v1448_v21 }
 0x541   :  { %4191 = vmatpush3.msra.mxu0 %v1448_v21 }
 0x543   :  { %4183 = vmatmul.mubr.msk.f32.gmra.mxu1 %vm797_vm3, %v1181_v45 }
 0x544   :  { %4185 = vmatprep.mubr.msk.f32.mxu1 %vm797_vm3, %v1183_v40 }
 0x547   :  { %4186 = vmatmul.mubr.msk.f32.gmra.mxu1 %vm797_vm3, %v1185_v53 }
 0x5ba   :  { %v4150_v38 = vpop.f32.mrf.mxu1 }
 0x5bc   :  { %v1130_v1 = vpop.f32.mrf.mxu1 }
 0x5bd   :  { %4232 = vmatprep.mubr.msk.f32.mxu1 %vm797_vm3, %v1130_v1 }
 0x5be   :  { %4233 = vmatmul.mubr.msk.f32.vlgmr.msra.gmra.mxu1 %vm797_vm3, %v4150_v38 }
 0x5ef   :  { %v4153_v30 = vpop.f32.mrf.mxu1 }
 0x5f1   :  { %v1140_v46 = vpop.f32.mrf.mxu1 }
 0x5f2   :  { %4235 = vmatprep.mubr.msk.f32.mxu1 %vm797_vm3, %v1140_v46 }
 0x5f3   :  { %v4156_v26 = vpop.f32.mrf.mxu1  ;;  %4236 = vmatmul.mubr.msk.f32.gmra.mxu1 %vm797_vm3, %v4153_v30 }
 0x5f5   :  { %v1150_v31 = vpop.f32.mrf.mxu1 }
 0x5f6   :  { %4238 = vmatprep.mubr.msk.f32.mxu1 %vm797_vm3, %v1150_v31 }
 0x5f7   :  { %v4159_v5 = vpop.f32.mrf.mxu1  ;;  %4239 = vmatmul.mubr.msk.f32.gmra.mxu1 %vm797_vm3, %v4156_v26 }
 0x5f9   :  { %v1160_v37 = vpop.f32.mrf.mxu1 }
 0x5fa   :  { %4241 = vmatprep.mubr.msk.f32.mxu1 %vm797_vm3, %v1160_v37 }
 0x5fb   :  { %v4178_v44 = vpop.f32.mrf.mxu1  ;;  %4242 = vmatmul.mubr.msk.f32.gmra.mxu1 %vm797_vm3, %v4159_v5 }
 0x5fc   :  { %v1306_v57 = vadd.f32 %v4178_v44, %v5096_v49 }
 0x5fd   :  { %v1300_v59 = vpop.f32.mrf.mxu1 }
 0x5fe   :  { %v1301_v60 = vadd.f32 %v1300_v59, %v5098_v54  ;;  %v1342_v3 = vsel %vm951_vm7, %v1306_v57, -inf }
 0x5ff   :  { %1343 = vmax.xlane.f32.xlu1 %v1342_v3  ;;  %v4181_v48 = vpop.f32.mrf.mxu1 }
 0x600   :  { %v1316_v4 = vadd.f32 %v4181_v48, %v5101_v0  ;;  %v1339_v36 = vsel %vm951_vm7, %v1301_v60, -inf }
 0x601   :  { %1340 = vmax.xlane.f32.xlu0 %v1339_v36  ;;  %v1310_v18 = vpop.f32.mrf.mxu1 }
 0x602   :  { %v1311_v9 = vadd.f32 %v1310_v18, %v5105_v7  ;;  %v1348_v28 = vsel %vm951_vm7, %v1316_v4, -inf }
 0x603   :  { %v4184_v56 = vpop.f32.mrf.mxu1 }
 0x604   :  { %v5262_v45 = vadd.f32 %v4184_v56, %v5111_v27  ;;  %v1345_v17 = vsel %vm951_vm7, %v1311_v9, -inf }
 0x605   :  { %1349 = vmax.xlane.f32.xlu0 %v1348_v28  ;;  %v1320_v47 = vpop.f32.mrf.mxu1 }
 0x606   :  { %v1354_v25 = vsel %vm951_vm7, %v5262_v45, -inf  ;;  %v1321_v40 = vadd.f32 %v1320_v47, %v5116_v39 }
 0x607   :  { %1355 = vmax.xlane.f32.xlu1 %v1354_v25  ;;  %v4187_v53 = vpop.f32.mrf.mxu1 }
 0x608   :  { %v1336_v22 = vadd.f32 %v4187_v53, %v5120_v34  ;;  %v1351_v38 = vsel %vm951_vm7, %v1321_v40, -inf }
 0x609   :  { %1346 = vmax.xlane.f32.xlu0 %v1345_v17  ;;  %v1330_v1 = vpop.f32.mrf.mxu1 }
 0x60a   :  { %v1360_v21 = vsel %vm951_vm7, %v1336_v22, -inf  ;;  %v1331_v30 = vadd.f32 %v1330_v1, %v5124_v50 }
 0x60b   :  { %1361 = vmax.xlane.f32.xlu1 %v1360_v21 }
 0x60c   :  { %v1357_v46 = vsel %vm951_vm7, %v1331_v30, -inf }
 0x60d   :  { %1352 = vmax.xlane.f32.xlu0 %v1351_v38 }
 0x61c   :  { %1445 = vrot.lane.b32.xlu1 %v5012_v43, %s4635_s10 }
 0x623   :  { %1443 = vrot.lane.b32.xlu0 %v5020_v12, %s4635_s10 }
 0x627   :  { %1441 = vrot.lane.b32.xlu0 %v5026_v14, %s4635_s10 }
 0x646   :  { %1358 = vmax.xlane.f32.xlu0 %v1357_v46 }
 0x688   :  { %v1344_v26 = vpop.xlane.xlu1 %1343 }
 0x689   :  { %v1364_v31 = vsub.f32 %v1306_v57, %v1344_v26 }
 0x68a   :  { %v1341_v5 = vpop.xlane.xlu0 %1340 }
 0x68b   :  { %v1373_v37 = vmul.f32 1.442695, %v1364_v31  ;;  %v1363_v44 = vsub.f32 %v1301_v60, %v1341_v5 }
 0x68d   :  { %4506 = vpow2.f32 %v1373_v37  ;;  %v1371_v59 = vmul.f32 1.442695, %v1363_v44 }
 0x68e   :  { %v1350_v3 = vpop.xlane.xlu0 %1349 }
 0x68f   :  { %4508 = vpow2.f32 %v1371_v59  ;;  %v1366_v48 = vsub.f32 %v1316_v4, %v1350_v3 }
 0x690   :  { %v1356_v36 = vpop.xlane.xlu1 %1355 }
 0x691   :  { %v1377_v18 = vmul.f32 1.442695, %v1366_v48  ;;  %v1368_v5 = vsub.f32 %v5262_v45, %v1356_v36 }
 0x692   :  { %v1347_v56 = vpop.xlane.xlu0 %1346 }
 0x693   :  { %4510 = vpow2.f32 %v1377_v18  ;;  %v1365_v46 = vsub.f32 %v1311_v9, %v1347_v56  ;;  %v1381_v44 = vmul.f32 1.442695, %v1368_v5 }
 0x694   :  { %v1362_v28 = vpop.xlane.xlu1 %1361 }
 0x695   :  { %v1375_v26 = vmul.f32 1.442695, %v1365_v46  ;;  %v1370_v59 = vsub.f32 %v1336_v22, %v1362_v28 }
 0x696   :  { %v1353_v47 = vpop.xlane.xlu0 %1352 }
 0x697   :  { %v1367_v31 = vsub.f32 %v1321_v40, %v1353_v47  ;;  %4512 = vpow2.f32 %v1375_v26  ;;  %v1385_v3 = vmul.f32 1.442695, %v1370_v59 }
 0x698   :  { %v1446_v25 = vpop.permute.xlu1 %1445 }
 0x699   :  { %4192 = vmatprep.subr.mxu0 %v1446_v25  ;;  %v1379_v37 = vmul.f32 1.442695, %v1367_v31 }
 0x69a   :  { %v5280_v53 = vpop.eup %4506  ;;  %4193 = vmatpush3.msra.mxu0 %v1446_v25  ;;  %v1444_v57 = vpop.permute.xlu0 %1443 }
 0x69b   :  { %4194 = vmatprep.subr.mxu0 %v1444_v57  ;;  %v1390_v60 = vsel %vm951_vm7, %v5280_v53, 0.0  ;;  %4514 = vpow2.f32 %v1379_v37 }
 0x69c   :  { %v5284_v17 = vpop.eup %4508  ;;  %1391 = vadd.xlane.f32.xlu1 %v1390_v60  ;;  %4195 = vmatpush3.msra.mxu0 %v1444_v57  ;;  %4516 = vpow2.f32 %v1381_v44 }
 0x69d   :  { %v1387_v4 = vsel %vm951_vm7, %v5284_v17, 0.0  ;;  %4518 = vpow2.f32 %v1385_v3 }
 0x69e   :  { %1388 = vadd.xlane.f32.xlu0 %v1387_v4  ;;  %v1442_v21 = vpop.permute.xlu0 %1441 }
 0x69f   :  { %4196 = vmatprep.subr.mxu0 %v1442_v21 }
 0x6a0   :  { %v5288_v38 = vpop.eup %4510  ;;  %4197 = vmatpush3.msra.mxu0 %v1442_v21 }
 0x6a1   :  { %v1396_v1 = vsel %vm951_vm7, %v5288_v38, 0.0 }
 0x6a2   :  { %1397 = vadd.xlane.f32.xlu0 %v1396_v1 }
 0x6a4   :  { %v5297_v48 = vpop.eup %4512 }
 0x6a5   :  { %v1393_v9 = vsel %vm951_vm7, %v5297_v48, 0.0 }
 0x6a8   :  { %v5301_v56 = vpop.eup %4514 }
 0x6a9   :  { %v1399_v45 = vsel %vm951_vm7, %v5301_v56, 0.0  ;;  %v5305_v22 = vpop.eup %4516 }
 0x6aa   :  { %v1402_v36 = vsel %vm951_vm7, %v5305_v22, 0.0  ;;  %v5309_v28 = vpop.eup %4518 }
 0x6ad   :  { %1439 = vrot.lane.b32.xlu1 %v5034_v51, %s4635_s10 }
 0x6b8   :  { %1437 = vrot.lane.b32.xlu0 %v5042_v52, %s4635_s10 }
 0x6cf   :  { %v1359_v18 = vpop.xlane.xlu0 %1358 }
 0x6d0   :  { %v1369_v25 = vsub.f32 %v1331_v30, %v1359_v18  ;;  %v1408_v30 = vsel %vm951_vm7, %v5309_v28, 0.0 }
 0x6d1   :  { %1394 = vadd.xlane.f32.xlu1 %v1393_v9 }
 0x6d2   :  { %v1383_v40 = vmul.f32 1.442695, %v1369_v25 }
 0x6d4   :  { %4520 = vpow2.f32 %v1383_v40 }
 0x6d5   :  { %1400 = vadd.xlane.f32.xlu1 %v1399_v45 }
 0x6d9   :  { %1403 = vadd.xlane.f32.xlu1 %v1402_v36 }
 0x6dd   :  { %1409 = vadd.xlane.f32.xlu1 %v1408_v30 }
 0x6e1   :  { %v5313_v47 = vpop.eup %4520 }
 0x6e2   :  { %v1405_v57 = vsel %vm951_vm7, %v5313_v47, 0.0 }
 0x6e3   :  { %1406 = vadd.xlane.f32.xlu0 %v1405_v57 }
 0x6ee   :  { %1877 = vrot.lane.b32.xlu1 %v4969_v55, %s4636_s2 }
 0x6f2   :  { %1875 = vrot.lane.b32.xlu1 %v4973_v58, %s4636_s2 }
 0x6f6   :  { %1871 = vrot.lane.b32.xlu1 %v4987_v2, %s4636_s2 }
 0x6f9   :  { %1435 = vrot.lane.b32.xlu0 %v5050_v19, %s4635_s10 }
 0x6fa   :  { %1867 = vrot.lane.b32.xlu1 %v5004_v10, %s4636_s2 }
 0x6fd   :  { %1873 = vrot.lane.b32.xlu0 %v4981_v63, %s4636_s2 }
 0x6fe   :  { %1863 = vrot.lane.b32.xlu1 %v5032_v15, %s4636_s2 }
 0x701   :  { %1869 = vrot.lane.b32.xlu0 %v4993_v6, %s4636_s2 }
 0x702   :  { %1849 = vrot.lane.b32.xlu1 %v5056_v24, %s4636_s2 }
 0x705   :  { %1865 = vrot.lane.b32.xlu0 %v5018_v42, %s4636_s2 }
 0x706   :  { %1853 = vrot.lane.b32.xlu1 %v5070_v62, %s4636_s2 }
 0x709   :  { %1847 = vrot.lane.b32.xlu0 %v4954_v41, %s4636_s2 }
 0x70a   :  { %1857 = vrot.lane.b32.xlu1 %v5082_v32, %s4636_s2 }
 0x70d   :  { %1851 = vrot.lane.b32.xlu0 %v5061_v61, %s4636_s2 }
 0x70e   :  { %1861 = vrot.lane.b32.xlu1 %v5092_v35, %s4636_s2 }
 0x711   :  { %1855 = vrot.lane.b32.xlu0 %v5074_v29, %s4636_s2 }
 0x712   :  { %2423 = vrot.lane.b32.xlu1 %v4973_v58, %s4637_s9 }
 0x715   :  { %1859 = vrot.lane.b32.xlu0 %v5086_v33, %s4636_s2 }
 0x716   :  { %2419 = vrot.lane.b32.xlu1 %v4987_v2, %s4637_s9 }
 0x719   :  { %2425 = vrot.lane.b32.xlu0 %v4969_v55, %s4637_s9 }
 0x71a   :  { %2415 = vrot.lane.b32.xlu1 %v5004_v10, %s4637_s9 }
 0x71d   :  { %2421 = vrot.lane.b32.xlu0 %v4981_v63, %s4637_s9 }
 0x71e   :  { %2411 = vrot.lane.b32.xlu1 %v5032_v15, %s4637_s9 }
 0x721   :  { %2417 = vrot.lane.b32.xlu0 %v4993_v6, %s4637_s9 }
 0x722   :  { %2397 = vrot.lane.b32.xlu1 %v5056_v24, %s4637_s9 }
 0x725   :  { %v1392_v58 = vpop.xlane.xlu1 %1391  ;;  %2413 = vrot.lane.b32.xlu0 %v5018_v42, %s4637_s9 }
 0x726   :  { %2401 = vrot.lane.b32.xlu1 %v5070_v62, %s4637_s9 }
 0x727   :  { %v1389_v55 = vpop.xlane.xlu0 %1388 }
 0x728   :  { %4522 = vrcp.f32 %v1389_v55 }
 0x729   :  { %v1440_v2 = vpop.permute.xlu1 %1439  ;;  %2395 = vrot.lane.b32.xlu0 %v4954_v41, %s4637_s9  ;;  %4524 = vrcp.f32 %v1392_v58 }
 0x72a   :  { %2405 = vrot.lane.b32.xlu1 %v5082_v32, %s4637_s9  ;;  %4198 = vmatprep.subr.mxu0 %v1440_v2 }
 0x72b   :  { %4199 = vmatpush3.msra.mxu0 %v1440_v2  ;;  %v1398_v63 = vpop.xlane.xlu0 %1397 }
 0x72d   :  { %2399 = vrot.lane.b32.xlu0 %v5061_v61, %s4637_s9 }
 0x72e   :  { %2409 = vrot.lane.b32.xlu1 %v5092_v35, %s4637_s9 }
 0x72f   :  { %v1438_v6 = vpop.permute.xlu0 %1437 }
 0x730   :  { %4200 = vmatprep.subr.mxu0 %v1438_v6 }
 0x731   :  { %2403 = vrot.lane.b32.xlu0 %v5074_v29, %s4637_s9  ;;  %4201 = vmatpush3.msra.mxu0 %v1438_v6 }
 0x735   :  { %v4523_v10 = vpop.eup %4522  ;;  %2407 = vrot.lane.b32.xlu0 %v5086_v33, %s4637_s9  ;;  %v1588_v33 = vld [vmem:[%s5957_s11 + $0x8] sm:$0xff] }
 0x736   :  { %v1419_v41 = vmul.f32 %v4523_v10, %v5284_v17  ;;  %v4525_v29 = vpop.eup %4524 }
 0x737   :  { %v1420_v60 = vmul.f32 %v4525_v29, %v5280_v53 }
 0x738   :  { %4204 = vmatprep.mubr.msk.f32.mxu0 %vm951_vm7, %v1419_v41 }
 0x75a   :  { %v1395_v42 = vpop.xlane.xlu1 %1394 }
 0x75b   :  { %4526 = vrcp.f32 %v1395_v42 }
 0x75c   :  { %4528 = vrcp.f32 %v1398_v63 }
 0x75e   :  { %v1401_v15 = vpop.xlane.xlu1 %1400 }
 0x75f   :  { %4530 = vrcp.f32 %v1401_v15 }
 0x762   :  { %v1404_v24 = vpop.xlane.xlu1 %1403 }
 0x763   :  { %4532 = vrcp.f32 %v1404_v24 }
 0x766   :  { %v1410_v61 = vpop.xlane.xlu1 %1409 }
 0x767   :  { %4534 = vrcp.f32 %v1410_v61 }
 0x768   :  { %v4527_v32 = vpop.eup %4526 }
 0x769   :  { %v4529_v17 = vpop.eup %4528  ;;  %v1421_v4 = vmul.f32 %v4527_v32, %v5297_v48 }
 0x76a   :  { %v1878_v1 = vpop.permute.xlu1 %1877  ;;  %v1422_v46 = vmul.f32 %v4529_v17, %v5288_v38 }
 0x76c   :  { %v1407_v62 = vpop.xlane.xlu0 %1406  ;;  %v4531_v21 = vpop.eup %4530 }
 0x76d   :  { %4536 = vrcp.f32 %v1407_v62  ;;  %v1423_v53 = vmul.f32 %v4531_v21, %v5301_v56 }
 0x76e   :  { %v1876_v48 = vpop.permute.xlu1 %1875 }
 0x770   :  { %v1436_v35 = vpop.permute.xlu0 %1435  ;;  %v4533_v26 = vpop.eup %4532 }
 0x771   :  { %4202 = vmatprep.subr.mxu0 %v1436_v35  ;;  %v1424_v5 = vmul.f32 %v4533_v26, %v5305_v22 }
 0x772   :  { %4203 = vmatpush3.msra.mxu0 %v1436_v35  ;;  %v1872_v25 = vpop.permute.xlu1 %1871 }
 0x773   :  { %4205 = vmatmul.mubr.msk.f32.vlgmr.msra.gmra.mxu0 %vm951_vm7, %v1420_v60  ;;  %4216 = vmatprep.subr.mxu0 %v1588_v33 }
 0x774   :  { %4207 = vmatprep.mubr.msk.f32.mxu0 %vm951_vm7, %v1421_v4  ;;  %4217 = vmatpush3.msra.mxu0 %v1588_v33  ;;  %v4535_v31 = vpop.eup %4534  ;;  %v1874_v38 = vpop.permute.xlu0 %1873 }
 0x775   :  { %4244 = vmatprep.subr.msk.mxu0 %vm797_vm3, %v1878_v1  ;;  %v1426_v59 = vmul.f32 %v4535_v31, %v5309_v28 }
 0x776   :  { %v1868_v40 = vpop.permute.xlu1 %1867 }
 0x777   :  { %4208 = vmatmul.mubr.msk.f32.gmra.mxu0 %vm951_vm7, %v1422_v46 }
 0x778   :  { %4210 = vmatprep.mubr.msk.f32.mxu0 %vm951_vm7, %v1423_v53  ;;  %v1870_v3 = vpop.permute.xlu0 %1869 }
 0x77a   :  { %v4537_v37 = vpop.eup %4536  ;;  %v1864_v30 = vpop.permute.xlu1 %1863 }
 0x77b   :  { %4211 = vmatmul.mubr.msk.f32.gmra.mxu0 %vm951_vm7, %v1424_v5  ;;  %v1425_v44 = vmul.f32 %v4537_v37, %v5313_v47 }
 0x77c   :  { %v1866_v18 = vpop.permute.xlu0 %1865 }
 0x77d   :  { %4213 = vmatprep.mubr.msk.f32.mxu0 %vm951_vm7, %v1425_v44 }
 0x77e   :  { %v1850_v2 = vpop.permute.xlu1 %1849 }
 0x77f   :  { %4214 = vmatmul.mubr.msk.f32.gmra.mxu0 %vm951_vm7, %v1426_v59 }
 0x780   :  { %v1848_v9 = vpop.permute.xlu0 %1847 }
 0x782   :  { %v1854_v10 = vpop.permute.xlu1 %1853 }
 0x784   :  { %v1852_v36 = vpop.permute.xlu0 %1851 }
 0x786   :  { %v1858_v42 = vpop.permute.xlu1 %1857 }
 0x788   :  { %v1856_v58 = vpop.permute.xlu0 %1855 }
 0x78a   :  { %v1862_v24 = vpop.permute.xlu1 %1861 }
 0x78c   :  { %v1860_v6 = vpop.permute.xlu0 %1859 }
 0x78e   :  { %v2424_v62 = vpop.permute.xlu1 %2423 }
 0x790   :  { %v2426_v41 = vpop.permute.xlu0 %2425 }
 0x792   :  { %v2420_v32 = vpop.permute.xlu1 %2419 }
 0x794   :  { %v2422_v15 = vpop.permute.xlu0 %2421 }
 0x796   :  { %v2416_v33 = vpop.permute.xlu1 %2415 }
 0x798   :  { %v2418_v61 = vpop.permute.xlu0 %2417 }
 0x79a   :  { %v2412_v60 = vpop.permute.xlu1 %2411 }
 0x79c   :  { %v2414_v29 = vpop.permute.xlu0 %2413 }
 0x79e   :  { %v2398_v17 = vpop.permute.xlu1 %2397 }
 0x7a0   :  { %v2396_v35 = vpop.permute.xlu0 %2395 }
 0x7a2   :  { %v2402_v21 = vpop.permute.xlu1 %2401 }
 0x7a4   :  { %v2400_v4 = vpop.permute.xlu0 %2399 }
 0x7a6   :  { %v2406_v46 = vpop.permute.xlu1 %2405 }
 0x7aa   :  { %v2410_v53 = vpop.permute.xlu1 %2409 }
 0x833   :  { %v4206_v56 = vpop.f32.mrf.mxu0 }
 0x835   :  { %v1549_v45 = vpop.f32.mrf.mxu0 }
 0x836   :  { %4218 = vmatprep.mubr.msk.f32.mxu0 %vm797_vm3, %v1549_v45 }
 0x837   :  { %v4209_v22 = vpop.f32.mrf.mxu0  ;;  %4219 = vmatmul.mubr.msk.f32.vlgmr.msra.gmra.mxu0 %vm797_vm3, %v4206_v56 }
 0x838   :  { %4245 = vmatpush3.xpose.msk.msra.mxu0 %vm797_vm3, %v1878_v1  ;;  %v2404_v1 = vpop.permute.xlu0 %2403 }
 0x839   :  { %4246 = vmatprep.subr.msk.mxu0 %vm797_vm3, %v1876_v48  ;;  %v1559_v28 = vpop.f32.mrf.mxu0 }
 0x83a   :  { %4221 = vmatprep.mubr.msk.f32.mxu0 %vm797_vm3, %v1559_v28 }
 0x83b   :  { %v4212_v47 = vpop.f32.mrf.mxu0  ;;  %4222 = vmatmul.mubr.msk.f32.gmra.mxu0 %vm797_vm3, %v4209_v22 }
 0x83c   :  { %4247 = vmatpush3.xpose.msk.msra.mxu0 %vm797_vm3, %v1876_v48  ;;  %v2408_v26 = vpop.permute.xlu0 %2407 }
 0x83d   :  { %4248 = vmatprep.subr.msk.mxu0 %vm797_vm3, %v1874_v38  ;;  %v1569_v57 = vpop.f32.mrf.mxu0 }
 0x83e   :  { %4224 = vmatprep.mubr.msk.f32.mxu0 %vm797_vm3, %v1569_v57 }
 0x83f   :  { %v4215_v55 = vpop.f32.mrf.mxu0  ;;  %4225 = vmatmul.mubr.msk.f32.gmra.mxu0 %vm797_vm3, %v4212_v47 }
 0x840   :  { %4249 = vmatpush3.xpose.msk.msra.mxu0 %vm797_vm3, %v1874_v38 }
 0x841   :  { %4250 = vmatprep.subr.msk.mxu0 %vm797_vm3, %v1872_v25  ;;  %v1579_v63 = vpop.f32.mrf.mxu0 }
 0x842   :  { %4227 = vmatprep.mubr.msk.f32.mxu0 %vm797_vm3, %v1579_v63 }
 0x843   :  { %4228 = vmatmul.mubr.msk.f32.gmra.mxu0 %vm797_vm3, %v4215_v55 }
 0x844   :  { %4251 = vmatpush3.xpose.msk.msra.mxu0 %vm797_vm3, %v1872_v25  ;;  %4260 = vmatprep.mubr.msk.f32.mxu0 %vm797_vm3, %v1848_v9 }
 0x845   :  { %4252 = vmatprep.subr.msk.mxu0 %vm797_vm3, %v1870_v3 }
 0x848   :  { %4253 = vmatpush3.xpose.msk.msra.mxu0 %vm797_vm3, %v1870_v3 }
 0x849   :  { %4254 = vmatprep.subr.msk.mxu0 %vm797_vm3, %v1868_v40 }
 0x84c   :  { %4255 = vmatpush3.xpose.msk.msra.mxu0 %vm797_vm3, %v1868_v40 }
 0x84d   :  { %4256 = vmatprep.subr.msk.mxu0 %vm797_vm3, %v1866_v18 }
 0x850   :  { %4257 = vmatpush3.xpose.msk.msra.mxu0 %vm797_vm3, %v1866_v18 }
 0x851   :  { %4258 = vmatprep.subr.msk.mxu0 %vm797_vm3, %v1864_v30 }
 0x854   :  { %4259 = vmatpush3.xpose.msk.msra.mxu0 %vm797_vm3, %v1864_v30 }
 0x855   :  { %4314 = vmatprep.subr.msk.mxu0 %vm797_vm3, %v2426_v41 }
 0x857   :  { %4261 = vmatmul.mubr.msk.f32.vlgmr.msra.gmra.mxu0 %vm797_vm3, %v1850_v2 }
 0x858   :  { %4263 = vmatprep.mubr.msk.f32.mxu0 %vm797_vm3, %v1852_v36  ;;  %4315 = vmatpush3.xpose.msk.msra.mxu0 %vm797_vm3, %v2426_v41 }
 0x859   :  { %4316 = vmatprep.subr.msk.mxu0 %vm797_vm3, %v2424_v62 }
 0x85b   :  { %4264 = vmatmul.mubr.msk.f32.gmra.mxu0 %vm797_vm3, %v1854_v10 }
 0x85c   :  { %4266 = vmatprep.mubr.msk.f32.mxu0 %vm797_vm3, %v1856_v58  ;;  %4317 = vmatpush3.xpose.msk.msra.mxu0 %vm797_vm3, %v2424_v62 }
 0x85d   :  { %4318 = vmatprep.subr.msk.mxu0 %vm797_vm3, %v2422_v15 }
 0x85f   :  { %4267 = vmatmul.mubr.msk.f32.gmra.mxu0 %vm797_vm3, %v1858_v42 }
 0x860   :  { %4269 = vmatprep.mubr.msk.f32.mxu0 %vm797_vm3, %v1860_v6  ;;  %4319 = vmatpush3.xpose.msk.msra.mxu0 %vm797_vm3, %v2422_v15 }
 0x861   :  { %4320 = vmatprep.subr.msk.mxu0 %vm797_vm3, %v2420_v32 }
 0x863   :  { %4270 = vmatmul.mubr.msk.f32.gmra.mxu0 %vm797_vm3, %v1862_v24 }
 0x864   :  { %4321 = vmatpush3.xpose.msk.msra.mxu0 %vm797_vm3, %v2420_v32  ;;  %4330 = vmatprep.mubr.msk.f32.mxu0 %vm797_vm3, %v2396_v35 }
 0x865   :  { %4322 = vmatprep.subr.msk.mxu0 %vm797_vm3, %v2418_v61 }
 0x868   :  { %4323 = vmatpush3.xpose.msk.msra.mxu0 %vm797_vm3, %v2418_v61 }
 0x869   :  { %4324 = vmatprep.subr.msk.mxu0 %vm797_vm3, %v2416_v33 }
 0x86c   :  { %4325 = vmatpush3.xpose.msk.msra.mxu0 %vm797_vm3, %v2416_v33 }
 0x86d   :  { %4326 = vmatprep.subr.msk.mxu0 %vm797_vm3, %v2414_v29 }
 0x870   :  { %4327 = vmatpush3.xpose.msk.msra.mxu0 %vm797_vm3, %v2414_v29 }
 0x871   :  { %4328 = vmatprep.subr.msk.mxu0 %vm797_vm3, %v2412_v60 }
 0x874   :  { %4329 = vmatpush3.xpose.msk.msra.mxu0 %vm797_vm3, %v2412_v60 }
 0x877   :  { %4331 = vmatmul.mubr.msk.f32.vlgmr.msra.gmra.mxu0 %vm797_vm3, %v2398_v17 }
 0x878   :  { %4333 = vmatprep.mubr.msk.f32.mxu0 %vm797_vm3, %v2400_v4 }
 0x87b   :  { %4334 = vmatmul.mubr.msk.f32.gmra.mxu0 %vm797_vm3, %v2402_v21 }
 0x87c   :  { %4336 = vmatprep.mubr.msk.f32.mxu0 %vm797_vm3, %v2404_v1 }
 0x87f   :  { %4337 = vmatmul.mubr.msk.f32.gmra.mxu0 %vm797_vm3, %v2406_v46 }
 0x880   :  { %4339 = vmatprep.mubr.msk.f32.mxu0 %vm797_vm3, %v2408_v26 }
 0x883   :  { %4340 = vmatmul.mubr.msk.f32.gmra.mxu0 %vm797_vm3, %v2410_v53 }
 0x8f7   :  { %v5458_v31 = vpop.f32.mrf.mxu0 }
 0x8f9   :  { %v5460_v5 = vpop.f32.mrf.mxu0 }
 0x8fb   :  { %v5462_v37 = vpop.f32.mrf.mxu0 }
 0x8fd   :  { %v5464_v44 = vpop.f32.mrf.mxu0 }
 0x8ff   :  { %v5466_v59 = vpop.f32.mrf.mxu0 }
 0x901   :  { %v5468_v38 = vpop.f32.mrf.mxu0 }
 0x903   :  { %v5470_v3 = vpop.f32.mrf.mxu0 }
 0x905   :  { %v5472_v48 = vpop.f32.mrf.mxu0 }
 0x917   :  { %v4262_v18 = vpop.f32.mrf.mxu0 }
 0x918   :  { %v1983_v25 = vadd.f32 %v4262_v18, %v5096_v49 }
 0x919   :  { %v1977_v9 = vpop.f32.mrf.mxu0 }
 0x91a   :  { %v1978_v56 = vadd.f32 %v1977_v9, %v5098_v54  ;;  %v2019_v40 = vsel %vm951_vm7, %v1983_v25, -inf }
 0x91b   :  { %2020 = vmax.xlane.f32.xlu1 %v2019_v40  ;;  %v4265_v45 = vpop.f32.mrf.mxu0 }
 0x91c   :  { %v1993_v22 = vadd.f32 %v4265_v45, %v5101_v0  ;;  %v2016_v36 = vsel %vm951_vm7, %v1978_v56, -inf }
 0x91d   :  { %2017 = vmax.xlane.f32.xlu0 %v2016_v36  ;;  %v1987_v28 = vpop.f32.mrf.mxu0 }
 0x91e   :  { %v1988_v47 = vadd.f32 %v1987_v28, %v5105_v7  ;;  %v2025_v58 = vsel %vm951_vm7, %v1993_v22, -inf }
 0x91f   :  { %v4268_v30 = vpop.f32.mrf.mxu0 }
 0x920   :  { %v2003_v57 = vadd.f32 %v4268_v30, %v5111_v27  ;;  %v2022_v41 = vsel %vm951_vm7, %v1988_v47, -inf }
 0x921   :  { %2026 = vmax.xlane.f32.xlu0 %v2025_v58  ;;  %v1997_v55 = vpop.f32.mrf.mxu0 }
 0x922   :  { %v2031_v2 = vsel %vm951_vm7, %v2003_v57, -inf  ;;  %v1998_v6 = vadd.f32 %v1997_v55, %v5116_v39 }
 0x923   :  { %2032 = vmax.xlane.f32.xlu1 %v2031_v2  ;;  %v4271_v63 = vpop.f32.mrf.mxu0 }
 0x924   :  { %v2013_v10 = vadd.f32 %v4271_v63, %v5120_v34  ;;  %v2028_v61 = vsel %vm951_vm7, %v1998_v6, -inf }
 0x925   :  { %2023 = vmax.xlane.f32.xlu0 %v2022_v41  ;;  %v2007_v42 = vpop.f32.mrf.mxu0 }
 0x926   :  { %v2037_v15 = vsel %vm951_vm7, %v2013_v10, -inf  ;;  %v2008_v24 = vadd.f32 %v2007_v42, %v5124_v50 }
 0x927   :  { %2038 = vmax.xlane.f32.xlu1 %v2037_v15 }
 0x928   :  { %v2034_v62 = vsel %vm951_vm7, %v2008_v24, -inf }
 0x929   :  { %2029 = vmax.xlane.f32.xlu0 %v2028_v61 }
 0x92d   :  { %2035 = vmax.xlane.f32.xlu0 %v2034_v62 }
 0x938   :  { %2116 = vrot.lane.b32.xlu1 %v5006_v11, %s4636_s2 }
 0x93c   :  { %2114 = vrot.lane.b32.xlu1 %v5012_v43, %s4636_s2 }
 0x940   :  { %2112 = vrot.lane.b32.xlu1 %v5020_v12, %s4636_s2 }
 0x943   :  { %2118 = vrot.lane.b32.xlu0 %v5000_v8, %s4636_s2 }
 0x944   :  { %2108 = vrot.lane.b32.xlu1 %v5034_v51, %s4636_s2 }
 0x947   :  { %2110 = vrot.lane.b32.xlu0 %v5026_v14, %s4636_s2 }
 0x9a4   :  { %v2021_v29 = vpop.xlane.xlu1 %2020 }
 0x9a5   :  { %v2041_v32 = vsub.f32 %v1983_v25, %v2021_v29 }
 0x9a6   :  { %v2018_v35 = vpop.xlane.xlu0 %2017 }
 0x9a7   :  { %v2050_v33 = vmul.f32 1.442695, %v2041_v32  ;;  %v2040_v60 = vsub.f32 %v1978_v56, %v2018_v35 }
 0x9a9   :  { %4538 = vpow2.f32 %v2050_v33  ;;  %v2048_v17 = vmul.f32 1.442695, %v2040_v60 }
 0x9aa   :  { %v2027_v4 = vpop.xlane.xlu0 %2026 }
 0x9ab   :  { %4540 = vpow2.f32 %v2048_v17  ;;  %v2043_v21 = vsub.f32 %v1993_v22, %v2027_v4 }
 0x9ac   :  { %v2033_v1 = vpop.xlane.xlu1 %2032 }
 0x9ad   :  { %v2054_v46 = vmul.f32 1.442695, %v2043_v21  ;;  %v2045_v26 = vsub.f32 %v2003_v57, %v2033_v1 }
 0x9ae   :  { %v2024_v53 = vpop.xlane.xlu0 %2023 }
 0x9af   :  { %4542 = vpow2.f32 %v2054_v46  ;;  %v2058_v18 = vmul.f32 1.442695, %v2045_v26  ;;  %v2042_v9 = vsub.f32 %v1988_v47, %v2024_v53  ;;  %v4332_v26 = vpop.f32.mrf.mxu0 }
 0x9b0   :  { %v2039_v40 = vpop.xlane.xlu1 %2038 }
 0x9b1   :  { %4544 = vpow2.f32 %v2058_v18  ;;  %v2052_v45 = vmul.f32 1.442695, %v2042_v9  ;;  %v2047_v36 = vsub.f32 %v2013_v10, %v2039_v40  ;;  %v2525_v53 = vpop.f32.mrf.mxu0 }
 0x9b2   :  { %v2030_v25 = vpop.xlane.xlu0 %2029 }
 0x9b3   :  { %4546 = vpow2.f32 %v2052_v45  ;;  %v2062_v28 = vmul.f32 1.442695, %v2047_v36  ;;  %v2044_v56 = vsub.f32 %v1998_v6, %v2030_v25  ;;  %v4335_v18 = vpop.f32.mrf.mxu0  ;;  %v5539_v45 = vadd.f32 %v4332_v26, %v5096_v49 }
 0x9b4   :  { %v2117_v30 = vpop.permute.xlu1 %2116 }
 0x9b5   :  { %4548 = vpow2.f32 %v2062_v28  ;;  %v2056_v58 = vmul.f32 1.442695, %v2044_v56  ;;  %v2535_v9 = vpop.f32.mrf.mxu0  ;;  %v2567_v28 = vsel %vm951_vm7, %v5539_v45, -inf  ;;  %v5547_v56 = vadd.f32 %v2525_v53, %v5098_v54 }
 0x9b6   :  { %v5502_v55 = vpop.eup %4538  ;;  %v2036_v22 = vpop.xlane.xlu0 %2035  ;;  %v5555_v49 = vadd.f32 %v2535_v9, %v5105_v7 }
 0x9b7   :  { %4550 = vpow2.f32 %v2056_v58  ;;  %v2046_v57 = vsub.f32 %v2008_v24, %v2036_v22  ;;  %v2067_v2 = vsel %vm951_vm7, %v5502_v55, 0.0  ;;  %v4338_v40 = vpop.f32.mrf.mxu0 }
 0x9b8   :  { %v5506_v47 = vpop.eup %4540  ;;  %2068 = vadd.xlane.f32.xlu1 %v2067_v2  ;;  %v2115_v10 = vpop.permute.xlu1 %2114  ;;  %v5542_v25 = vadd.f32 %v4338_v40, %v5111_v27  ;;  %v2564_v27 = vsel %vm951_vm7, %v5547_v56, -inf }
 0x9b9   :  { %v2060_v63 = vmul.f32 1.442695, %v2046_v57  ;;  %v2064_v41 = vsel %vm951_vm7, %v5506_v47, 0.0  ;;  %v2545_v36 = vpop.f32.mrf.mxu0  ;;  %v5562_v57 = vadd.f32 %v4335_v18, %v5101_v0 }
 0x9ba   :  { %2065 = vadd.xlane.f32.xlu0 %v2064_v41  ;;  %v2119_v6 = vpop.permute.xlu0 %2118  ;;  %v2579_v22 = vsel %vm951_vm7, %v5542_v25, -inf  ;;  %v5567_v2 = vadd.f32 %v2545_v36, %v5116_v39 }
 0x9bb   :  { %4552 = vpow2.f32 %v2060_v63  ;;  %4272 = vmatprep.subr.mxu1 %v2119_v6  ;;  %v2573_v7 = vsel %vm951_vm7, %v5562_v57, -inf }
 0x9bc   :  { %v5510_v42 = vpop.eup %4542  ;;  %4273 = vmatpush3.msra.mxu1 %v2119_v6  ;;  %v2113_v61 = vpop.permute.xlu1 %2112  ;;  %v2576_v0 = vsel %vm951_vm7, %v5567_v2, -inf }
 0x9bd   :  { %4274 = vmatprep.subr.mxu1 %v2117_v30  ;;  %v2073_v15 = vsel %vm951_vm7, %v5510_v42, 0.0 }
 0x9be   :  { %v5514_v24 = vpop.eup %4544  ;;  %2074 = vadd.xlane.f32.xlu1 %v2073_v15  ;;  %4275 = vmatpush3.msra.mxu1 %v2117_v30  ;;  %v2111_v33 = vpop.permute.xlu0 %2110 }
 0x9bf   :  { %4276 = vmatprep.subr.mxu1 %v2115_v10  ;;  %v2079_v29 = vsel %vm951_vm7, %v5514_v24, 0.0  ;;  %v4341_v30 = vpop.f32.mrf.mxu0 }
 0x9c0   :  { %v5516_v62 = vpop.eup %4546  ;;  %4277 = vmatpush3.msra.mxu1 %v2115_v10  ;;  %v2109_v17 = vpop.permute.xlu1 %2108  ;;  %v5550_v58 = vadd.f32 %v4341_v30, %v5120_v34  ;;  %v2570_v34 = vsel %vm951_vm7, %v5555_v49, -inf }
 0x9c1   :  { %4278 = vmatprep.subr.mxu1 %v2113_v61  ;;  %v2070_v32 = vsel %vm951_vm7, %v5516_v62, 0.0  ;;  %v2555_v63 = vpop.f32.mrf.mxu0 }
 0x9c2   :  { %v5522_v35 = vpop.eup %4548  ;;  %2080 = vadd.xlane.f32.xlu1 %v2079_v29  ;;  %2071 = vadd.xlane.f32.xlu0 %v2070_v32  ;;  %v2585_v54 = vsel %vm951_vm7, %v5550_v58, -inf  ;;  %v5572_v10 = vadd.f32 %v2555_v63, %v5124_v50 }
 0x9c3   :  { %4279 = vmatpush3.msra.mxu1 %v2113_v61  ;;  %v2085_v4 = vsel %vm951_vm7, %v5522_v35, 0.0 }
 0x9c4   :  { %v5524_v60 = vpop.eup %4550  ;;  %4280 = vmatprep.subr.mxu1 %v2111_v33  ;;  %v2582_v41 = vsel %vm951_vm7, %v5572_v10, -inf }
 0x9c5   :  { %4281 = vmatpush3.msra.mxu1 %v2111_v33  ;;  %v2076_v21 = vsel %vm951_vm7, %v5524_v60, 0.0 }
 0x9c6   :  { %4282 = vmatprep.subr.mxu1 %v2109_v17  ;;  %2086 = vadd.xlane.f32.xlu1 %v2085_v4 }
 0x9c7   :  { %2077 = vadd.xlane.f32.xlu0 %v2076_v21  ;;  %4283 = vmatpush3.msra.mxu1 %v2109_v17  ;;  %v2257_v17 = vld [vmem:[%s5957_s11 + $0x10] sm:$0xff] }
 0x9c8   :  { %v5530_v1 = vpop.eup %4552 }
 0x9c9   :  { %v2082_v46 = vsel %vm951_vm7, %v5530_v1, 0.0 }
 0x9cb   :  { %2083 = vadd.xlane.f32.xlu0 %v2082_v46 }
 0x9d7   :  { %2104 = vrot.lane.b32.xlu1 %v5050_v19, %s4636_s2 }
 0x9e1   :  { %2106 = vrot.lane.b32.xlu0 %v5042_v52, %s4636_s2 }
 0x9fb   :  { %2568 = vmax.xlane.f32.xlu1 %v2567_v28 }
 0x9ff   :  { %2580 = vmax.xlane.f32.xlu1 %v2579_v22 }
 0xa00   :  { %2565 = vmax.xlane.f32.xlu0 %v2564_v27 }
 0xa03   :  { %2586 = vmax.xlane.f32.xlu1 %v2585_v54 }
 0xa04   :  { %2571 = vmax.xlane.f32.xlu0 %v2570_v34 }
 0xa08   :  { %2574 = vmax.xlane.f32.xlu0 %v2573_v7 }
 0xa0c   :  { %2577 = vmax.xlane.f32.xlu0 %v2576_v0 }
 0xa10   :  { %2583 = vmax.xlane.f32.xlu0 %v2582_v41 }
 0xa14   :  { %2664 = vrot.lane.b32.xlu1 %v5006_v11, %s4637_s9 }
 0xa18   :  { %2662 = vrot.lane.b32.xlu1 %v5012_v43, %s4637_s9 }
 0xa1c   :  { %2660 = vrot.lane.b32.xlu1 %v5020_v12, %s4637_s9 }
 0xa20   :  { %2656 = vrot.lane.b32.xlu1 %v5034_v51, %s4637_s9 }
 0xa26   :  { %2666 = vrot.lane.b32.xlu0 %v5000_v8, %s4637_s9 }
 0xa2a   :  { %2658 = vrot.lane.b32.xlu0 %v5026_v14, %s4637_s9 }
 0xa41   :  { %v2069_v50 = vpop.xlane.xlu1 %2068 }
 0xa43   :  { %v2066_v39 = vpop.xlane.xlu0 %2065 }
 0xa44   :  { %4554 = vrcp.f32 %v2066_v39 }
 0xa45   :  { %4556 = vrcp.f32 %v2069_v50 }
 0xa47   :  { %v2075_v6 = vpop.xlane.xlu1 %2074 }
 0xa4b   :  { %v2072_v11 = vpop.xlane.xlu0 %2071  ;;  %v2081_v43 = vpop.xlane.xlu1 %2080 }
 0xa4c   :  { %4558 = vrcp.f32 %v2072_v11 }
 0xa4d   :  { %4560 = vrcp.f32 %v2075_v6 }
 0xa4f   :  { %v2087_v61 = vpop.xlane.xlu1 %2086 }
 0xa50   :  { %v2078_v15 = vpop.xlane.xlu0 %2077 }
 0xa51   :  { %v4555_v12 = vpop.eup %4554  ;;  %4562 = vrcp.f32 %v2078_v15 }
 0xa52   :  { %v2096_v51 = vmul.f32 %v4555_v12, %v5506_v47  ;;  %4564 = vrcp.f32 %v2081_v43  ;;  %v4557_v14 = vpop.eup %4556 }
 0xa53   :  { %v2105_v33 = vpop.permute.xlu1 %2104  ;;  %v2097_v4 = vmul.f32 %v4557_v14, %v5502_v55 }
 0xa54   :  { %v2084_v8 = vpop.xlane.xlu0 %2083  ;;  %4288 = vmatprep.mubr.msk.f32.mxu1 %vm951_vm7, %v2096_v51 }
 0xa55   :  { %4566 = vrcp.f32 %v2084_v8 }
 0xa56   :  { %4568 = vrcp.f32 %v2087_v61 }
 0xa58   :  { %v2107_v29 = vpop.permute.xlu0 %2106 }
 0xa59   :  { %4284 = vmatprep.subr.mxu1 %v2107_v29  ;;  %v4559_v32 = vpop.eup %4558 }
 0xa5a   :  { %4285 = vmatpush3.msra.mxu1 %v2107_v29  ;;  %v2098_v47 = vmul.f32 %v4559_v32, %v5516_v62  ;;  %v4561_v21 = vpop.eup %4560 }
 0xa5b   :  { %4286 = vmatprep.subr.mxu1 %v2105_v33  ;;  %v2099_v26 = vmul.f32 %v4561_v21, %v5510_v42 }
 0xa5c   :  { %4287 = vmatpush3.msra.mxu1 %v2105_v33 }
 0xa5d   :  { %4289 = vmatmul.mubr.msk.f32.vlgmr.msra.gmra.mxu1 %vm951_vm7, %v2097_v4  ;;  %4300 = vmatprep.subr.mxu1 %v2257_v17 }
 0xa5e   :  { %v4563_v46 = vpop.eup %4562  ;;  %4291 = vmatprep.mubr.msk.f32.mxu1 %vm951_vm7, %v2098_v47  ;;  %4301 = vmatpush3.msra.mxu1 %v2257_v17 }
 0xa5f   :  { %v2100_v53 = vmul.f32 %v4563_v46, %v5524_v60  ;;  %v4565_v18 = vpop.eup %4564  ;;  %v5653_v46 = vpop.f32.mrf.mxu1 }
 0xa60   :  { %v2101_v62 = vmul.f32 %v4565_v18, %v5514_v24 }
 0xa61   :  { %4292 = vmatmul.mubr.msk.f32.gmra.mxu1 %vm951_vm7, %v2099_v26  ;;  %v5655_v26 = vpop.f32.mrf.mxu1 }
 0xa62   :  { %v4567_v55 = vpop.eup %4566  ;;  %4294 = vmatprep.mubr.msk.f32.mxu1 %vm951_vm7, %v2100_v53 }
 0xa63   :  { %v2102_v9 = vmul.f32 %v4567_v55, %v5530_v1  ;;  %v4569_v40 = vpop.eup %4568  ;;  %v5657_v53 = vpop.f32.mrf.mxu1 }
 0xa64   :  { %v2103_v36 = vmul.f32 %v4569_v40, %v5522_v35 }
 0xa65   :  { %4295 = vmatmul.mubr.msk.f32.gmra.mxu1 %vm951_vm7, %v2101_v62  ;;  %v5659_v18 = vpop.f32.mrf.mxu1 }
 0xa66   :  { %4297 = vmatprep.mubr.msk.f32.mxu1 %vm951_vm7, %v2102_v9 }
 0xa67   :  { %v5661_v55 = vpop.f32.mrf.mxu1 }
 0xa69   :  { %4298 = vmatmul.mubr.msk.f32.gmra.mxu1 %vm951_vm7, %v2103_v36  ;;  %v5663_v62 = vpop.f32.mrf.mxu1 }
 0xa6b   :  { %v5665_v40 = vpop.f32.mrf.mxu1 }
 0xa84   :  { %v2569_v42 = vpop.xlane.xlu1 %2568 }
 0xa85   :  { %v2589_v60 = vsub.f32 %v5539_v45, %v2569_v42 }
 0xa87   :  { %v2598_v28 = vmul.f32 1.442695, %v2589_v60 }
 0xa88   :  { %v2581_v24 = vpop.xlane.xlu1 %2580 }
 0xa89   :  { %4570 = vpow2.f32 %v2598_v28  ;;  %v2566_v30 = vpop.xlane.xlu0 %2565  ;;  %v2593_v34 = vsub.f32 %v5542_v25, %v2581_v24 }
 0xa8a   :  { %v2588_v22 = vsub.f32 %v5547_v56, %v2566_v30 }
 0xa8b   :  { %v2606_v45 = vmul.f32 1.442695, %v2593_v34 }
 0xa8c   :  { %v2596_v27 = vmul.f32 1.442695, %v2588_v22  ;;  %v2587_v35 = vpop.xlane.xlu1 %2586 }
 0xa8d   :  { %v2572_v1 = vpop.xlane.xlu0 %2571  ;;  %v2595_v41 = vsub.f32 %v5550_v58, %v2587_v35 }
 0xa8e   :  { %4572 = vpow2.f32 %v2596_v27  ;;  %v2590_v54 = vsub.f32 %v5555_v49, %v2572_v1 }
 0xa8f   :  { %v2610_v25 = vmul.f32 1.442695, %v2595_v41 }
 0xa90   :  { %v2600_v7 = vmul.f32 1.442695, %v2590_v54  ;;  %v2665_v9 = vpop.permute.xlu1 %2664 }
 0xa91   :  { %v2575_v63 = vpop.xlane.xlu0 %2574 }
 0xa92   :  { %4574 = vpow2.f32 %v2600_v7  ;;  %v2591_v0 = vsub.f32 %v5562_v57, %v2575_v63 }
 0xa94   :  { %v2602_v39 = vmul.f32 1.442695, %v2591_v0  ;;  %v2663_v36 = vpop.permute.xlu1 %2662 }
 0xa95   :  { %v2578_v50 = vpop.xlane.xlu0 %2577 }
 0xa96   :  { %v5615_v56 = vpop.eup %4570  ;;  %4576 = vpow2.f32 %v2602_v39  ;;  %v2592_v6 = vsub.f32 %v5567_v2, %v2578_v50 }
 0xa97   :  { %v2615_v49 = vsel %vm951_vm7, %v5615_v56, 0.0  ;;  %4578 = vpow2.f32 %v2606_v45 }
 0xa98   :  { %v2604_v11 = vmul.f32 1.442695, %v2592_v6  ;;  %2616 = vadd.xlane.f32.xlu1 %v2615_v49  ;;  %v2661_v60 = vpop.permute.xlu1 %2660 }
 0xa99   :  { %v2584_v43 = vpop.xlane.xlu0 %2583 }
 0xa9a   :  { %4580 = vpow2.f32 %v2604_v11  ;;  %v2594_v57 = vsub.f32 %v5572_v10, %v2584_v43 }
 0xa9b   :  { %v5621_v15 = vpop.eup %4572  ;;  %4582 = vpow2.f32 %v2610_v25 }
 0xa9c   :  { %v2608_v58 = vmul.f32 1.442695, %v2594_v57  ;;  %v2612_v12 = vsel %vm951_vm7, %v5621_v15, 0.0  ;;  %v2657_v27 = vpop.permute.xlu1 %2656 }
 0xa9d   :  { %2613 = vadd.xlane.f32.xlu0 %v2612_v12  ;;  %v2667_v2 = vpop.permute.xlu0 %2666 }
 0xa9e   :  { %4584 = vpow2.f32 %v2608_v58  ;;  %4342 = vmatprep.subr.mxu1 %v2667_v2 }
 0xa9f   :  { %v5625_v51 = vpop.eup %4574 }
 0xaa0   :  { %v2618_v61 = vsel %vm951_vm7, %v5625_v51, 0.0 }
 0xaa1   :  { %2619 = vadd.xlane.f32.xlu0 %v2618_v61  ;;  %v2659_v30 = vpop.permute.xlu0 %2658 }
 0xaa3   :  { %v5629_v8 = vpop.eup %4576 }
 0xaa4   :  { %v2621_v10 = vsel %vm951_vm7, %v5629_v8, 0.0  ;;  %v5633_v14 = vpop.eup %4578 }
 0xaa5   :  { %2622 = vadd.xlane.f32.xlu1 %v2621_v10  ;;  %v2627_v32 = vsel %vm951_vm7, %v5633_v14, 0.0 }
 0xaa7   :  { %v5635_v29 = vpop.eup %4580 }
 0xaa8   :  { %v2624_v33 = vsel %vm951_vm7, %v5635_v29, 0.0  ;;  %v5641_v17 = vpop.eup %4582 }
 0xaa9   :  { %2628 = vadd.xlane.f32.xlu1 %v2627_v32  ;;  %2625 = vadd.xlane.f32.xlu0 %v2624_v33  ;;  %v2633_v47 = vsel %vm951_vm7, %v5641_v17, 0.0 }
 0xaab   :  { %v5643_v4 = vpop.eup %4584 }
 0xaac   :  { %v2630_v21 = vsel %vm951_vm7, %v5643_v4, 0.0 }
 0xaad   :  { %2634 = vadd.xlane.f32.xlu1 %v2633_v47  ;;  %2631 = vadd.xlane.f32.xlu0 %v2630_v21 }
 0xabe   :  { %2652 = vrot.lane.b32.xlu1 %v5050_v19, %s4637_s9  ;;  %v5667_v19 = vpop.f32.mrf.mxu1 }
 0xac3   :  { %2654 = vrot.lane.b32.xlu0 %v5042_v52, %s4637_s9 }
 0xb1d   :  { %v4290_v42 = vpop.f32.mrf.mxu1 }
 0xb1f   :  { %v2218_v52 = vpop.f32.mrf.mxu1 }
 0xb20   :  { %4302 = vmatprep.mubr.msk.f32.mxu1 %vm797_vm3, %v2218_v52 }
 0xb21   :  { %v4293_v28 = vpop.f32.mrf.mxu1  ;;  %4303 = vmatmul.mubr.msk.f32.vlgmr.msra.gmra.mxu1 %vm797_vm3, %v4290_v42  ;;  %v2617_v7 = vpop.xlane.xlu1 %2616 }
 0xb22   :  { %4343 = vmatpush3.msra.mxu1 %v2667_v2 }
 0xb23   :  { %4344 = vmatprep.subr.mxu1 %v2665_v9  ;;  %v2228_v22 = vpop.f32.mrf.mxu1 }
 0xb24   :  { %4345 = vmatpush3.msra.mxu1 %v2665_v9  ;;  %4305 = vmatprep.mubr.msk.f32.mxu1 %vm797_vm3, %v2228_v22  ;;  %v1834_v22 = vadd.f32 %v5661_v55, %v5466_v59 }
 0xb25   :  { %4346 = vmatprep.subr.mxu1 %v2663_v36  ;;  %v4296_v24 = vpop.f32.mrf.mxu1  ;;  %4306 = vmatmul.mubr.msk.f32.gmra.mxu1 %vm797_vm3, %v4293_v28 }
 0xb26   :  { %4347 = vmatpush3.msra.mxu1 %v2663_v36  ;;  %v2614_v1 = vpop.xlane.xlu0 %2613 }
 0xb27   :  { %4348 = vmatprep.subr.mxu1 %v2661_v60  ;;  %4586 = vrcp.f32 %v2614_v1  ;;  %v2238_v54 = vpop.f32.mrf.mxu1 }
 0xb28   :  { %4349 = vmatpush3.msra.mxu1 %v2661_v60  ;;  %4308 = vmatprep.mubr.msk.f32.mxu1 %vm797_vm3, %v2238_v54  ;;  %4588 = vrcp.f32 %v2617_v7  ;;  %v1819_v60 = vadd.f32 %v5659_v18, %v5464_v44  ;;  %v1839_v44 = vadd.f32 %v5667_v19, %v5472_v48 }
 0xb29   :  { %4350 = vmatprep.subr.mxu1 %v2659_v30  ;;  %v4299_v34 = vpop.f32.mrf.mxu1  ;;  %4309 = vmatmul.mubr.msk.f32.gmra.mxu1 %vm797_vm3, %v4296_v24 }
 0xb2a   :  { %4351 = vmatpush3.msra.mxu1 %v2659_v30  ;;  %v2620_v35 = vpop.xlane.xlu0 %2619 }
 0xb2b   :  { %4352 = vmatprep.subr.mxu1 %v2657_v27  ;;  %v2248_v63 = vpop.f32.mrf.mxu1  ;;  %4590 = vrcp.f32 %v2620_v35  ;;  %v3751_v35 = vld [vmem:[%s5958_s12] ss:$0 sm:$0xff] }
 0xb2c   :  { %4353 = vmatpush3.msra.mxu1 %v2657_v27  ;;  %4311 = vmatprep.mubr.msk.f32.mxu1 %vm797_vm3, %v2248_v63 }
 0xb2d   :  { %4312 = vmatmul.mubr.msk.f32.gmra.mxu1 %vm797_vm3, %v4299_v34 }
 0xb2e   :  { %v2623_v0 = vpop.xlane.xlu1 %2622 }
 0xb2f   :  { %4592 = vrcp.f32 %v2623_v0 }
 0xb32   :  { %v2629_v45 = vpop.xlane.xlu1 %2628  ;;  %v2626_v41 = vpop.xlane.xlu0 %2625 }
 0xb33   :  { %4594 = vrcp.f32 %v2626_v41 }
 0xb34   :  { %v4587_v39 = vpop.eup %4586  ;;  %4596 = vrcp.f32 %v2629_v45 }
 0xb35   :  { %v2644_v50 = vmul.f32 %v4587_v39, %v5621_v15  ;;  %v4589_v25 = vpop.eup %4588 }
 0xb36   :  { %v2635_v6 = vpop.xlane.xlu1 %2634  ;;  %v2632_v49 = vpop.xlane.xlu0 %2631  ;;  %v2645_v58 = vmul.f32 %v4589_v25, %v5615_v56 }
 0xb37   :  { %4358 = vmatprep.mubr.msk.f32.mxu1 %vm951_vm7, %v2644_v50  ;;  %4598 = vrcp.f32 %v2632_v49 }
 0xb38   :  { %4600 = vrcp.f32 %v2635_v6  ;;  %v4591_v43 = vpop.eup %4590 }
 0xb39   :  { %v2646_v2 = vmul.f32 %v4591_v43, %v5625_v51 }
 0xb3a   :  { %v2655_v11 = vpop.permute.xlu0 %2654  ;;  %v2653_v57 = vpop.permute.xlu1 %2652 }
 0xb3b   :  { %4354 = vmatprep.subr.mxu1 %v2655_v11 }
 0xb3c   :  { %4355 = vmatpush3.msra.mxu1 %v2655_v11  ;;  %v4593_v12 = vpop.eup %4592 }
 0xb3d   :  { %4356 = vmatprep.subr.mxu1 %v2653_v57  ;;  %v2647_v61 = vmul.f32 %v4593_v12, %v5629_v8  ;;  %v2805_v8 = vld [vmem:[%s5957_s11 + $0x18] sm:$0xff] }
 0xb3e   :  { %4357 = vmatpush3.msra.mxu1 %v2653_v57 }
 0xb3f   :  { %4359 = vmatmul.mubr.msk.f32.vlgmr.msra.gmra.mxu1 %vm951_vm7, %v2645_v58  ;;  %4370 = vmatprep.subr.mxu1 %v2805_v8 }
 0xb40   :  { %4361 = vmatprep.mubr.msk.f32.mxu1 %vm951_vm7, %v2646_v2  ;;  %v4595_v15 = vpop.eup %4594  ;;  %4371 = vmatpush3.msra.mxu1 %v2805_v8 }
 0xb41   :  { %v4597_v10 = vpop.eup %4596  ;;  %v2648_v32 = vmul.f32 %v4595_v15, %v5635_v29 }
 0xb42   :  { %v2649_v33 = vmul.f32 %v4597_v10, %v5633_v14  ;;  %v1814_v14 = vadd.f32 %v5653_v46, %v5458_v31 }
 0xb43   :  { %4362 = vmatmul.mubr.msk.f32.gmra.mxu1 %vm951_vm7, %v2647_v61  ;;  %v5992_v61 = vld [vmem:[#allocation4_spill] sm:$0xff] }
 0xb44   :  { %4364 = vmatprep.mubr.msk.f32.mxu1 %vm951_vm7, %v2648_v32  ;;  %v4599_v56 = vpop.eup %4598 }
 0xb45   :  { %v4601_v47 = vpop.eup %4600  ;;  %v2650_v51 = vmul.f32 %v4599_v56, %v5643_v4  ;;  %v1809_v4 = vadd.f32 %v5655_v26, %v5460_v5  ;;  %v1829_v5 = vadd.f32 %v5663_v62, %v5468_v38 }
 0xb46   :  { %v2651_v21 = vmul.f32 %v4601_v47, %v5641_v17  ;;  %v1824_v17 = vadd.f32 %v5657_v53, %v5462_v37  ;;  %v1844_v37 = vadd.f32 %v5665_v40, %v5470_v3  ;;  %v5993_v47 = vld [vmem:[#allocation2_spill] sm:$0xff] }
 0xb47   :  { %4365 = vmatmul.mubr.msk.f32.gmra.mxu1 %vm951_vm7, %v2649_v33 }
 0xb48   :  { %4367 = vmatprep.mubr.msk.f32.mxu1 %vm951_vm7, %v2650_v51 }
 0xb4b   :  { %4368 = vmatmul.mubr.msk.f32.gmra.mxu1 %vm951_vm7, %v2651_v21 }
 0xbe1   :  { %v4304_v29 = vpop.f32.mrf.mxu1 }
 0xbe2   :  { %v2388_v9 = vadd.f32 %v4304_v29, %v1814_v14  ;;  %v5994_v14 = vld [vmem:[#allocation5_spill] sm:$0xff] }
 0xbe3   :  { %v2348_v36 = vpop.f32.mrf.mxu1 }
 0xbe4   :  { %v2387_v42 = vadd.f32 %v2348_v36, %v1809_v4 }
 0xbe5   :  { %v4307_v52 = vpop.f32.mrf.mxu1 }
 0xbe6   :  { %v2390_v28 = vadd.f32 %v4307_v52, %v1824_v17 }
 0xbe7   :  { %v2358_v30 = vpop.f32.mrf.mxu1 }
 0xbe8   :  { %v2389_v31 = vadd.f32 %v2358_v30, %v1819_v60 }
 0xbe9   :  { %v4310_v46 = vpop.f32.mrf.mxu1 }
 0xbea   :  { %v2392_v26 = vadd.f32 %v4310_v46, %v1834_v22 }
 0xbeb   :  { %v2368_v24 = vpop.f32.mrf.mxu1 }
 0xbec   :  { %v2391_v53 = vadd.f32 %v2368_v24, %v1829_v5 }
 0xbed   :  { %v4313_v27 = vpop.f32.mrf.mxu1 }
 0xbee   :  { %v2394_v18 = vadd.f32 %v4313_v27, %v1844_v37 }
 0xbef   :  { %v2378_v1 = vpop.f32.mrf.mxu1 }
 0xbf0   :  { %v2393_v54 = vadd.f32 %v2378_v1, %v1839_v44 }
 0xbff   :  { %v4360_v34 = vpop.f32.mrf.mxu1 }
 0xc01   :  { %v2766_v59 = vpop.f32.mrf.mxu1 }
 0xc02   :  { %4372 = vmatprep.mubr.msk.f32.mxu1 %vm797_vm3, %v2766_v59 }
 0xc03   :  { %v4363_v55 = vpop.f32.mrf.mxu1  ;;  %4373 = vmatmul.mubr.msk.f32.vlgmr.msra.gmra.mxu1 %vm797_vm3, %v4360_v34 }
 0xc05   :  { %v2776_v38 = vpop.f32.mrf.mxu1 }
 0xc06   :  { %4375 = vmatprep.mubr.msk.f32.mxu1 %vm797_vm3, %v2776_v38 }
 0xc07   :  { %v4366_v62 = vpop.f32.mrf.mxu1  ;;  %4376 = vmatmul.mubr.msk.f32.gmra.mxu1 %vm797_vm3, %v4363_v55 }
 0xc09   :  { %v2786_v3 = vpop.f32.mrf.mxu1 }
 0xc0a   :  { %4378 = vmatprep.mubr.msk.f32.mxu1 %vm797_vm3, %v2786_v3 }
 0xc0b   :  { %v4369_v48 = vpop.f32.mrf.mxu1  ;;  %4379 = vmatmul.mubr.msk.f32.gmra.mxu1 %vm797_vm3, %v4366_v62 }
 0xc0d   :  { %v2796_v40 = vpop.f32.mrf.mxu1 }
 0xc0e   :  { %4381 = vmatprep.mubr.msk.f32.mxu1 %vm797_vm3, %v2796_v40 }
 0xc0f   :  { %4382 = vmatmul.mubr.msk.f32.gmra.mxu1 %vm797_vm3, %v4369_v48 }
 0xcc3   :  { %v4374_v19 = vpop.f32.mrf.mxu1 }
 0xcc4   :  { %v2936_v7 = vadd.f32 %v4374_v19, %v2388_v9 }
 0xcc5   :  { %v2896_v63 = vpop.f32.mrf.mxu1 }
 0xcc6   :  { %v2944_v0 = vadd.f32 %v2936_v7, %v4788_v16  ;;  %v2935_v45 = vadd.f32 %v2896_v63, %v2387_v42  ;;  %v5995_v42 = vld [vmem:[#allocation3_spill] sm:$0xff] }
 0xcc7   :  { %v4377_v41 = vpop.f32.mrf.mxu1 }
 0xcc8   :  { %v5724_v39 = vadd.f32 %v3751_v35, %v2944_v0  ;;  %v2943_v50 = vadd.f32 %v2935_v45, %v4786_v13  ;;  %v2938_v6 = vadd.f32 %v4377_v41, %v2390_v28 }
 0xcc9   :  { %v2906_v49 = vpop.f32.mrf.mxu1 }
 0xcca   :  { %v5727_v25 = vadd.f32 %v3751_v35, %v2943_v50  ;;  %v2946_v11 = vadd.f32 %v2938_v6, %v4796_v23  ;;  %v2937_v43 = vadd.f32 %v2906_v49, %v2389_v31  ;;  %v2971_v57 = vsel %vm283_vm2, %v5724_v39, 0.0 }
 0xccb   :  { %2972 = vadd.xlane.f32.xlu1 %v2971_v57  ;;  %v4380_v58 = vpop.f32.mrf.mxu1 }
 0xccc   :  { %v5732_v12 = vadd.f32 %v3751_v35, %v2946_v11  ;;  %v2945_v16 = vadd.f32 %v2937_v43, %v4792_v20  ;;  %v2940_v2 = vadd.f32 %v4380_v58, %v2392_v26  ;;  %v2968_v13 = vsel %vm283_vm2, %v5727_v25, 0.0 }
 0xccd   :  { %2969 = vadd.xlane.f32.xlu0 %v2968_v13  ;;  %v2916_v15 = vpop.f32.mrf.mxu1 }
 0xcce   :  { %v2948_v10 = vadd.f32 %v2940_v2, %v5992_v61  ;;  %v2939_v32 = vadd.f32 %v2916_v15, %v2391_v53  ;;  %v5738_v23 = vadd.f32 %v3751_v35, %v2945_v16  ;;  %v2977_v20 = vsel %vm283_vm2, %v5732_v12, 0.0 }
 0xccf   :  { %v4383_v56 = vpop.f32.mrf.mxu1 }
 0xcd0   :  { %v5740_v33 = vadd.f32 %v3751_v35, %v2948_v10  ;;  %v2947_v51 = vadd.f32 %v2939_v32, %v5993_v47  ;;  %v2942_v21 = vadd.f32 %v4383_v56, %v2394_v18  ;;  %v2974_v60 = vsel %vm283_vm2, %v5738_v23, 0.0  ;;  %v3103_v56 = vld [vmem:[%s5959_s15 + $0x18] sm:$0xff]  ;;  %v3102_v47 = vld [vmem:[%s5959_s15 + $0x10] sm:$0xff] }
 0xcd1   :  { %2978 = vadd.xlane.f32.xlu0 %v2977_v20  ;;  %v2926_v8 = vpop.f32.mrf.mxu1  ;;  %4384 = vmatprep.subr.mxu0 %v3103_v56 }
 0xcd2   :  { %v2950_v29 = vadd.f32 %v2942_v21, %v5994_v14  ;;  %v2941_v4 = vadd.f32 %v2926_v8, %v2393_v54  ;;  %v2983_v9 = vsel %vm283_vm2, %v5740_v33, 0.0  ;;  %v5748_v36 = vadd.f32 %v3751_v35, %v2947_v51  ;;  %4385 = vmatpush3.msra.mxu0 %v3103_v56  ;;  %v3101_v51 = vld [vmem:[%s5959_s15 + $0x8] sm:$0xff]  ;;  %v3100_v21 = vld [vmem:[%s5959_s15] sm:$0xff] }
 0xcd3   :  { %2984 = vadd.xlane.f32.xlu1 %v2983_v9  ;;  %4386 = vmatprep.subr.mxu0 %v3102_v47 }
 0xcd4   :  { %v5750_v17 = vadd.f32 %v3751_v35, %v2950_v29  ;;  %v2949_v52 = vadd.f32 %v2941_v4, %v5995_v42  ;;  %v2980_v22 = vsel %vm283_vm2, %v5748_v36, 0.0  ;;  %4387 = vmatpush3.msra.mxu0 %v3102_v47 }
 0xcd5   :  { %2975 = vadd.xlane.f32.xlu0 %v2974_v60  ;;  %4388 = vmatprep.subr.mxu0 %v3101_v51 }
 0xcd6   :  { %v2989_v28 = vsel %vm283_vm2, %v5750_v17, 0.0  ;;  %v5757_v30 = vadd.f32 %v3751_v35, %v2949_v52  ;;  %4389 = vmatpush3.msra.mxu0 %v3101_v51 }
 0xcd7   :  { %2990 = vadd.xlane.f32.xlu1 %v2989_v28  ;;  %4390 = vmatprep.subr.mxu0 %v3100_v21 }
 0xcd8   :  { %v2986_v31 = vsel %vm283_vm2, %v5757_v30, 0.0  ;;  %4391 = vmatpush3.msra.mxu0 %v3100_v21 }
 0xcd9   :  { %2981 = vadd.xlane.f32.xlu0 %v2980_v22 }
 0xcdd   :  { %2987 = vadd.xlane.f32.xlu0 %v2986_v31 }
 0xd54   :  { %v2973_v46 = vpop.xlane.xlu1 %2972 }
 0xd55   :  { %v2993_v5 = vmul.f32 0.03125, %v2973_v46 }
 0xd56   :  { %v2970_v26 = vpop.xlane.xlu0 %2969 }
 0xd57   :  { %v5764_v24 = vsub.f32 %v5724_v39, %v2993_v5  ;;  %v2992_v37 = vmul.f32 0.03125, %v2970_v26 }
 0xd59   :  { %v5767_v53 = vsub.f32 %v5727_v25, %v2992_v37  ;;  %v3009_v27 = vmul.f32 %v5764_v24, %v5764_v24 }
 0xd5a   :  { %v2979_v44 = vpop.xlane.xlu0 %2978 }
 0xd5b   :  { %v2995_v18 = vmul.f32 0.03125, %v2979_v44  ;;  %v3019_v1 = vsel %vm283_vm2, %v3009_v27, 0.0  ;;  %v3008_v54 = vmul.f32 %v5767_v53, %v5767_v53 }
 0xd5c   :  { %v2985_v34 = vpop.xlane.xlu1 %2984  ;;  %3020 = vadd.xlane.f32.xlu1 %v3019_v1 }
 0xd5d   :  { %v5775_v59 = vsub.f32 %v5732_v12, %v2995_v18  ;;  %v2997_v55 = vmul.f32 0.03125, %v2985_v34  ;;  %v3016_v38 = vsel %vm283_vm2, %v3008_v54, 0.0 }
 0xd5e   :  { %v2976_v62 = vpop.xlane.xlu0 %2975  ;;  %3017 = vadd.xlane.f32.xlu0 %v3016_v38  ;;  %v3752_v38 = vld [vmem:[%s5960_s13] ss:$0 sm:$0xff] }
 0xd5f   :  { %v5779_v3 = vsub.f32 %v5740_v33, %v2997_v55  ;;  %v2994_v48 = vmul.f32 0.03125, %v2976_v62  ;;  %v3011_v40 = vmul.f32 %v5775_v59, %v5775_v59 }
 0xd60   :  { %v2991_v19 = vpop.xlane.xlu1 %2990 }
 0xd61   :  { %v5784_v7 = vsub.f32 %v5738_v23, %v2994_v48  ;;  %v2999_v35 = vmul.f32 0.03125, %v2991_v19  ;;  %v3025_v63 = vsel %vm283_vm2, %v3011_v40, 0.0  ;;  %v3013_v0 = vmul.f32 %v5779_v3, %v5779_v3 }
 0xd62   :  { %v2982_v45 = vpop.xlane.xlu0 %2981  ;;  %3026 = vadd.xlane.f32.xlu1 %v3025_v63 }
 0xd63   :  { %v5790_v41 = vsub.f32 %v5750_v17, %v2999_v35  ;;  %v2996_v50 = vmul.f32 0.03125, %v2982_v45  ;;  %v3010_v6 = vmul.f32 %v5784_v7, %v5784_v7  ;;  %v3031_v11 = vsel %vm283_vm2, %v3013_v0, 0.0  ;;  %v3753_v0 = vld [vmem:[%s5961_s14] ss:$0 sm:$0xff] }
 0xd65   :  { %v5795_v49 = vsub.f32 %v5748_v36, %v2996_v50  ;;  %v3022_v43 = vsel %vm283_vm2, %v3010_v6, 0.0  ;;  %v3015_v57 = vmul.f32 %v5790_v41, %v5790_v41 }
 0xd66   :  { %3032 = vadd.xlane.f32.xlu1 %v3031_v11  ;;  %3023 = vadd.xlane.f32.xlu0 %v3022_v43  ;;  %v2988_v58 = vpop.xlane.xlu0 %2987 }
 0xd67   :  { %v2998_v16 = vmul.f32 0.03125, %v2988_v58  ;;  %v3012_v2 = vmul.f32 %v5795_v49, %v5795_v49  ;;  %v3037_v15 = vsel %vm283_vm2, %v3015_v57, 0.0 }
 0xd69   :  { %v5804_v13 = vsub.f32 %v5757_v30, %v2998_v16  ;;  %v3028_v61 = vsel %vm283_vm2, %v3012_v2, 0.0 }
 0xd6a   :  { %3038 = vadd.xlane.f32.xlu1 %v3037_v15  ;;  %3029 = vadd.xlane.f32.xlu0 %v3028_v61 }
 0xd6b   :  { %v3014_v10 = vmul.f32 %v5804_v13, %v5804_v13 }
 0xd6d   :  { %v3034_v32 = vsel %vm283_vm2, %v3014_v10, 0.0 }
 0xd6e   :  { %3035 = vadd.xlane.f32.xlu0 %v3034_v32 }
 0xde5   :  { %v3021_v20 = vpop.xlane.xlu1 %3020 }
 0xde6   :  { %v3041_v8 = vmul.f32 0.03125, %v3021_v20 }
 0xde7   :  { %v3018_v14 = vpop.xlane.xlu0 %3017 }
 0xde8   :  { %v3049_v29 = vadd.f32 1e-05, %v3041_v8  ;;  %v3040_v4 = vmul.f32 0.03125, %v3018_v14 }
 0xdea   :  { %4602 = vrsqrt.f32 %v3049_v29  ;;  %v3048_v9 = vadd.f32 1e-05, %v3040_v4  ;;  %v3287_v29 = vld [vmem:[%s5962_s17 + $0x38] sm:$0xff]  ;;  %v3285_v4 = vld [vmem:[%s5962_s17 + $0x28] sm:$0xff] }
 0xdeb   :  { %v3027_v42 = vpop.xlane.xlu1 %3026  ;;  %4404 = vmatprep.subr.mxu1 %v3287_v29 }
 0xdec   :  { %4604 = vrsqrt.f32 %v3048_v9  ;;  %v3043_v52 = vmul.f32 0.03125, %v3027_v42  ;;  %4405 = vmatpush3.msra.mxu1 %v3287_v29  ;;  %v3284_v9 = vld [vmem:[%s5962_s17 + $0x20] sm:$0xff]  ;;  %v3283_v42 = vld [vmem:[%s5962_s17 + $0x18] sm:$0xff] }
 0xdee   :  { %v3051_v60 = vadd.f32 1e-05, %v3043_v52  ;;  %v3282_v52 = vld [vmem:[%s5962_s17 + $0x10] sm:$0xff] }
 0xdef   :  { %v3033_v28 = vpop.xlane.xlu1 %3032  ;;  %v3024_v22 = vpop.xlane.xlu0 %3023 }
 0xdf0   :  { %4606 = vrsqrt.f32 %v3051_v60  ;;  %v3045_v31 = vmul.f32 0.03125, %v3033_v28  ;;  %v3042_v46 = vmul.f32 0.03125, %v3024_v22  ;;  %v3281_v60 = vld [vmem:[%s5962_s17 + $0x8] sm:$0xff]  ;;  %v3280_v28 = vld [vmem:[%s5962_s17] sm:$0xff]  ;;  %v3435_v22 = vld [vmem:[%s5963_s19 + $0x18] sm:$0xff] }
 0xdf1   :  { %4432 = vmatprep.subr.mxu0 %v3435_v22 }
 0xdf2   :  { %v3053_v5 = vadd.f32 1e-05, %v3045_v31  ;;  %v3050_v26 = vadd.f32 1e-05, %v3042_v46  ;;  %v3754_v31 = vld [vmem:[%s5964_s16] ss:$0 sm:$0xff] }
 0xdf3   :  { %v3039_v37 = vpop.xlane.xlu1 %3038  ;;  %v3030_v27 = vpop.xlane.xlu0 %3029 }
 0xdf4   :  { %4608 = vrsqrt.f32 %v3053_v5  ;;  %v3047_v44 = vmul.f32 0.03125, %v3039_v37  ;;  %v3044_v18 = vmul.f32 0.03125, %v3030_v27 }
 0xdf5   :  { %4610 = vrsqrt.f32 %v3050_v26 }
 0xdf6   :  { %v3055_v1 = vadd.f32 1e-05, %v3047_v44  ;;  %v3052_v54 = vadd.f32 1e-05, %v3044_v18 }
 0xdf7   :  { %v4603_v34 = vpop.eup %4602  ;;  %v3036_v55 = vpop.xlane.xlu0 %3035 }
 0xdf8   :  { %v3065_v62 = vmul.f32 %v4603_v34, %v5764_v24  ;;  %4612 = vrsqrt.f32 %v3055_v1  ;;  %v3046_v48 = vmul.f32 0.03125, %v3036_v55 }
 0xdf9   :  { %v4605_v40 = vpop.eup %4604  ;;  %4614 = vrsqrt.f32 %v3052_v54 }
 0xdfa   :  { %v3054_v19 = vadd.f32 1e-05, %v3046_v48  ;;  %v3064_v35 = vmul.f32 %v4605_v40, %v5767_v53  ;;  %v3079_v63 = vmul.f32 %v3752_v38, %v3065_v62 }
 0xdfc   :  { %4616 = vrsqrt.f32 %v3054_v19  ;;  %v3078_v45 = vmul.f32 %v3752_v38, %v3064_v35  ;;  %v3093_v11 = vadd.f32 %v3753_v0, %v3079_v63 }
 0xdfd   :  { %v4607_v50 = vpop.eup %4606 }
 0xdfe   :  { %v3092_v6 = vadd.f32 %v3753_v0, %v3078_v45  ;;  %v3067_v24 = vmul.f32 %v4607_v50, %v5775_v59 }
 0xe00   :  { %4392 = vmatprep.mubr.msk.f32.mxu0 %vm283_vm2, %v3092_v6  ;;  %v3081_v58 = vmul.f32 %v3752_v38, %v3067_v24 }
 0xe01   :  { %v4609_v43 = vpop.eup %4608  ;;  %4393 = vmatmul.mubr.msk.f32.vlgmr.msra.gmra.mxu0 %vm283_vm2, %v3093_v11 }
 0xe02   :  { %v4611_v57 = vpop.eup %4610  ;;  %v3069_v16 = vmul.f32 %v4609_v43, %v5779_v3  ;;  %v3095_v56 = vadd.f32 %v3753_v0, %v3081_v58  ;;  %4433 = vmatpush3.msra.mxu0 %v3435_v22 }
 0xe03   :  { %v3066_v53 = vmul.f32 %v4611_v57, %v5784_v7 }
 0xe04   :  { %v3083_v47 = vmul.f32 %v3752_v38, %v3069_v16 }
 0xe05   :  { %v4613_v2 = vpop.eup %4612  ;;  %v3080_v15 = vmul.f32 %v3752_v38, %v3066_v53 }
 0xe06   :  { %v4615_v61 = vpop.eup %4614  ;;  %v3071_v51 = vmul.f32 %v4613_v2, %v5790_v41  ;;  %v3097_v3 = vadd.f32 %v3753_v0, %v3083_v47 }
 0xe07   :  { %v3094_v10 = vadd.f32 %v3753_v0, %v3080_v15  ;;  %v3068_v32 = vmul.f32 %v4615_v61, %v5795_v49 }
 0xe08   :  { %v3085_v14 = vmul.f32 %v3752_v38, %v3071_v51 }
 0xe09   :  { %v4617_v59 = vpop.eup %4616  ;;  %4395 = vmatprep.mubr.msk.f32.mxu0 %vm283_vm2, %v3094_v10  ;;  %v3082_v21 = vmul.f32 %v3752_v38, %v3068_v32 }
 0xe0a   :  { %4396 = vmatmul.mubr.msk.f32.gmra.mxu0 %vm283_vm2, %v3095_v56  ;;  %v3070_v7 = vmul.f32 %v4617_v59, %v5804_v13  ;;  %v3099_v41 = vadd.f32 %v3753_v0, %v3085_v14  ;;  %v3286_v13 = vld [vmem:[%s5962_s17 + $0x30] sm:$0xff] }
 0xe0b   :  { %v3096_v20 = vadd.f32 %v3753_v0, %v3082_v21  ;;  %4406 = vmatprep.subr.mxu1 %v3286_v13 }
 0xe0c   :  { %v3084_v8 = vmul.f32 %v3752_v38, %v3070_v7  ;;  %4407 = vmatpush3.msra.mxu1 %v3286_v13 }
 0xe0d   :  { %4398 = vmatprep.mubr.msk.f32.mxu0 %vm283_vm2, %v3096_v20  ;;  %4408 = vmatprep.subr.mxu1 %v3285_v4 }
 0xe0e   :  { %4399 = vmatmul.mubr.msk.f32.gmra.mxu0 %vm283_vm2, %v3097_v3  ;;  %v3098_v49 = vadd.f32 %v3753_v0, %v3084_v8  ;;  %4409 = vmatpush3.msra.mxu1 %v3285_v4 }
 0xe0f   :  { %4410 = vmatprep.subr.mxu1 %v3284_v9 }
 0xe10   :  { %4401 = vmatprep.mubr.msk.f32.mxu0 %vm283_vm2, %v3098_v49  ;;  %4411 = vmatpush3.msra.mxu1 %v3284_v9 }
 0xe11   :  { %4412 = vmatprep.subr.mxu1 %v3283_v42 }
 0xe12   :  { %4402 = vmatmul.mubr.msk.f32.gmra.mxu0 %vm283_vm2, %v3099_v41  ;;  %4413 = vmatpush3.msra.mxu1 %v3283_v42 }
 0xe13   :  { %4414 = vmatprep.subr.mxu1 %v3282_v52 }
 0xe14   :  { %4415 = vmatpush3.msra.mxu1 %v3282_v52 }
 0xe15   :  { %4416 = vmatprep.subr.mxu1 %v3281_v60 }
 0xe16   :  { %4417 = vmatpush3.msra.mxu1 %v3281_v60 }
 0xe17   :  { %4418 = vmatprep.subr.mxu1 %v3280_v28 }
 0xe18   :  { %4419 = vmatpush3.msra.mxu1 %v3280_v28 }
 0xec1   :  { %v4394_v46 = vpop.f32.mrf.mxu0 }
 0xec2   :  { %v3207_v5 = vadd.f32 %v4394_v46, %v3754_v31  ;;  %v3434_v46 = vld [vmem:[%s5963_s19 + $0x10] sm:$0xff] }
 0xec3   :  { %v3201_v26 = vpop.f32.mrf.mxu0  ;;  %4434 = vmatprep.subr.mxu0 %v3434_v46 }
 0xec4   :  { %v3249_v37 = vmul.f32 0.70710677, %v3207_v5  ;;  %v3202_v27 = vadd.f32 %v3754_v31, %v3201_v26  ;;  %v3241_v16 = vmul.f32 0.5, %v3207_v5  ;;  %4435 = vmatpush3.msra.mxu0 %v3434_v46  ;;  %v3433_v5 = vld [vmem:[%s5963_s19 + $0x8] sm:$0xff]  ;;  %v3432_v26 = vld [vmem:[%s5963_s19] sm:$0xff] }
 0xec5   :  { %4436 = vmatprep.subr.mxu0 %v3433_v5 }
 0xec6   :  { %4618 = verf.f32 %v3249_v37  ;;  %v3248_v44 = vmul.f32 0.70710677, %v3202_v27  ;;  %v3240_v53 = vmul.f32 0.5, %v3202_v27  ;;  %4437 = vmatpush3.msra.mxu0 %v3433_v5  ;;  %v3763_v37 = vld [vmem:[%s5965_s18] ss:$0 sm:$0xff] }
 0xec7   :  { %4438 = vmatprep.subr.mxu0 %v3432_v26 }
 0xec8   :  { %4620 = verf.f32 %v3248_v44  ;;  %4439 = vmatpush3.msra.mxu0 %v3432_v26 }
 0xeca   :  { %v4397_v18 = vpop.f32.mrf.mxu0 }
 0xecb   :  { %v3217_v1 = vadd.f32 %v4397_v18, %v3754_v31 }
 0xecc   :  { %v3211_v54 = vpop.f32.mrf.mxu0 }
 0xecd   :  { %v3251_v34 = vmul.f32 0.70710677, %v3217_v1  ;;  %v3212_v55 = vadd.f32 %v3754_v31, %v3211_v54  ;;  %v3243_v21 = vmul.f32 0.5, %v3217_v1 }
 0xece   :  { %v4400_v38 = vpop.f32.mrf.mxu0 }
 0xecf   :  { %4622 = verf.f32 %v3251_v34  ;;  %v3250_v62 = vmul.f32 0.70710677, %v3212_v55  ;;  %v3227_v48 = vadd.f32 %v4400_v38, %v3754_v31  ;;  %v3242_v47 = vmul.f32 0.5, %v3212_v55 }
 0xed0   :  { %v3221_v40 = vpop.f32.mrf.mxu0 }
 0xed1   :  { %4624 = verf.f32 %v3250_v62  ;;  %v3253_v19 = vmul.f32 0.70710677, %v3227_v48  ;;  %v3222_v35 = vadd.f32 %v3754_v31, %v3221_v40  ;;  %v3245_v29 = vmul.f32 0.5, %v3227_v48 }
 0xed2   :  { %v4403_v63 = vpop.f32.mrf.mxu0 }
 0xed3   :  { %v4619_v0 = vpop.eup %4618  ;;  %4626 = verf.f32 %v3253_v19  ;;  %v3252_v45 = vmul.f32 0.70710677, %v3222_v35  ;;  %v3237_v50 = vadd.f32 %v4403_v63, %v3754_v31  ;;  %v3244_v14 = vmul.f32 0.5, %v3222_v35 }
 0xed4   :  { %v3231_v6 = vpop.f32.mrf.mxu0  ;;  %v3265_v24 = vadd.f32 1.0, %v4619_v0 }
 0xed5   :  { %v4621_v11 = vpop.eup %4620  ;;  %4628 = verf.f32 %v3252_v45  ;;  %v3255_v43 = vmul.f32 0.70710677, %v3237_v50  ;;  %v3232_v57 = vadd.f32 %v3754_v31, %v3231_v6  ;;  %v3247_v28 = vmul.f32 0.5, %v3237_v50 }
 0xed6   :  { %v3264_v58 = vadd.f32 1.0, %v4621_v11  ;;  %v3273_v61 = vmul.f32 %v3265_v24, %v3241_v16 }
 0xed7   :  { %4630 = verf.f32 %v3255_v43  ;;  %v3254_v2 = vmul.f32 0.70710677, %v3232_v57  ;;  %v3246_v52 = vmul.f32 0.5, %v3232_v57 }
 0xed8   :  { %v3272_v15 = vmul.f32 %v3264_v58, %v3240_v53 }
 0xed9   :  { %4632 = verf.f32 %v3254_v2 }
 0xeda   :  { %4420 = vmatprep.mubr.msk.f32.mxu1 %vm951_vm7, %v3272_v15 }
 0xedb   :  { %4421 = vmatmul.mubr.msk.f32.vlgmr.msra.gmra.mxu1 %vm951_vm7, %v3273_v61 }
 0xedc   :  { %v4623_v10 = vpop.eup %4622 }
 0xedd   :  { %v3267_v56 = vadd.f32 1.0, %v4623_v10 }
 0xede   :  { %v4625_v32 = vpop.eup %4624 }
 0xedf   :  { %v3266_v51 = vadd.f32 1.0, %v4625_v32  ;;  %v3275_v3 = vmul.f32 %v3267_v56, %v3243_v21 }
 0xee0   :  { %v4627_v59 = vpop.eup %4626 }
 0xee1   :  { %v3274_v7 = vmul.f32 %v3266_v51, %v3242_v47  ;;  %v3269_v8 = vadd.f32 1.0, %v4627_v59 }
 0xee2   :  { %v4629_v20 = vpop.eup %4628 }
 0xee3   :  { %v3268_v49 = vadd.f32 1.0, %v4629_v20  ;;  %4423 = vmatprep.mubr.msk.f32.mxu1 %vm951_vm7, %v3274_v7  ;;  %v3277_v9 = vmul.f32 %v3269_v8, %v3245_v29 }
 0xee4   :  { %v4631_v41 = vpop.eup %4630  ;;  %4424 = vmatmul.mubr.msk.f32.gmra.mxu1 %vm951_vm7, %v3275_v3 }
 0xee5   :  { %v3276_v13 = vmul.f32 %v3268_v49, %v3244_v14  ;;  %v3271_v42 = vadd.f32 1.0, %v4631_v41 }
 0xee6   :  { %v4633_v4 = vpop.eup %4632 }
 0xee7   :  { %v3270_v60 = vadd.f32 1.0, %v4633_v4  ;;  %4426 = vmatprep.mubr.msk.f32.mxu1 %vm951_vm7, %v3276_v13  ;;  %v3279_v31 = vmul.f32 %v3271_v42, %v3247_v28 }
 0xee8   :  { %4427 = vmatmul.mubr.msk.f32.gmra.mxu1 %vm951_vm7, %v3277_v9 }
 0xee9   :  { %v3278_v22 = vmul.f32 %v3270_v60, %v3246_v52 }
 0xeeb   :  { %4429 = vmatprep.mubr.msk.f32.mxu1 %vm951_vm7, %v3278_v22 }
 0xeec   :  { %4430 = vmatmul.mubr.msk.f32.gmra.mxu1 %vm951_vm7, %v3279_v31 }
 0xf9b   :  { %v4422_v27 = vpop.f32.mrf.mxu1 }
 0xf9c   :  { %v3391_v44 = vadd.f32 %v4422_v27, %v3763_v37 }
 0xf9d   :  { %v3385_v18 = vpop.f32.mrf.mxu1 }
 0xf9e   :  { %v3386_v1 = vadd.f32 %v3763_v37, %v3385_v18  ;;  %v3425_v34 = vadd.f32 %v3391_v44, %v5724_v39 }
 0xfa0   :  { %v3424_v54 = vadd.f32 %v3386_v1, %v5727_v25 }
 0xfa2   :  { %4440 = vmatprep.mubr.msk.f32.mxu0 %vm283_vm2, %v3424_v54 }
 0xfa3   :  { %4441 = vmatmul.mubr.msk.f32.vlgmr.msra.gmra.mxu0 %vm283_vm2, %v3425_v34 }
 0xfa4   :  { %v4425_v55 = vpop.f32.mrf.mxu1 }
 0xfa5   :  { %v3401_v38 = vadd.f32 %v4425_v55, %v3763_v37 }
 0xfa6   :  { %v3395_v62 = vpop.f32.mrf.mxu1 }
 0xfa7   :  { %v3396_v48 = vadd.f32 %v3763_v37, %v3395_v62  ;;  %v3427_v35 = vadd.f32 %v3401_v38, %v5732_v12 }
 0xfa8   :  { %v4428_v40 = vpop.f32.mrf.mxu1 }
 0xfa9   :  { %v3426_v19 = vadd.f32 %v3396_v48, %v5738_v23  ;;  %v3411_v63 = vadd.f32 %v4428_v40, %v3763_v37 }
 0xfaa   :  { %v3405_v0 = vpop.f32.mrf.mxu1 }
 0xfab   :  { %v3406_v45 = vadd.f32 %v3763_v37, %v3405_v0  ;;  %4443 = vmatprep.mubr.msk.f32.mxu0 %vm283_vm2, %v3426_v19  ;;  %v3429_v50 = vadd.f32 %v3411_v63, %v5740_v33 }
 0xfac   :  { %v4431_v25 = vpop.f32.mrf.mxu1  ;;  %4444 = vmatmul.mubr.msk.f32.gmra.mxu0 %vm283_vm2, %v3427_v35 }
 0xfad   :  { %v3428_v39 = vadd.f32 %v3406_v45, %v5748_v36  ;;  %v3421_v6 = vadd.f32 %v4431_v25, %v3763_v37  ;;  %v3772_v36 = vld [vmem:[%s5966_s20] ss:$0 sm:$0xff] }
 0xfae   :  { %v3415_v11 = vpop.f32.mrf.mxu1 }
 0xfaf   :  { %v3416_v24 = vadd.f32 %v3763_v37, %v3415_v11  ;;  %4446 = vmatprep.mubr.msk.f32.mxu0 %vm283_vm2, %v3428_v39  ;;  %v3431_v23 = vadd.f32 %v3421_v6, %v5750_v17 }
 0xfb0   :  { %4447 = vmatmul.mubr.msk.f32.gmra.mxu0 %vm283_vm2, %v3429_v50 }
 0xfb1   :  { %v3430_v12 = vadd.f32 %v3416_v24, %v5757_v30 }
 0xfb3   :  { %4449 = vmatprep.mubr.msk.f32.mxu0 %vm283_vm2, %v3430_v12 }
 0xfb4   :  { %4450 = vmatmul.mubr.msk.f32.gmra.mxu0 %vm283_vm2, %v3431_v23 }
0x1063   :  { %v4442_v33 = vpop.f32.mrf.mxu0 }
0x1064   :  { %v3539_v43 = vadd.f32 %v4442_v33, %v3772_v36 }
0x1065   :  { %v3533_v57 = vpop.f32.mrf.mxu0 }
0x1066   :  { %3573 = vst.msk [vmem:[%s5967_s21 + $0x8] sm:$0xff] %vm84_vm1, %v3539_v43  ;;  %v3534_v53 = vadd.f32 %v3772_v36, %v3533_v57 }
0x1068   :  { %3572 = vst.msk [vmem:[%s5967_s21] sm:$0xff] %vm84_vm1, %v3534_v53 }
0x106c   :  { %v4445_v17 = vpop.f32.mrf.mxu0 }
0x106d   :  { %v3549_v30 = vadd.f32 %v4445_v17, %v3772_v36 }
0x106e   :  { %v3543_v58 = vpop.f32.mrf.mxu0 }
0x106f   :  { %3575 = vst.msk [vmem:[%s5967_s21 + $0x18] sm:$0xff] %vm84_vm1, %v3549_v30  ;;  %v3544_v16 = vadd.f32 %v3772_v36, %v3543_v58 }
0x1070   :  { %v4448_v2 = vpop.f32.mrf.mxu0 }
0x1071   :  { %3574 = vst.msk [vmem:[%s5967_s21 + $0x10] sm:$0xff] %vm84_vm1, %v3544_v16  ;;  %v3559_v15 = vadd.f32 %v4448_v2, %v3772_v36 }
0x1072   :  { %v3553_v61 = vpop.f32.mrf.mxu0 }
0x1073   :  { %3577 = vst.msk [vmem:[%s5967_s21 + $0x28] sm:$0xff] %vm84_vm1, %v3559_v15  ;;  %v3554_v10 = vadd.f32 %v3772_v36, %v3553_v61 }
0x1074   :  { %v4451_v32 = vpop.f32.mrf.mxu0 }
0x1075   :  { %3576 = vst.msk [vmem:[%s5967_s21 + $0x20] sm:$0xff] %vm84_vm1, %v3554_v10  ;;  %v3569_v56 = vadd.f32 %v4451_v32, %v3772_v36 }
0x1076   :  { %v3563_v47 = vpop.f32.mrf.mxu0 }
0x1077   :  { %3579 = vst.msk [vmem:[%s5967_s21 + $0x38] sm:$0xff] %vm84_vm1, %v3569_v56  ;;  %v3564_v51 = vadd.f32 %v3772_v36, %v3563_v47 }
0x1079   :  { %3578 = vst.msk [vmem:[%s5967_s21 + $0x30] sm:$0xff] %vm84_vm1, %v3564_v51 }

</bundles_post_ra>
